<compile_context>
chip_gen: v5e
topology: v5e:2x2
jax: 0.10.0
libtpu: 0.0.40
codegen_flags: <defaults>
</compile_context>

<pallas_src>
import functools

import jax
import jax.numpy as jnp
from jax.experimental import pallas as pl
from jax.experimental.pallas import tpu as pltpu

EPS = 1e-5


# ----------------------------------------------------------------------------
# tiling helpers
# ----------------------------------------------------------------------------
def _round_up(x, m):
    return ((x + m - 1) // m) * m


def _m_tile(M, cap=512):
    """Row tile (multiple of 16) and padded M it divides."""
    m_pad = _round_up(M, 16)
    tm = 16
    for t in (512, 256, 128, 64, 32, 16):
        if t <= cap and m_pad % t == 0:
            tm = t
            break
    if tm < 128 and m_pad >= 8 * 512:   # avoid tiny tiles on big awkward M
        m_pad = _round_up(M, 512)
        tm = 512
    return tm, m_pad


def _cn_tile(D, cap):
    """Channel / K tile: full dim if small, else a 128-multiple divisor."""
    if D <= cap:
        return D
    for t in range(cap, 127, -128):
        if t % 128 == 0 and D % t == 0:
            return t
    return D


# ----------------------------------------------------------------------------
# Pallas kernels
# ----------------------------------------------------------------------------
def _mm_stats_kernel(x_ref, w_ref, y_ref, st_ref, acc_ref):
    """Tiled matmul (bf16 x bf16 -> f32) fused with per-channel sum / sumsq."""
    k = pl.program_id(2)

    @pl.when(k == 0)
    def _():
        acc_ref[...] = jnp.zeros_like(acc_ref)

    acc_ref[...] += jnp.dot(x_ref[...], w_ref[...],
                            preferred_element_type=jnp.float32)

    @pl.when(k == pl.num_programs(2) - 1)
    def _():
        acc = acc_ref[...]
        y_ref[...] = acc.astype(y_ref.dtype)
        ssum = jnp.sum(acc, axis=0, keepdims=True)          # (1, tn)
        ssq = jnp.sum(acc * acc, axis=0, keepdims=True)     # (1, tn)
        rows = jax.lax.broadcasted_iota(jnp.int32, st_ref.shape, 0)
        st_ref[...] = jnp.where(rows == 0, ssum,
                                jnp.where(rows == 1, ssq, 0.0))


def _bn_act_kernel(y_ref, a_ref, b_ref, o_ref, *, relu):
    """out = y * scale + shift (+ optional ReLU)."""
    out = y_ref[...] * a_ref[...] + b_ref[...]
    if relu:
        out = jnp.maximum(out, 0.0)
    o_ref[...] = out.astype(o_ref.dtype)


def _bn2_add_relu_kernel(y_ref, s_ref, ay_ref, by_ref, as_ref, bs_ref, o_ref):
    """relu( BN(y) + BN(shortcut) ) — the fused Bottleneck tail."""
    out = y_ref[...].astype(jnp.float32) * ay_ref[...] + by_ref[...]
    out = out + s_ref[...].astype(jnp.float32) * as_ref[...] + bs_ref[...]
    o_ref[...] = jnp.maximum(out, 0.0)


# ----------------------------------------------------------------------------
# Pallas wrappers
# ----------------------------------------------------------------------------
def matmul_stats(x, w):
    """(M,K)@(K,C) -> (y f32 (M,C), stats f32 (8*m_tiles, C)) fused kernel."""
    M, K = x.shape
    _, C = w.shape
    tm, m_pad = _m_tile(M)
    if m_pad != M:
        x = jnp.pad(x, ((0, m_pad - M), (0, 0)))   # zero rows: stats unaffected
    tn = _cn_tile(C, 512)
    tk = _cn_tile(K, 1024)
    gm, gn, gk = m_pad // tm, C // tn, K // tk

    y, stats = pl.pallas_call(
        _mm_stats_kernel,
        out_shape=(jax.ShapeDtypeStruct((m_pad, C), jnp.float32),
                   jax.ShapeDtypeStruct((8 * gm, C), jnp.float32)),
        grid=(gm, gn, gk),
        in_specs=[
            pl.BlockSpec((tm, tk), lambda i, j, k: (i, k)),
            pl.BlockSpec((tk, tn), lambda i, j, k: (k, j)),
        ],
        out_specs=(
            pl.BlockSpec((tm, tn), lambda i, j, k: (i, j)),
            pl.BlockSpec((8, tn), lambda i, j, k: (i, j)),
        ),
        scratch_shapes=[pltpu.VMEM((tm, tn), jnp.float32)],
        compiler_params=pltpu.CompilerParams(
            dimension_semantics=("parallel", "parallel", "arbitrary")),
    )(x, w)
    if m_pad != M:
        y = y[:M]
    return y, stats


def bn_scale_shift(stats, count, gamma, beta):
    """Finalize training-mode BN stats -> per-channel (scale, shift)."""
    C = stats.shape[-1]
    st = stats.reshape(-1, 8, C)
    s1 = jnp.sum(st[:, 0, :], axis=0)
    s2 = jnp.sum(st[:, 1, :], axis=0)
    mean = s1 / count
    var = jnp.maximum(s2 / count - mean * mean, 0.0)
    scale = gamma * jax.lax.rsqrt(var + EPS)
    shift = beta - mean * scale
    return scale.reshape(1, C), shift.reshape(1, C)


def bn_apply(y, scale, shift, *, relu, out_dtype):
    M, C = y.shape
    tm, m_pad = _m_tile(M)
    if m_pad != M:
        y = jnp.pad(y, ((0, m_pad - M), (0, 0)))
    tn = _cn_tile(C, 512)
    out = pl.pallas_call(
        functools.partial(_bn_act_kernel, relu=relu),
        out_shape=jax.ShapeDtypeStruct((m_pad, C), out_dtype),
        grid=(m_pad // tm, C // tn),
        in_specs=[
            pl.BlockSpec((tm, tn), lambda i, j: (i, j)),
            pl.BlockSpec((1, tn), lambda i, j: (0, j)),
            pl.BlockSpec((1, tn), lambda i, j: (0, j)),
        ],
        out_specs=pl.BlockSpec((tm, tn), lambda i, j: (i, j)),
        compiler_params=pltpu.CompilerParams(
            dimension_semantics=("parallel", "parallel")),
    )(y, scale, shift)
    return out[:M] if m_pad != M else out


def bn2_add_relu(y, s, sc_y, sh_y, sc_s, sh_s):
    M, C = y.shape
    tm, m_pad = _m_tile(M)
    if m_pad != M:
        y = jnp.pad(y, ((0, m_pad - M), (0, 0)))
        s = jnp.pad(s, ((0, m_pad - M), (0, 0)))
    tn = _cn_tile(C, 512)
    out = pl.pallas_call(
        _bn2_add_relu_kernel,
        out_shape=jax.ShapeDtypeStruct((m_pad, C), jnp.float32),
        grid=(m_pad // tm, C // tn),
        in_specs=[
            pl.BlockSpec((tm, tn), lambda i, j: (i, j)),
            pl.BlockSpec((tm, tn), lambda i, j: (i, j)),
            pl.BlockSpec((1, tn), lambda i, j: (0, j)),
            pl.BlockSpec((1, tn), lambda i, j: (0, j)),
            pl.BlockSpec((1, tn), lambda i, j: (0, j)),
            pl.BlockSpec((1, tn), lambda i, j: (0, j)),
        ],
        out_specs=pl.BlockSpec((tm, tn), lambda i, j: (i, j)),
        compiler_params=pltpu.CompilerParams(
            dimension_semantics=("parallel", "parallel")),
    )(y, s, sc_y, sh_y, sc_s, sh_s)
    return out[:M] if m_pad != M else out


# ----------------------------------------------------------------------------
# im2col for the 3x3 / stride-s / pad-1 conv (XLA layout plumbing, bf16)
# ----------------------------------------------------------------------------
def im2col_3x3(x_nhwc, stride):
    N, H, W, C = x_nhwc.shape
    xp = jnp.pad(x_nhwc, ((0, 0), (1, 1), (1, 1), (0, 0)))
    Ho = (H + 2 - 3) // stride + 1
    Wo = (W + 2 - 3) // stride + 1
    cols = [xp[:, dh:dh + stride * (Ho - 1) + 1:stride,
               dw:dw + stride * (Wo - 1) + 1:stride, :]
            for dh in range(3) for dw in range(3)]
    patches = jnp.concatenate(cols, axis=-1)             # (N, Ho, Wo, 9*C)
    return patches.reshape(N * Ho * Wo, 9 * C), (Ho, Wo)


# ----------------------------------------------------------------------------
# Bottleneck forward — mirrors the PyTorch module (BatchNorm in train mode)
# ----------------------------------------------------------------------------
def bottleneck_forward(x_nchw, params, stride):
    expansion = 4
    x_nhwc = jnp.transpose(x_nchw, (0, 2, 3, 1)).astype(jnp.float32)
    N, H, W, Cin = x_nhwc.shape
    planes = params["w1"].shape[-1]
    x_bf = x_nhwc.astype(jnp.bfloat16)

    w1 = params["w1"].reshape(Cin, planes).astype(jnp.bfloat16)
    w2 = params["w2"].reshape(9 * planes, planes).astype(jnp.bfloat16)
    w3 = params["w3"].reshape(planes, expansion * planes).astype(jnp.bfloat16)

    # conv1 (1x1) + bn1 + relu
    M1 = N * H * W
    y1, st1 = matmul_stats(x_bf.reshape(M1, Cin), w1)
    sc1, sh1 = bn_scale_shift(st1, M1, params["g1"], params["b1"])
    a1 = bn_apply(y1, sc1, sh1, relu=True, out_dtype=jnp.bfloat16)

    # conv2 (3x3, stride, pad=1) + bn2 + relu
    patches, (Ho, Wo) = im2col_3x3(a1.reshape(N, H, W, planes), stride)
    M2 = N * Ho * Wo
    y2, st2 = matmul_stats(patches, w2)
    sc2, sh2 = bn_scale_shift(st2, M2, params["g2"], params["b2"])
    a2 = bn_apply(y2, sc2, sh2, relu=True, out_dtype=jnp.bfloat16)

    # conv3 (1x1) — bn3 is fused with the residual tail below
    y3, st3 = matmul_stats(a2, w3)
    sc3, sh3 = bn_scale_shift(st3, M2, params["g3"], params["b3"])

    # shortcut
    if stride != 1 or Cin != expansion * planes:
        ws = params["ws"].reshape(Cin, expansion * planes).astype(jnp.bfloat16)
        xs = x_bf[:, ::stride, ::stride, :].reshape(M2, Cin)
        s, sts = matmul_stats(xs, ws)
        scs, shs = bn_scale_shift(sts, M2, params["gs"], params["bs"])
    else:
        s = x_nhwc.reshape(M2, Cin)
        scs = jnp.ones((1, expansion * planes), jnp.float32)
        shs = jnp.zeros((1, expansion * planes), jnp.float32)

    out = bn2_add_relu(y3, s, sc3, sh3, scs, shs)
    out = out.reshape(N, Ho, Wo, expansion * planes)
    return jnp.transpose(out, (0, 3, 1, 2))               # back to NCHW


# ----------------------------------------------------------------------------
# Pure-JAX references (correctness check only)
# ----------------------------------------------------------------------------
def ref_forward(x_nchw, params, stride, conv_dtype=jnp.float32):
    x = jnp.transpose(x_nchw, (0, 2, 3, 1)).astype(jnp.float32)

    def conv(v, w, s, pad):
        return jax.lax.conv_general_dilated(
            v.astype(conv_dtype), w.astype(conv_dtype), (s, s), pad,
            dimension_numbers=("NHWC", "HWIO", "NHWC"),
            preferred_element_type=jnp.float32)

    def bn(y, g, b):
        mean = y.mean(axis=(0, 1, 2), keepdims=True)
        var = ((y - mean) ** 2).mean(axis=(0, 1, 2), keepdims=True)
        return (y - mean) * jax.lax.rsqrt(var + EPS) * g + b

    out = jax.nn.relu(bn(conv(x, params["w1"], 1, "VALID"),
                         params["g1"], params["b1"]))
    out = jax.nn.relu(bn(conv(out, params["w2"], stride, [(1, 1), (1, 1)]),
                         params["g2"], params["b2"]))
    out = bn(conv(out, params["w3"], 1, "VALID"), params["g3"], params["b3"])
    if stride != 1 or x.shape[-1] != params["w3"].shape[-1]:
        sc = bn(conv(x, params["ws"], stride, "VALID"),
                params["gs"], params["bs"])
    else:
        sc = x
    return jnp.transpose(jax.nn.relu(out + sc), (0, 3, 1, 2))


# ----------------------------------------------------------------------------
def make_params(key, in_planes, planes):
    """Deterministic synthetic parameters; conv weights stored HWIO f32."""
    expansion = 4
    ks = jax.random.split(key, 12)

    def w(k, shape, scale=0.1):
        return scale * jax.random.normal(k, shape, jnp.float32)

    def g(k, n):
        return 1.0 + 0.1 * jax.random.normal(k, (n,), jnp.float32)

    def b(k, n):
        return 0.1 * jax.random.normal(k, (n,), jnp.float32)

    return {
        "w1": w(ks[0], (1, 1, in_planes, planes)),
        "g1": g(ks[1], planes), "b1": b(ks[2], planes),
        "w2": w(ks[3], (3, 3, planes, planes)),
        "g2": g(ks[4], planes), "b2": b(ks[5], planes),
        "w3": w(ks[6], (1, 1, planes, expansion * planes)),
        "g3": g(ks[7], expansion * planes), "b3": b(ks[8], expansion * planes),
        "ws": w(ks[9], (1, 1, in_planes, expansion * planes)),
        "gs": g(ks[10], expansion * planes), "bs": b(ks[11], expansion * planes),
    }


if __name__ == "__main__":
    key = jax.random.PRNGKey(0)
    k_x, k_p = jax.random.split(key)

    in_planes, planes, stride = 8, 4, 2          # projection shortcut active
    N, H, W = 2, 16, 16
    x = jax.random.normal(k_x, (N, in_planes, H, W), jnp.float32)  # NCHW
    params = make_params(k_p, in_planes, planes)

    fwd = jax.jit(functools.partial(bottleneck_forward, stride=stride))
    out = jax.block_until_ready(fwd(x, params))

    # matched-precision reference (bf16 conv operands, f32 accumulation/BN)
    ref_mx = jax.block_until_ready(ref_forward(x, params, stride, jnp.bfloat16))
    # full-f32 reference (true module semantics)
    ref_fp = jax.block_until_ready(ref_forward(x, params, stride, jnp.float32))

    assert out.shape == (N, 4 * planes, H // stride, W // stride), out.shape
    err_mx = float(jnp.max(jnp.abs(out - ref_mx)))
    err_fp = float(jnp.max(jnp.abs(out - ref_fp)))
    assert err_mx < 5e-3, err_mx          # kernel logic vs matched math path
    assert err_fp < 1e-1, err_fp          # sanity vs pure-f32 module semantics

    print("KERNEL_OK")
</pallas_src>

<mosaic_0001>
module attributes {stable_mosaic.version = 11 : i64} {
  func.func @_mm_stats_kernel(%arg0: i32, %arg1: i32, %arg2: i32, %arg3: memref<512x8xbf16, #tpu.memory_space<vmem>>, %arg4: memref<8x4xbf16, #tpu.memory_space<vmem>>, %arg5: memref<512x4xf32, #tpu.memory_space<vmem>>, %arg6: memref<8x4xf32, #tpu.memory_space<vmem>>, %arg7: memref<512x4xf32, #tpu.memory_space<vmem>>) attributes {dimension_semantics = [#tpu.dimension_semantics<parallel>, #tpu.dimension_semantics<parallel>, #tpu.dimension_semantics<arbitrary>], iteration_bounds = array<i64: 1, 1, 1>, scalar_prefetch = 0 : i64, scratch_operands = 1 : i64, tpu.core_type = #tpu.core_type<tc>, window_params = [{transform_indices = @transform_0, window_bounds = array<i64: 512, 8>}, {transform_indices = @transform_1, window_bounds = array<i64: 8, 4>}, {transform_indices = @transform_2, window_bounds = array<i64: 512, 4>}, {transform_indices = @transform_3, window_bounds = array<i64: 8, 4>}]} {
    %c0_i32 = arith.constant 0 : i32
    %0 = arith.cmpi eq, %arg2, %c0_i32 : i32
    %1 = arith.extui %0 : i1 to i32
    %c0_i32_0 = arith.constant 0 : i32
    %2 = arith.cmpi ne, %1, %c0_i32_0 : i32
    scf.if %2 {
      %cst_10 = arith.constant 0.000000e+00 : f32
      %12 = vector.broadcast %cst_10 : f32 to vector<512x4xf32>
      %c0_11 = arith.constant 0 : index
      %c0_12 = arith.constant 0 : index
      %13 = vector.load %arg7[%c0_11, %c0_12] : memref<512x4xf32, #tpu.memory_space<vmem>>, vector<512x4xf32>
      tpu.vector_store %arg7[%c0_11, %c0_12], %12 {strides = array<i32>} : memref<512x4xf32, #tpu.memory_space<vmem>>, vector<512x4xf32>,
    } else {
    }
    %c0 = arith.constant 0 : index
    %c0_1 = arith.constant 0 : index
    %3 = vector.load %arg7[%c0, %c0_1] : memref<512x4xf32, #tpu.memory_space<vmem>>, vector<512x4xf32>
    %c0_2 = arith.constant 0 : index
    %c0_3 = arith.constant 0 : index
    %4 = vector.load %arg3[%c0_2, %c0_3] : memref<512x8xbf16, #tpu.memory_space<vmem>>, vector<512x8xbf16>
    %c0_4 = arith.constant 0 : index
    %c0_5 = arith.constant 0 : index
    %5 = vector.load %arg4[%c0_4, %c0_5] : memref<8x4xbf16, #tpu.memory_space<vmem>>, vector<8x4xbf16>
    %cst = arith.constant dense<0.000000e+00> : vector<512x4xf32>
    %6 = tpu.matmul %4, %5, %cst {dimension_numbers = #tpu.dot_dimension_numbers<[1], [0], [0], [1], [0, 0, 1, 1], [], []>} : vector<512x8xbf16>, vector<8x4xbf16>, vector<512x4xf32> -> vector<512x4xf32>
    %7 = arith.addf %3, %6 : vector<512x4xf32>
    %c0_6 = arith.constant 0 : index
    %c0_7 = arith.constant 0 : index
    %8 = vector.load %arg7[%c0_6, %c0_7] : memref<512x4xf32, #tpu.memory_space<vmem>>, vector<512x4xf32>
    tpu.vector_store %arg7[%c0_6, %c0_7], %7 {strides = array<i32>} : memref<512x4xf32, #tpu.memory_space<vmem>>, vector<512x4xf32>,
    %c0_i32_8 = arith.constant 0 : i32
    %9 = arith.cmpi eq, %arg2, %c0_i32_8 : i32
    %10 = arith.extui %9 : i1 to i32
    %c0_i32_9 = arith.constant 0 : i32
    %11 = arith.cmpi ne, %10, %c0_i32_9 : i32
    scf.if %11 {
      %c0_10 = arith.constant 0 : index
      %c0_11 = arith.constant 0 : index
      %12 = vector.load %arg7[%c0_10, %c0_11] : memref<512x4xf32, #tpu.memory_space<vmem>>, vector<512x4xf32>
      %c0_12 = arith.constant 0 : index
      %c0_13 = arith.constant 0 : index
      %13 = vector.load %arg5[%c0_12, %c0_13] : memref<512x4xf32, #tpu.memory_space<vmem>>, vector<512x4xf32>
      tpu.vector_store %arg5[%c0_12, %c0_13], %12 {strides = array<i32>} : memref<512x4xf32, #tpu.memory_space<vmem>>, vector<512x4xf32>,
      %cst_14 = arith.constant dense<0.000000e+00> : vector<4xf32>
      %14 = vector.multi_reduction <add>, %12, %cst_14 [0] : vector<512x4xf32> to vector<4xf32>
      %15 = vector.shape_cast %14 : vector<4xf32> to vector<1x4xf32>
      %16 = arith.mulf %12, %12 : vector<512x4xf32>
      %cst_15 = arith.constant dense<0.000000e+00> : vector<4xf32>
      %17 = vector.multi_reduction <add>, %16, %cst_15 [0] : vector<512x4xf32> to vector<4xf32>
      %18 = vector.shape_cast %17 : vector<4xf32> to vector<1x4xf32>
      %19 = tpu.iota {dimensions = array<i32: 0>} : vector<8x4xi32>
      %c0_i32_16 = arith.constant 0 : i32
      %20 = vector.broadcast %c0_i32_16 : i32 to vector<8x4xi32>
      %21 = arith.cmpi eq, %19, %20 : vector<8x4xi32>
      %c1_i32 = arith.constant 1 : i32
      %22 = vector.broadcast %c1_i32 : i32 to vector<8x4xi32>
      %23 = arith.cmpi eq, %19, %22 : vector<8x4xi32>
      %cst_17 = arith.constant 0.000000e+00 : f32
      %24 = vector.shape_cast %18 : vector<1x4xf32> to vector<1x4xf32>
      %25 = vector.broadcast %24 : vector<1x4xf32> to vector<8x4xf32>
      %26 = vector.broadcast %cst_17 : f32 to vector<8x4xf32>
      %27 = arith.select %23, %25, %26 : vector<8x4xi1>, vector<8x4xf32>
      %28 = vector.shape_cast %15 : vector<1x4xf32> to vector<1x4xf32>
      %29 = vector.broadcast %28 : vector<1x4xf32> to vector<8x4xf32>
      %30 = arith.select %21, %29, %27 : vector<8x4xi1>, vector<8x4xf32>
      %c0_18 = arith.constant 0 : index
      %c0_19 = arith.constant 0 : index
      %31 = vector.load %arg6[%c0_18, %c0_19] : memref<8x4xf32, #tpu.memory_space<vmem>>, vector<8x4xf32>
      tpu.vector_store %arg6[%c0_18, %c0_19], %30 {strides = array<i32>} : memref<8x4xf32, #tpu.memory_space<vmem>>, vector<8x4xf32>,
    } else {
    }
    return
  }
  func.func @transform_0(%arg0: i32, %arg1: i32, %arg2: i32) -> (i32, i32) {
    %c0_i32 = arith.constant 0 : i32
    return %arg0, %arg2 : i32, i32
  }
  func.func @transform_1(%arg0: i32, %arg1: i32, %arg2: i32) -> (i32, i32) {
    %c0_i32 = arith.constant 0 : i32
    return %arg2, %arg1 : i32, i32
  }
  func.func @transform_2(%arg0: i32, %arg1: i32, %arg2: i32) -> (i32, i32) {
    %c0_i32 = arith.constant 0 : i32
    return %arg0, %arg1 : i32, i32
  }
  func.func @transform_3(%arg0: i32, %arg1: i32, %arg2: i32) -> (i32, i32) {
    %c0_i32 = arith.constant 0 : i32
    return %arg0, %arg1 : i32, i32
  }
}

module attributes {stable_mosaic.version = 11 : i64} {
  func.func @_bn_act_kernel(%arg0: i32, %arg1: i32, %arg2: memref<512x4xf32, #tpu.memory_space<vmem>>, %arg3: memref<1x4xf32, #tpu.memory_space<vmem>>, %arg4: memref<1x4xf32, #tpu.memory_space<vmem>>, %arg5: memref<512x4xbf16, #tpu.memory_space<vmem>>) attributes {dimension_semantics = [#tpu.dimension_semantics<parallel>, #tpu.dimension_semantics<parallel>], iteration_bounds = array<i64: 1, 1>, scalar_prefetch = 0 : i64, scratch_operands = 0 : i64, tpu.core_type = #tpu.core_type<tc>, window_params = [{transform_indices = @transform_0, window_bounds = array<i64: 512, 4>}, {transform_indices = @transform_1, window_bounds = array<i64: 1, 4>}, {transform_indices = @transform_2, window_bounds = array<i64: 1, 4>}, {transform_indices = @transform_3, window_bounds = array<i64: 512, 4>}]} {
    %c0 = arith.constant 0 : index
    %c0_0 = arith.constant 0 : index
    %0 = vector.load %arg2[%c0, %c0_0] : memref<512x4xf32, #tpu.memory_space<vmem>>, vector<512x4xf32>
    %c0_1 = arith.constant 0 : index
    %c0_2 = arith.constant 0 : index
    %1 = vector.load %arg3[%c0_1, %c0_2] : memref<1x4xf32, #tpu.memory_space<vmem>>, vector<1x4xf32>
    %2 = vector.broadcast %1 : vector<1x4xf32> to vector<512x4xf32>
    %3 = arith.mulf %0, %2 : vector<512x4xf32>
    %c0_3 = arith.constant 0 : index
    %c0_4 = arith.constant 0 : index
    %4 = vector.load %arg4[%c0_3, %c0_4] : memref<1x4xf32, #tpu.memory_space<vmem>>, vector<1x4xf32>
    %5 = vector.broadcast %4 : vector<1x4xf32> to vector<512x4xf32>
    %6 = arith.addf %3, %5 : vector<512x4xf32>
    %cst = arith.constant 0.000000e+00 : f32
    %7 = vector.broadcast %cst : f32 to vector<512x4xf32>
    %8 = arith.maximumf %6, %7 : vector<512x4xf32>
    %9 = arith.truncf %8 : vector<512x4xf32> to vector<512x4xbf16>
    %c0_5 = arith.constant 0 : index
    %c0_6 = arith.constant 0 : index
    %10 = vector.load %arg5[%c0_5, %c0_6] : memref<512x4xbf16, #tpu.memory_space<vmem>>, vector<512x4xbf16>
    tpu.vector_store %arg5[%c0_5, %c0_6], %9 {strides = array<i32>} : memref<512x4xbf16, #tpu.memory_space<vmem>>, vector<512x4xbf16>,
    return
  }
  func.func @transform_0(%arg0: i32, %arg1: i32) -> (i32, i32) {
    %c0_i32 = arith.constant 0 : i32
    return %arg0, %arg1 : i32, i32
  }
  func.func @transform_1(%arg0: i32, %arg1: i32) -> (i32, i32) {
    %c0_i32 = arith.constant 0 : i32
    %c0_i32_0 = arith.constant 0 : i32
    return %c0_i32, %arg1 : i32, i32
  }
  func.func @transform_2(%arg0: i32, %arg1: i32) -> (i32, i32) {
    %c0_i32 = arith.constant 0 : i32
    %c0_i32_0 = arith.constant 0 : i32
    return %c0_i32, %arg1 : i32, i32
  }
  func.func @transform_3(%arg0: i32, %arg1: i32) -> (i32, i32) {
    %c0_i32 = arith.constant 0 : i32
    return %arg0, %arg1 : i32, i32
  }
}

module attributes {stable_mosaic.version = 11 : i64} {
  func.func @_mm_stats_kernel(%arg0: i32, %arg1: i32, %arg2: i32, %arg3: memref<128x36xbf16, #tpu.memory_space<vmem>>, %arg4: memref<36x4xbf16, #tpu.memory_space<vmem>>, %arg5: memref<128x4xf32, #tpu.memory_space<vmem>>, %arg6: memref<8x4xf32, #tpu.memory_space<vmem>>, %arg7: memref<128x4xf32, #tpu.memory_space<vmem>>) attributes {dimension_semantics = [#tpu.dimension_semantics<parallel>, #tpu.dimension_semantics<parallel>, #tpu.dimension_semantics<arbitrary>], iteration_bounds = array<i64: 1, 1, 1>, scalar_prefetch = 0 : i64, scratch_operands = 1 : i64, tpu.core_type = #tpu.core_type<tc>, window_params = [{transform_indices = @transform_0, window_bounds = array<i64: 128, 36>}, {transform_indices = @transform_1, window_bounds = array<i64: 36, 4>}, {transform_indices = @transform_2, window_bounds = array<i64: 128, 4>}, {transform_indices = @transform_3, window_bounds = array<i64: 8, 4>}]} {
    %c0_i32 = arith.constant 0 : i32
    %0 = arith.cmpi eq, %arg2, %c0_i32 : i32
    %1 = arith.extui %0 : i1 to i32
    %c0_i32_0 = arith.constant 0 : i32
    %2 = arith.cmpi ne, %1, %c0_i32_0 : i32
    scf.if %2 {
      %cst_10 = arith.constant 0.000000e+00 : f32
      %12 = vector.broadcast %cst_10 : f32 to vector<128x4xf32>
      %c0_11 = arith.constant 0 : index
      %c0_12 = arith.constant 0 : index
      %13 = vector.load %arg7[%c0_11, %c0_12] : memref<128x4xf32, #tpu.memory_space<vmem>>, vector<128x4xf32>
      tpu.vector_store %arg7[%c0_11, %c0_12], %12 {strides = array<i32>} : memref<128x4xf32, #tpu.memory_space<vmem>>, vector<128x4xf32>,
    } else {
    }
    %c0 = arith.constant 0 : index
    %c0_1 = arith.constant 0 : index
    %3 = vector.load %arg7[%c0, %c0_1] : memref<128x4xf32, #tpu.memory_space<vmem>>, vector<128x4xf32>
    %c0_2 = arith.constant 0 : index
    %c0_3 = arith.constant 0 : index
    %4 = vector.load %arg3[%c0_2, %c0_3] : memref<128x36xbf16, #tpu.memory_space<vmem>>, vector<128x36xbf16>
    %c0_4 = arith.constant 0 : index
    %c0_5 = arith.constant 0 : index
    %5 = vector.load %arg4[%c0_4, %c0_5] : memref<36x4xbf16, #tpu.memory_space<vmem>>, vector<36x4xbf16>
    %cst = arith.constant dense<0.000000e+00> : vector<128x4xf32>
    %6 = tpu.matmul %4, %5, %cst {dimension_numbers = #tpu.dot_dimension_numbers<[1], [0], [0], [1], [0, 0, 1, 1], [], []>} : vector<128x36xbf16>, vector<36x4xbf16>, vector<128x4xf32> -> vector<128x4xf32>
    %7 = arith.addf %3, %6 : vector<128x4xf32>
    %c0_6 = arith.constant 0 : index
    %c0_7 = arith.constant 0 : index
    %8 = vector.load %arg7[%c0_6, %c0_7] : memref<128x4xf32, #tpu.memory_space<vmem>>, vector<128x4xf32>
    tpu.vector_store %arg7[%c0_6, %c0_7], %7 {strides = array<i32>} : memref<128x4xf32, #tpu.memory_space<vmem>>, vector<128x4xf32>,
    %c0_i32_8 = arith.constant 0 : i32
    %9 = arith.cmpi eq, %arg2, %c0_i32_8 : i32
    %10 = arith.extui %9 : i1 to i32
    %c0_i32_9 = arith.constant 0 : i32
    %11 = arith.cmpi ne, %10, %c0_i32_9 : i32
    scf.if %11 {
      %c0_10 = arith.constant 0 : index
      %c0_11 = arith.constant 0 : index
      %12 = vector.load %arg7[%c0_10, %c0_11] : memref<128x4xf32, #tpu.memory_space<vmem>>, vector<128x4xf32>
      %c0_12 = arith.constant 0 : index
      %c0_13 = arith.constant 0 : index
      %13 = vector.load %arg5[%c0_12, %c0_13] : memref<128x4xf32, #tpu.memory_space<vmem>>, vector<128x4xf32>
      tpu.vector_store %arg5[%c0_12, %c0_13], %12 {strides = array<i32>} : memref<128x4xf32, #tpu.memory_space<vmem>>, vector<128x4xf32>,
      %cst_14 = arith.constant dense<0.000000e+00> : vector<4xf32>
      %14 = vector.multi_reduction <add>, %12, %cst_14 [0] : vector<128x4xf32> to vector<4xf32>
      %15 = vector.shape_cast %14 : vector<4xf32> to vector<1x4xf32>
      %16 = arith.mulf %12, %12 : vector<128x4xf32>
      %cst_15 = arith.constant dense<0.000000e+00> : vector<4xf32>
      %17 = vector.multi_reduction <add>, %16, %cst_15 [0] : vector<128x4xf32> to vector<4xf32>
      %18 = vector.shape_cast %17 : vector<4xf32> to vector<1x4xf32>
      %19 = tpu.iota {dimensions = array<i32: 0>} : vector<8x4xi32>
      %c0_i32_16 = arith.constant 0 : i32
      %20 = vector.broadcast %c0_i32_16 : i32 to vector<8x4xi32>
      %21 = arith.cmpi eq, %19, %20 : vector<8x4xi32>
      %c1_i32 = arith.constant 1 : i32
      %22 = vector.broadcast %c1_i32 : i32 to vector<8x4xi32>
      %23 = arith.cmpi eq, %19, %22 : vector<8x4xi32>
      %cst_17 = arith.constant 0.000000e+00 : f32
      %24 = vector.shape_cast %18 : vector<1x4xf32> to vector<1x4xf32>
      %25 = vector.broadcast %24 : vector<1x4xf32> to vector<8x4xf32>
      %26 = vector.broadcast %cst_17 : f32 to vector<8x4xf32>
      %27 = arith.select %23, %25, %26 : vector<8x4xi1>, vector<8x4xf32>
      %28 = vector.shape_cast %15 : vector<1x4xf32> to vector<1x4xf32>
      %29 = vector.broadcast %28 : vector<1x4xf32> to vector<8x4xf32>
      %30 = arith.select %21, %29, %27 : vector<8x4xi1>, vector<8x4xf32>
      %c0_18 = arith.constant 0 : index
      %c0_19 = arith.constant 0 : index
      %31 = vector.load %arg6[%c0_18, %c0_19] : memref<8x4xf32, #tpu.memory_space<vmem>>, vector<8x4xf32>
      tpu.vector_store %arg6[%c0_18, %c0_19], %30 {strides = array<i32>} : memref<8x4xf32, #tpu.memory_space<vmem>>, vector<8x4xf32>,
    } else {
    }
    return
  }
  func.func @transform_0(%arg0: i32, %arg1: i32, %arg2: i32) -> (i32, i32) {
    %c0_i32 = arith.constant 0 : i32
    return %arg0, %arg2 : i32, i32
  }
  func.func @transform_1(%arg0: i32, %arg1: i32, %arg2: i32) -> (i32, i32) {
    %c0_i32 = arith.constant 0 : i32
    return %arg2, %arg1 : i32, i32
  }
  func.func @transform_2(%arg0: i32, %arg1: i32, %arg2: i32) -> (i32, i32) {
    %c0_i32 = arith.constant 0 : i32
    return %arg0, %arg1 : i32, i32
  }
  func.func @transform_3(%arg0: i32, %arg1: i32, %arg2: i32) -> (i32, i32) {
    %c0_i32 = arith.constant 0 : i32
    return %arg0, %arg1 : i32, i32
  }
}

module attributes {stable_mosaic.version = 11 : i64} {
  func.func @_bn_act_kernel(%arg0: i32, %arg1: i32, %arg2: memref<128x4xf32, #tpu.memory_space<vmem>>, %arg3: memref<1x4xf32, #tpu.memory_space<vmem>>, %arg4: memref<1x4xf32, #tpu.memory_space<vmem>>, %arg5: memref<128x4xbf16, #tpu.memory_space<vmem>>) attributes {dimension_semantics = [#tpu.dimension_semantics<parallel>, #tpu.dimension_semantics<parallel>], iteration_bounds = array<i64: 1, 1>, scalar_prefetch = 0 : i64, scratch_operands = 0 : i64, tpu.core_type = #tpu.core_type<tc>, window_params = [{transform_indices = @transform_0, window_bounds = array<i64: 128, 4>}, {transform_indices = @transform_1, window_bounds = array<i64: 1, 4>}, {transform_indices = @transform_2, window_bounds = array<i64: 1, 4>}, {transform_indices = @transform_3, window_bounds = array<i64: 128, 4>}]} {
    %c0 = arith.constant 0 : index
    %c0_0 = arith.constant 0 : index
    %0 = vector.load %arg2[%c0, %c0_0] : memref<128x4xf32, #tpu.memory_space<vmem>>, vector<128x4xf32>
    %c0_1 = arith.constant 0 : index
    %c0_2 = arith.constant 0 : index
    %1 = vector.load %arg3[%c0_1, %c0_2] : memref<1x4xf32, #tpu.memory_space<vmem>>, vector<1x4xf32>
    %2 = vector.broadcast %1 : vector<1x4xf32> to vector<128x4xf32>
    %3 = arith.mulf %0, %2 : vector<128x4xf32>
    %c0_3 = arith.constant 0 : index
    %c0_4 = arith.constant 0 : index
    %4 = vector.load %arg4[%c0_3, %c0_4] : memref<1x4xf32, #tpu.memory_space<vmem>>, vector<1x4xf32>
    %5 = vector.broadcast %4 : vector<1x4xf32> to vector<128x4xf32>
    %6 = arith.addf %3, %5 : vector<128x4xf32>
    %cst = arith.constant 0.000000e+00 : f32
    %7 = vector.broadcast %cst : f32 to vector<128x4xf32>
    %8 = arith.maximumf %6, %7 : vector<128x4xf32>
    %9 = arith.truncf %8 : vector<128x4xf32> to vector<128x4xbf16>
    %c0_5 = arith.constant 0 : index
    %c0_6 = arith.constant 0 : index
    %10 = vector.load %arg5[%c0_5, %c0_6] : memref<128x4xbf16, #tpu.memory_space<vmem>>, vector<128x4xbf16>
    tpu.vector_store %arg5[%c0_5, %c0_6], %9 {strides = array<i32>} : memref<128x4xbf16, #tpu.memory_space<vmem>>, vector<128x4xbf16>,
    return
  }
  func.func @transform_0(%arg0: i32, %arg1: i32) -> (i32, i32) {
    %c0_i32 = arith.constant 0 : i32
    return %arg0, %arg1 : i32, i32
  }
  func.func @transform_1(%arg0: i32, %arg1: i32) -> (i32, i32) {
    %c0_i32 = arith.constant 0 : i32
    %c0_i32_0 = arith.constant 0 : i32
    return %c0_i32, %arg1 : i32, i32
  }
  func.func @transform_2(%arg0: i32, %arg1: i32) -> (i32, i32) {
    %c0_i32 = arith.constant 0 : i32
    %c0_i32_0 = arith.constant 0 : i32
    return %c0_i32, %arg1 : i32, i32
  }
  func.func @transform_3(%arg0: i32, %arg1: i32) -> (i32, i32) {
    %c0_i32 = arith.constant 0 : i32
    return %arg0, %arg1 : i32, i32
  }
}

module attributes {stable_mosaic.version = 11 : i64} {
  func.func @_mm_stats_kernel(%arg0: i32, %arg1: i32, %arg2: i32, %arg3: memref<128x4xbf16, #tpu.memory_space<vmem>>, %arg4: memref<4x16xbf16, #tpu.memory_space<vmem>>, %arg5: memref<128x16xf32, #tpu.memory_space<vmem>>, %arg6: memref<8x16xf32, #tpu.memory_space<vmem>>, %arg7: memref<128x16xf32, #tpu.memory_space<vmem>>) attributes {dimension_semantics = [#tpu.dimension_semantics<parallel>, #tpu.dimension_semantics<parallel>, #tpu.dimension_semantics<arbitrary>], iteration_bounds = array<i64: 1, 1, 1>, scalar_prefetch = 0 : i64, scratch_operands = 1 : i64, tpu.core_type = #tpu.core_type<tc>, window_params = [{transform_indices = @transform_0, window_bounds = array<i64: 128, 4>}, {transform_indices = @transform_1, window_bounds = array<i64: 4, 16>}, {transform_indices = @transform_2, window_bounds = array<i64: 128, 16>}, {transform_indices = @transform_3, window_bounds = array<i64: 8, 16>}]} {
    %c0_i32 = arith.constant 0 : i32
    %0 = arith.cmpi eq, %arg2, %c0_i32 : i32
    %1 = arith.extui %0 : i1 to i32
    %c0_i32_0 = arith.constant 0 : i32
    %2 = arith.cmpi ne, %1, %c0_i32_0 : i32
    scf.if %2 {
      %cst_10 = arith.constant 0.000000e+00 : f32
      %12 = vector.broadcast %cst_10 : f32 to vector<128x16xf32>
      %c0_11 = arith.constant 0 : index
      %c0_12 = arith.constant 0 : index
      %13 = vector.load %arg7[%c0_11, %c0_12] : memref<128x16xf32, #tpu.memory_space<vmem>>, vector<128x16xf32>
      tpu.vector_store %arg7[%c0_11, %c0_12], %12 {strides = array<i32>} : memref<128x16xf32, #tpu.memory_space<vmem>>, vector<128x16xf32>,
    } else {
    }
    %c0 = arith.constant 0 : index
    %c0_1 = arith.constant 0 : index
    %3 = vector.load %arg7[%c0, %c0_1] : memref<128x16xf32, #tpu.memory_space<vmem>>, vector<128x16xf32>
    %c0_2 = arith.constant 0 : index
    %c0_3 = arith.constant 0 : index
    %4 = vector.load %arg3[%c0_2, %c0_3] : memref<128x4xbf16, #tpu.memory_space<vmem>>, vector<128x4xbf16>
    %c0_4 = arith.constant 0 : index
    %c0_5 = arith.constant 0 : index
    %5 = vector.load %arg4[%c0_4, %c0_5] : memref<4x16xbf16, #tpu.memory_space<vmem>>, vector<4x16xbf16>
    %cst = arith.constant dense<0.000000e+00> : vector<128x16xf32>
    %6 = tpu.matmul %4, %5, %cst {dimension_numbers = #tpu.dot_dimension_numbers<[1], [0], [0], [1], [0, 0, 1, 1], [], []>} : vector<128x4xbf16>, vector<4x16xbf16>, vector<128x16xf32> -> vector<128x16xf32>
    %7 = arith.addf %3, %6 : vector<128x16xf32>
    %c0_6 = arith.constant 0 : index
    %c0_7 = arith.constant 0 : index
    %8 = vector.load %arg7[%c0_6, %c0_7] : memref<128x16xf32, #tpu.memory_space<vmem>>, vector<128x16xf32>
    tpu.vector_store %arg7[%c0_6, %c0_7], %7 {strides = array<i32>} : memref<128x16xf32, #tpu.memory_space<vmem>>, vector<128x16xf32>,
    %c0_i32_8 = arith.constant 0 : i32
    %9 = arith.cmpi eq, %arg2, %c0_i32_8 : i32
    %10 = arith.extui %9 : i1 to i32
    %c0_i32_9 = arith.constant 0 : i32
    %11 = arith.cmpi ne, %10, %c0_i32_9 : i32
    scf.if %11 {
      %c0_10 = arith.constant 0 : index
      %c0_11 = arith.constant 0 : index
      %12 = vector.load %arg7[%c0_10, %c0_11] : memref<128x16xf32, #tpu.memory_space<vmem>>, vector<128x16xf32>
      %c0_12 = arith.constant 0 : index
      %c0_13 = arith.constant 0 : index
      %13 = vector.load %arg5[%c0_12, %c0_13] : memref<128x16xf32, #tpu.memory_space<vmem>>, vector<128x16xf32>
      tpu.vector_store %arg5[%c0_12, %c0_13], %12 {strides = array<i32>} : memref<128x16xf32, #tpu.memory_space<vmem>>, vector<128x16xf32>,
      %cst_14 = arith.constant dense<0.000000e+00> : vector<16xf32>
      %14 = vector.multi_reduction <add>, %12, %cst_14 [0] : vector<128x16xf32> to vector<16xf32>
      %15 = vector.shape_cast %14 : vector<16xf32> to vector<1x16xf32>
      %16 = arith.mulf %12, %12 : vector<128x16xf32>
      %cst_15 = arith.constant dense<0.000000e+00> : vector<16xf32>
      %17 = vector.multi_reduction <add>, %16, %cst_15 [0] : vector<128x16xf32> to vector<16xf32>
      %18 = vector.shape_cast %17 : vector<16xf32> to vector<1x16xf32>
      %19 = tpu.iota {dimensions = array<i32: 0>} : vector<8x16xi32>
      %c0_i32_16 = arith.constant 0 : i32
      %20 = vector.broadcast %c0_i32_16 : i32 to vector<8x16xi32>
      %21 = arith.cmpi eq, %19, %20 : vector<8x16xi32>
      %c1_i32 = arith.constant 1 : i32
      %22 = vector.broadcast %c1_i32 : i32 to vector<8x16xi32>
      %23 = arith.cmpi eq, %19, %22 : vector<8x16xi32>
      %cst_17 = arith.constant 0.000000e+00 : f32
      %24 = vector.shape_cast %18 : vector<1x16xf32> to vector<1x16xf32>
      %25 = vector.broadcast %24 : vector<1x16xf32> to vector<8x16xf32>
      %26 = vector.broadcast %cst_17 : f32 to vector<8x16xf32>
      %27 = arith.select %23, %25, %26 : vector<8x16xi1>, vector<8x16xf32>
      %28 = vector.shape_cast %15 : vector<1x16xf32> to vector<1x16xf32>
      %29 = vector.broadcast %28 : vector<1x16xf32> to vector<8x16xf32>
      %30 = arith.select %21, %29, %27 : vector<8x16xi1>, vector<8x16xf32>
      %c0_18 = arith.constant 0 : index
      %c0_19 = arith.constant 0 : index
      %31 = vector.load %arg6[%c0_18, %c0_19] : memref<8x16xf32, #tpu.memory_space<vmem>>, vector<8x16xf32>
      tpu.vector_store %arg6[%c0_18, %c0_19], %30 {strides = array<i32>} : memref<8x16xf32, #tpu.memory_space<vmem>>, vector<8x16xf32>,
    } else {
    }
    return
  }
  func.func @transform_0(%arg0: i32, %arg1: i32, %arg2: i32) -> (i32, i32) {
    %c0_i32 = arith.constant 0 : i32
    return %arg0, %arg2 : i32, i32
  }
  func.func @transform_1(%arg0: i32, %arg1: i32, %arg2: i32) -> (i32, i32) {
    %c0_i32 = arith.constant 0 : i32
    return %arg2, %arg1 : i32, i32
  }
  func.func @transform_2(%arg0: i32, %arg1: i32, %arg2: i32) -> (i32, i32) {
    %c0_i32 = arith.constant 0 : i32
    return %arg0, %arg1 : i32, i32
  }
  func.func @transform_3(%arg0: i32, %arg1: i32, %arg2: i32) -> (i32, i32) {
    %c0_i32 = arith.constant 0 : i32
    return %arg0, %arg1 : i32, i32
  }
}

module attributes {stable_mosaic.version = 11 : i64} {
  func.func @_mm_stats_kernel(%arg0: i32, %arg1: i32, %arg2: i32, %arg3: memref<128x8xbf16, #tpu.memory_space<vmem>>, %arg4: memref<8x16xbf16, #tpu.memory_space<vmem>>, %arg5: memref<128x16xf32, #tpu.memory_space<vmem>>, %arg6: memref<8x16xf32, #tpu.memory_space<vmem>>, %arg7: memref<128x16xf32, #tpu.memory_space<vmem>>) attributes {dimension_semantics = [#tpu.dimension_semantics<parallel>, #tpu.dimension_semantics<parallel>, #tpu.dimension_semantics<arbitrary>], iteration_bounds = array<i64: 1, 1, 1>, scalar_prefetch = 0 : i64, scratch_operands = 1 : i64, tpu.core_type = #tpu.core_type<tc>, window_params = [{transform_indices = @transform_0, window_bounds = array<i64: 128, 8>}, {transform_indices = @transform_1, window_bounds = array<i64: 8, 16>}, {transform_indices = @transform_2, window_bounds = array<i64: 128, 16>}, {transform_indices = @transform_3, window_bounds = array<i64: 8, 16>}]} {
    %c0_i32 = arith.constant 0 : i32
    %0 = arith.cmpi eq, %arg2, %c0_i32 : i32
    %1 = arith.extui %0 : i1 to i32
    %c0_i32_0 = arith.constant 0 : i32
    %2 = arith.cmpi ne, %1, %c0_i32_0 : i32
    scf.if %2 {
      %cst_10 = arith.constant 0.000000e+00 : f32
      %12 = vector.broadcast %cst_10 : f32 to vector<128x16xf32>
      %c0_11 = arith.constant 0 : index
      %c0_12 = arith.constant 0 : index
      %13 = vector.load %arg7[%c0_11, %c0_12] : memref<128x16xf32, #tpu.memory_space<vmem>>, vector<128x16xf32>
      tpu.vector_store %arg7[%c0_11, %c0_12], %12 {strides = array<i32>} : memref<128x16xf32, #tpu.memory_space<vmem>>, vector<128x16xf32>,
    } else {
    }
    %c0 = arith.constant 0 : index
    %c0_1 = arith.constant 0 : index
    %3 = vector.load %arg7[%c0, %c0_1] : memref<128x16xf32, #tpu.memory_space<vmem>>, vector<128x16xf32>
    %c0_2 = arith.constant 0 : index
    %c0_3 = arith.constant 0 : index
    %4 = vector.load %arg3[%c0_2, %c0_3] : memref<128x8xbf16, #tpu.memory_space<vmem>>, vector<128x8xbf16>
    %c0_4 = arith.constant 0 : index
    %c0_5 = arith.constant 0 : index
    %5 = vector.load %arg4[%c0_4, %c0_5] : memref<8x16xbf16, #tpu.memory_space<vmem>>, vector<8x16xbf16>
    %cst = arith.constant dense<0.000000e+00> : vector<128x16xf32>
    %6 = tpu.matmul %4, %5, %cst {dimension_numbers = #tpu.dot_dimension_numbers<[1], [0], [0], [1], [0, 0, 1, 1], [], []>} : vector<128x8xbf16>, vector<8x16xbf16>, vector<128x16xf32> -> vector<128x16xf32>
    %7 = arith.addf %3, %6 : vector<128x16xf32>
    %c0_6 = arith.constant 0 : index
    %c0_7 = arith.constant 0 : index
    %8 = vector.load %arg7[%c0_6, %c0_7] : memref<128x16xf32, #tpu.memory_space<vmem>>, vector<128x16xf32>
    tpu.vector_store %arg7[%c0_6, %c0_7], %7 {strides = array<i32>} : memref<128x16xf32, #tpu.memory_space<vmem>>, vector<128x16xf32>,
    %c0_i32_8 = arith.constant 0 : i32
    %9 = arith.cmpi eq, %arg2, %c0_i32_8 : i32
    %10 = arith.extui %9 : i1 to i32
    %c0_i32_9 = arith.constant 0 : i32
    %11 = arith.cmpi ne, %10, %c0_i32_9 : i32
    scf.if %11 {
      %c0_10 = arith.constant 0 : index
      %c0_11 = arith.constant 0 : index
      %12 = vector.load %arg7[%c0_10, %c0_11] : memref<128x16xf32, #tpu.memory_space<vmem>>, vector<128x16xf32>
      %c0_12 = arith.constant 0 : index
      %c0_13 = arith.constant 0 : index
      %13 = vector.load %arg5[%c0_12, %c0_13] : memref<128x16xf32, #tpu.memory_space<vmem>>, vector<128x16xf32>
      tpu.vector_store %arg5[%c0_12, %c0_13], %12 {strides = array<i32>} : memref<128x16xf32, #tpu.memory_space<vmem>>, vector<128x16xf32>,
      %cst_14 = arith.constant dense<0.000000e+00> : vector<16xf32>
      %14 = vector.multi_reduction <add>, %12, %cst_14 [0] : vector<128x16xf32> to vector<16xf32>
      %15 = vector.shape_cast %14 : vector<16xf32> to vector<1x16xf32>
      %16 = arith.mulf %12, %12 : vector<128x16xf32>
      %cst_15 = arith.constant dense<0.000000e+00> : vector<16xf32>
      %17 = vector.multi_reduction <add>, %16, %cst_15 [0] : vector<128x16xf32> to vector<16xf32>
      %18 = vector.shape_cast %17 : vector<16xf32> to vector<1x16xf32>
      %19 = tpu.iota {dimensions = array<i32: 0>} : vector<8x16xi32>
      %c0_i32_16 = arith.constant 0 : i32
      %20 = vector.broadcast %c0_i32_16 : i32 to vector<8x16xi32>
      %21 = arith.cmpi eq, %19, %20 : vector<8x16xi32>
      %c1_i32 = arith.constant 1 : i32
      %22 = vector.broadcast %c1_i32 : i32 to vector<8x16xi32>
      %23 = arith.cmpi eq, %19, %22 : vector<8x16xi32>
      %cst_17 = arith.constant 0.000000e+00 : f32
      %24 = vector.shape_cast %18 : vector<1x16xf32> to vector<1x16xf32>
      %25 = vector.broadcast %24 : vector<1x16xf32> to vector<8x16xf32>
      %26 = vector.broadcast %cst_17 : f32 to vector<8x16xf32>
      %27 = arith.select %23, %25, %26 : vector<8x16xi1>, vector<8x16xf32>
      %28 = vector.shape_cast %15 : vector<1x16xf32> to vector<1x16xf32>
      %29 = vector.broadcast %28 : vector<1x16xf32> to vector<8x16xf32>
      %30 = arith.select %21, %29, %27 : vector<8x16xi1>, vector<8x16xf32>
      %c0_18 = arith.constant 0 : index
      %c0_19 = arith.constant 0 : index
      %31 = vector.load %arg6[%c0_18, %c0_19] : memref<8x16xf32, #tpu.memory_space<vmem>>, vector<8x16xf32>
      tpu.vector_store %arg6[%c0_18, %c0_19], %30 {strides = array<i32>} : memref<8x16xf32, #tpu.memory_space<vmem>>, vector<8x16xf32>,
    } else {
    }
    return
  }
  func.func @transform_0(%arg0: i32, %arg1: i32, %arg2: i32) -> (i32, i32) {
    %c0_i32 = arith.constant 0 : i32
    return %arg0, %arg2 : i32, i32
  }
  func.func @transform_1(%arg0: i32, %arg1: i32, %arg2: i32) -> (i32, i32) {
    %c0_i32 = arith.constant 0 : i32
    return %arg2, %arg1 : i32, i32
  }
  func.func @transform_2(%arg0: i32, %arg1: i32, %arg2: i32) -> (i32, i32) {
    %c0_i32 = arith.constant 0 : i32
    return %arg0, %arg1 : i32, i32
  }
  func.func @transform_3(%arg0: i32, %arg1: i32, %arg2: i32) -> (i32, i32) {
    %c0_i32 = arith.constant 0 : i32
    return %arg0, %arg1 : i32, i32
  }
}

module attributes {stable_mosaic.version = 11 : i64} {
  func.func @_bn2_add_relu_kernel(%arg0: i32, %arg1: i32, %arg2: memref<128x16xf32, #tpu.memory_space<vmem>>, %arg3: memref<128x16xf32, #tpu.memory_space<vmem>>, %arg4: memref<1x16xf32, #tpu.memory_space<vmem>>, %arg5: memref<1x16xf32, #tpu.memory_space<vmem>>, %arg6: memref<1x16xf32, #tpu.memory_space<vmem>>, %arg7: memref<1x16xf32, #tpu.memory_space<vmem>>, %arg8: memref<128x16xf32, #tpu.memory_space<vmem>>) attributes {dimension_semantics = [#tpu.dimension_semantics<parallel>, #tpu.dimension_semantics<parallel>], iteration_bounds = array<i64: 1, 1>, scalar_prefetch = 0 : i64, scratch_operands = 0 : i64, tpu.core_type = #tpu.core_type<tc>, window_params = [{transform_indices = @transform_0, window_bounds = array<i64: 128, 16>}, {transform_indices = @transform_1, window_bounds = array<i64: 128, 16>}, {transform_indices = @transform_2, window_bounds = array<i64: 1, 16>}, {transform_indices = @transform_3, window_bounds = array<i64: 1, 16>}, {transform_indices = @transform_4, window_bounds = array<i64: 1, 16>}, {transform_indices = @transform_5, window_bounds = array<i64: 1, 16>}, {transform_indices = @transform_6, window_bounds = array<i64: 128, 16>}]} {
    %c0 = arith.constant 0 : index
    %c0_0 = arith.constant 0 : index
    %0 = vector.load %arg2[%c0, %c0_0] : memref<128x16xf32, #tpu.memory_space<vmem>>, vector<128x16xf32>
    %c0_1 = arith.constant 0 : index
    %c0_2 = arith.constant 0 : index
    %1 = vector.load %arg4[%c0_1, %c0_2] : memref<1x16xf32, #tpu.memory_space<vmem>>, vector<1x16xf32>
    %2 = vector.broadcast %1 : vector<1x16xf32> to vector<128x16xf32>
    %3 = arith.mulf %0, %2 : vector<128x16xf32>
    %c0_3 = arith.constant 0 : index
    %c0_4 = arith.constant 0 : index
    %4 = vector.load %arg5[%c0_3, %c0_4] : memref<1x16xf32, #tpu.memory_space<vmem>>, vector<1x16xf32>
    %5 = vector.broadcast %4 : vector<1x16xf32> to vector<128x16xf32>
    %6 = arith.addf %3, %5 : vector<128x16xf32>
    %c0_5 = arith.constant 0 : index
    %c0_6 = arith.constant 0 : index
    %7 = vector.load %arg3[%c0_5, %c0_6] : memref<128x16xf32, #tpu.memory_space<vmem>>, vector<128x16xf32>
    %c0_7 = arith.constant 0 : index
    %c0_8 = arith.constant 0 : index
    %8 = vector.load %arg6[%c0_7, %c0_8] : memref<1x16xf32, #tpu.memory_space<vmem>>, vector<1x16xf32>
    %9 = vector.broadcast %8 : vector<1x16xf32> to vector<128x16xf32>
    %10 = arith.mulf %7, %9 : vector<128x16xf32>
    %11 = arith.addf %6, %10 : vector<128x16xf32>
    %c0_9 = arith.constant 0 : index
    %c0_10 = arith.constant 0 : index
    %12 = vector.load %arg7[%c0_9, %c0_10] : memref<1x16xf32, #tpu.memory_space<vmem>>, vector<1x16xf32>
    %13 = vector.broadcast %12 : vector<1x16xf32> to vector<128x16xf32>
    %14 = arith.addf %11, %13 : vector<128x16xf32>
    %cst = arith.constant 0.000000e+00 : f32
    %15 = vector.broadcast %cst : f32 to vector<128x16xf32>
    %16 = arith.maximumf %14, %15 : vector<128x16xf32>
    %c0_11 = arith.constant 0 : index
    %c0_12 = arith.constant 0 : index
    %17 = vector.load %arg8[%c0_11, %c0_12] : memref<128x16xf32, #tpu.memory_space<vmem>>, vector<128x16xf32>
    tpu.vector_store %arg8[%c0_11, %c0_12], %16 {strides = array<i32>} : memref<128x16xf32, #tpu.memory_space<vmem>>, vector<128x16xf32>,
    return
  }
  func.func @transform_0(%arg0: i32, %arg1: i32) -> (i32, i32) {
    %c0_i32 = arith.constant 0 : i32
    return %arg0, %arg1 : i32, i32
  }
  func.func @transform_1(%arg0: i32, %arg1: i32) -> (i32, i32) {
    %c0_i32 = arith.constant 0 : i32
    return %arg0, %arg1 : i32, i32
  }
  func.func @transform_2(%arg0: i32, %arg1: i32) -> (i32, i32) {
    %c0_i32 = arith.constant 0 : i32
    %c0_i32_0 = arith.constant 0 : i32
    return %c0_i32, %arg1 : i32, i32
  }
  func.func @transform_3(%arg0: i32, %arg1: i32) -> (i32, i32) {
    %c0_i32 = arith.constant 0 : i32
    %c0_i32_0 = arith.constant 0 : i32
    return %c0_i32, %arg1 : i32, i32
  }
  func.func @transform_4(%arg0: i32, %arg1: i32) -> (i32, i32) {
    %c0_i32 = arith.constant 0 : i32
    %c0_i32_0 = arith.constant 0 : i32
    return %c0_i32, %arg1 : i32, i32
  }
  func.func @transform_5(%arg0: i32, %arg1: i32) -> (i32, i32) {
    %c0_i32 = arith.constant 0 : i32
    %c0_i32_0 = arith.constant 0 : i32
    return %c0_i32, %arg1 : i32, i32
  }
  func.func @transform_6(%arg0: i32, %arg1: i32) -> (i32, i32) {
    %c0_i32 = arith.constant 0 : i32
    return %arg0, %arg1 : i32, i32
  }
}

</mosaic_0001>

<bundles_post_ra>
// kernel: bottleneck_forward.8
= control target key start
LH: loop header
LB: loop body
LE: loop exit
PB: predicated region body
PF: predicated region fallthrough
CT: control target
= control target key end

     0   :  { %vm342_vm0 = vcmask 27648   ;;  %s1019_s0 = inlined_call_operand.vmem [shape: f32[512,4], index: 0, kind: input, shape index: {}]   ;;  %s1020_s1 = inlined_call_operand.vmem [shape: f32[1,4], index: 1, kind: input, shape index: {}]   ;;  %s1021_s2 = inlined_call_operand.vmem [shape: f32[1,4], index: 2, kind: input, shape index: {}]   ;;  %s1022_s3 = inlined_call_operand.vmem [shape: bf16[512,4], index: 3, kind: output, shape index: {}]  }
   0x1   :  { %v14_v0 = vld [vmem:[%s1019_s0] sm:$0xff]  ;;  %v15_v3 = vld [vmem:[%s1019_s0 + $0x8] sm:$0xff]  ;;  %v16_v6 = vld [vmem:[%s1019_s0 + $0x10] sm:$0xff] }
   0x2   :  { %v439_v1 = vld [vmem:[%s1020_s1] ss:$0 sm:$0xff]  ;;  %v17_v7 = vld [vmem:[%s1019_s0 + $0x18] sm:$0xff]  ;;  %v19_v12 = vld [vmem:[%s1019_s0 + $0x28] sm:$0xff] }
   0x3   :  { %v444_v2 = vld [vmem:[%s1021_s2] ss:$0 sm:$0xff]  ;;  %v82_v4 = vmul.f32 %v439_v1, %v14_v0  ;;  %v83_v5 = vmul.f32 %v439_v1, %v15_v3  ;;  %v84_v9 = vmul.f32 %v439_v1, %v16_v6  ;;  %v85_v10 = vmul.f32 %v439_v1, %v17_v7  ;;  %v20_v13 = vld [vmem:[%s1019_s0 + $0x30] sm:$0xff]  ;;  %v21_v14 = vld [vmem:[%s1019_s0 + $0x38] sm:$0xff] }
   0x4   :  { %v18_v8 = vld [vmem:[%s1019_s0 + $0x20] sm:$0xff]  ;;  %v87_v17 = vmul.f32 %v439_v1, %v19_v12  ;;  %v88_v18 = vmul.f32 %v439_v1, %v20_v13  ;;  %v89_v22 = vmul.f32 %v439_v1, %v21_v14  ;;  %v23_v32 = vld [vmem:[%s1019_s0 + $0x48] sm:$0xff]  ;;  %v24_v37 = vld [vmem:[%s1019_s0 + $0x50] sm:$0xff] }
   0x5   :  { %v86_v11 = vmul.f32 %v439_v1, %v18_v8  ;;  %v150_v15 = vadd.f32 %v444_v2, %v82_v4  ;;  %v151_v16 = vadd.f32 %v444_v2, %v83_v5  ;;  %v152_v19 = vadd.f32 %v444_v2, %v84_v9  ;;  %v22_v31 = vld [vmem:[%s1019_s0 + $0x40] sm:$0xff]  ;;  %v25_v38 = vld [vmem:[%s1019_s0 + $0x58] sm:$0xff]  ;;  %v27_v44 = vld [vmem:[%s1019_s0 + $0x68] sm:$0xff] }
   0x6   :  { %v153_v20 = vadd.f32 %v444_v2, %v85_v10  ;;  %v155_v25 = vadd.f32 %v444_v2, %v87_v17  ;;  %v156_v26 = vadd.f32 %v444_v2, %v88_v18  ;;  %v157_v30 = vadd.f32 %v444_v2, %v89_v22  ;;  %v26_v39 = vld [vmem:[%s1019_s0 + $0x60] sm:$0xff]  ;;  %v28_v45 = vld [vmem:[%s1019_s0 + $0x70] sm:$0xff]  ;;  %v29_v50 = vld [vmem:[%s1019_s0 + $0x78] sm:$0xff] }
   0x7   :  { %v154_v21 = vadd.f32 %v444_v2, %v86_v11  ;;  %v214_v23 = vmax.f32 %v150_v15, 0.0  ;;  %v215_v24 = vmax.f32 %v151_v16, 0.0  ;;  %v216_v27 = vmax.f32 %v152_v19, 0.0  ;;  %v30_v5 = vld [vmem:[%s1019_s0 + $0x80] sm:$0xff]  ;;  %v31_v6 = vld [vmem:[%s1019_s0 + $0x88] sm:$0xff]  ;;  %v32_v11 = vld [vmem:[%s1019_s0 + $0x90] sm:$0xff] }
   0x8   :  { %v217_v28 = vmax.f32 %v153_v20, 0.0  ;;  %v219_v35 = vmax.f32 %v155_v25, 0.0  ;;  %v220_v36 = vmax.f32 %v156_v26, 0.0  ;;  %v221_v43 = vmax.f32 %v157_v30, 0.0  ;;  %v33_v16 = vld [vmem:[%s1019_s0 + $0x98] sm:$0xff]  ;;  %v34_v17 = vld [vmem:[%s1019_s0 + $0xa0] sm:$0xff] }
   0x9   :  { %v218_v29 = vmax.f32 %v154_v21, 0.0  ;;  %v278_v33 = vpack.c.bf16 %v214_v23, %v214_v23  ;;  %v279_v34 = vpack.c.bf16 %v215_v24, %v215_v24  ;;  %v280_v40 = vpack.c.bf16 %v216_v27, %v216_v27  ;;  %v35_v22 = vld [vmem:[%s1019_s0 + $0xa8] sm:$0xff]  ;;  %v36_v23 = vld [vmem:[%s1019_s0 + $0xb0] sm:$0xff] }
   0xa   :  { %v281_v41 = vpack.c.bf16 %v217_v28, %v217_v28  ;;  %v283_v46 = vpack.c.bf16 %v219_v35, %v219_v35  ;;  %v284_v47 = vpack.c.bf16 %v220_v36, %v220_v36  ;;  %v90_v48 = vmul.f32 %v439_v1, %v22_v31  ;;  %v37_v28 = vld [vmem:[%s1019_s0 + $0xb8] sm:$0xff] }
   0xb   :  { %v282_v42 = vpack.c.bf16 %v218_v29, %v218_v29  ;;  %343 = vst.msk [vmem:[%s1022_s3] sm:$0xf] %vm342_vm0, %v278_v33  ;;  %v91_v49 = vmul.f32 %v439_v1, %v23_v32  ;;  %v285_v51 = vpack.c.bf16 %v221_v43, %v221_v43  ;;  %v92_v52 = vmul.f32 %v439_v1, %v24_v37 }
   0xc   :  { %344 = vst.msk [vmem:[%s1022_s3 + $0x4] sm:$0xf] %vm342_vm0, %v279_v34  ;;  %v93_v53 = vmul.f32 %v439_v1, %v25_v38  ;;  %v94_v54 = vmul.f32 %v439_v1, %v26_v39  ;;  %v158_v55 = vadd.f32 %v444_v2, %v90_v48  ;;  %v95_v57 = vmul.f32 %v439_v1, %v27_v44 }
   0xd   :  { %345 = vst.msk [vmem:[%s1022_s3 + $0x8] sm:$0xf] %vm342_vm0, %v280_v40  ;;  %v159_v56 = vadd.f32 %v444_v2, %v91_v49  ;;  %v96_v58 = vmul.f32 %v439_v1, %v28_v45  ;;  %v160_v59 = vadd.f32 %v444_v2, %v92_v52  ;;  %v97_v62 = vmul.f32 %v439_v1, %v29_v50  ;;  %v38_v45 = vld [vmem:[%s1019_s0 + $0xc0] sm:$0xff] }
   0xe   :  { %346 = vst.msk [vmem:[%s1022_s3 + $0xc] sm:$0xf] %vm342_vm0, %v281_v41  ;;  %v161_v60 = vadd.f32 %v444_v2, %v93_v53  ;;  %v162_v61 = vadd.f32 %v444_v2, %v94_v54  ;;  %v222_v63 = vmax.f32 %v158_v55, 0.0  ;;  %v163_v3 = vadd.f32 %v444_v2, %v95_v57  ;;  %v42_v57 = vld [vmem:[%s1019_s0 + $0xe0] sm:$0xff] }
   0xf   :  { %347 = vst.msk [vmem:[%s1022_s3 + $0x10] sm:$0xf] %vm342_vm0, %v282_v42  ;;  %v223_v0 = vmax.f32 %v159_v56, 0.0  ;;  %v164_v4 = vadd.f32 %v444_v2, %v96_v58  ;;  %v224_v7 = vmax.f32 %v160_v59, 0.0  ;;  %v165_v10 = vadd.f32 %v444_v2, %v97_v62  ;;  %v41_v56 = vld [vmem:[%s1019_s0 + $0xd8] sm:$0xff]  ;;  %v43_v62 = vld [vmem:[%s1019_s0 + $0xe8] sm:$0xff] }
  0x10   :  { %348 = vst.msk [vmem:[%s1022_s3 + $0x14] sm:$0xf] %vm342_vm0, %v283_v46  ;;  %v225_v8 = vmax.f32 %v161_v60, 0.0  ;;  %v226_v9 = vmax.f32 %v162_v61, 0.0  ;;  %v286_v12 = vpack.c.bf16 %v222_v63, %v222_v63  ;;  %v227_v14 = vmax.f32 %v163_v3, 0.0  ;;  %v39_v46 = vld [vmem:[%s1019_s0 + $0xc8] sm:$0xff] }
  0x11   :  { %349 = vst.msk [vmem:[%s1022_s3 + $0x18] sm:$0xf] %vm342_vm0, %v284_v47  ;;  %v287_v13 = vpack.c.bf16 %v223_v0, %v223_v0  ;;  %v228_v15 = vmax.f32 %v164_v4, 0.0  ;;  %v288_v18 = vpack.c.bf16 %v224_v7, %v224_v7  ;;  %v229_v21 = vmax.f32 %v165_v10, 0.0  ;;  %v44_v63 = vld [vmem:[%s1019_s0 + $0xf0] sm:$0xff] }
  0x12   :  { %350 = vst.msk [vmem:[%s1022_s3 + $0x1c] sm:$0xf] %vm342_vm0, %v285_v51  ;;  %v289_v19 = vpack.c.bf16 %v225_v8, %v225_v8  ;;  %v290_v20 = vpack.c.bf16 %v226_v9, %v226_v9  ;;  %v291_v24 = vpack.c.bf16 %v227_v14, %v227_v14  ;;  %v98_v26 = vmul.f32 %v439_v1, %v30_v5  ;;  %v40_v51 = vld [vmem:[%s1019_s0 + $0xd0] sm:$0xff] }
  0x13   :  { %351 = vst.msk [vmem:[%s1022_s3 + $0x20] sm:$0xf] %vm342_vm0, %v286_v12  ;;  %v292_v25 = vpack.c.bf16 %v228_v15, %v228_v15  ;;  %v99_v27 = vmul.f32 %v439_v1, %v31_v6  ;;  %v293_v29 = vpack.c.bf16 %v229_v21, %v229_v21  ;;  %v100_v30 = vmul.f32 %v439_v1, %v32_v11  ;;  %v45_v6 = vld [vmem:[%s1019_s0 + $0xf8] sm:$0xff] }
  0x14   :  { %352 = vst.msk [vmem:[%s1022_s3 + $0x24] sm:$0xf] %vm342_vm0, %v287_v13  ;;  %v101_v31 = vmul.f32 %v439_v1, %v33_v16  ;;  %v102_v32 = vmul.f32 %v439_v1, %v34_v17  ;;  %v166_v33 = vadd.f32 %v444_v2, %v98_v26  ;;  %v103_v35 = vmul.f32 %v439_v1, %v35_v22 }
  0x15   :  { %353 = vst.msk [vmem:[%s1022_s3 + $0x28] sm:$0xf] %vm342_vm0, %v288_v18  ;;  %v167_v34 = vadd.f32 %v444_v2, %v99_v27  ;;  %v104_v36 = vmul.f32 %v439_v1, %v36_v23  ;;  %v168_v37 = vadd.f32 %v444_v2, %v100_v30  ;;  %v105_v40 = vmul.f32 %v439_v1, %v37_v28  ;;  %v46_v23 = vld [vmem:[%s1019_s0 + $0x100] sm:$0xff] }
  0x16   :  { %354 = vst.msk [vmem:[%s1022_s3 + $0x2c] sm:$0xf] %vm342_vm0, %v289_v19  ;;  %v169_v38 = vadd.f32 %v444_v2, %v101_v31  ;;  %v170_v39 = vadd.f32 %v444_v2, %v102_v32  ;;  %v230_v41 = vmax.f32 %v166_v33, 0.0  ;;  %v171_v43 = vadd.f32 %v444_v2, %v103_v35  ;;  %v50_v35 = vld [vmem:[%s1019_s0 + $0x120] sm:$0xff] }
  0x17   :  { %355 = vst.msk [vmem:[%s1022_s3 + $0x30] sm:$0xf] %vm342_vm0, %v290_v20  ;;  %v231_v42 = vmax.f32 %v167_v34, 0.0  ;;  %v172_v44 = vadd.f32 %v444_v2, %v104_v36  ;;  %v232_v47 = vmax.f32 %v168_v37, 0.0  ;;  %v173_v50 = vadd.f32 %v444_v2, %v105_v40  ;;  %v49_v34 = vld [vmem:[%s1019_s0 + $0x118] sm:$0xff]  ;;  %v51_v40 = vld [vmem:[%s1019_s0 + $0x128] sm:$0xff] }
  0x18   :  { %356 = vst.msk [vmem:[%s1022_s3 + $0x34] sm:$0xf] %vm342_vm0, %v291_v24  ;;  %v233_v48 = vmax.f32 %v169_v38, 0.0  ;;  %v234_v49 = vmax.f32 %v170_v39, 0.0  ;;  %v294_v52 = vpack.c.bf16 %v230_v41, %v230_v41  ;;  %v235_v54 = vmax.f32 %v171_v43, 0.0  ;;  %v47_v24 = vld [vmem:[%s1019_s0 + $0x108] sm:$0xff] }
  0x19   :  { %357 = vst.msk [vmem:[%s1022_s3 + $0x38] sm:$0xf] %vm342_vm0, %v292_v25  ;;  %v295_v53 = vpack.c.bf16 %v231_v42, %v231_v42  ;;  %v236_v55 = vmax.f32 %v172_v44, 0.0  ;;  %v296_v58 = vpack.c.bf16 %v232_v47, %v232_v47  ;;  %v237_v61 = vmax.f32 %v173_v50, 0.0  ;;  %v52_v41 = vld [vmem:[%s1019_s0 + $0x130] sm:$0xff] }
  0x1a   :  { %358 = vst.msk [vmem:[%s1022_s3 + $0x3c] sm:$0xf] %vm342_vm0, %v293_v29  ;;  %v297_v59 = vpack.c.bf16 %v233_v48, %v233_v48  ;;  %v298_v60 = vpack.c.bf16 %v234_v49, %v234_v49  ;;  %v299_v0 = vpack.c.bf16 %v235_v54, %v235_v54  ;;  %v106_v4 = vmul.f32 %v439_v1, %v38_v45  ;;  %v48_v29 = vld [vmem:[%s1019_s0 + $0x110] sm:$0xff] }
  0x1b   :  { %359 = vst.msk [vmem:[%s1022_s3 + $0x40] sm:$0xf] %vm342_vm0, %v294_v52  ;;  %v300_v3 = vpack.c.bf16 %v236_v55, %v236_v55  ;;  %v107_v5 = vmul.f32 %v439_v1, %v39_v46  ;;  %v301_v7 = vpack.c.bf16 %v237_v61, %v237_v61  ;;  %v108_v8 = vmul.f32 %v439_v1, %v40_v51  ;;  %v53_v46 = vld [vmem:[%s1019_s0 + $0x138] sm:$0xff] }
  0x1c   :  { %360 = vst.msk [vmem:[%s1022_s3 + $0x44] sm:$0xf] %vm342_vm0, %v295_v53  ;;  %v109_v9 = vmul.f32 %v439_v1, %v41_v56  ;;  %v110_v10 = vmul.f32 %v439_v1, %v42_v57  ;;  %v174_v11 = vadd.f32 %v444_v2, %v106_v4  ;;  %v111_v13 = vmul.f32 %v439_v1, %v43_v62 }
  0x1d   :  { %361 = vst.msk [vmem:[%s1022_s3 + $0x48] sm:$0xf] %vm342_vm0, %v296_v58  ;;  %v175_v12 = vadd.f32 %v444_v2, %v107_v5  ;;  %v112_v14 = vmul.f32 %v439_v1, %v44_v63  ;;  %v176_v15 = vadd.f32 %v444_v2, %v108_v8  ;;  %v113_v18 = vmul.f32 %v439_v1, %v45_v6  ;;  %v54_v63 = vld [vmem:[%s1019_s0 + $0x140] sm:$0xff] }
  0x1e   :  { %362 = vst.msk [vmem:[%s1022_s3 + $0x4c] sm:$0xf] %vm342_vm0, %v297_v59  ;;  %v177_v16 = vadd.f32 %v444_v2, %v109_v9  ;;  %v178_v17 = vadd.f32 %v444_v2, %v110_v10  ;;  %v238_v19 = vmax.f32 %v174_v11, 0.0  ;;  %v179_v21 = vadd.f32 %v444_v2, %v111_v13  ;;  %v58_v13 = vld [vmem:[%s1019_s0 + $0x160] sm:$0xff] }
  0x1f   :  { %363 = vst.msk [vmem:[%s1022_s3 + $0x50] sm:$0xf] %vm342_vm0, %v298_v60  ;;  %v239_v20 = vmax.f32 %v175_v12, 0.0  ;;  %v180_v22 = vadd.f32 %v444_v2, %v112_v14  ;;  %v240_v25 = vmax.f32 %v176_v15, 0.0  ;;  %v181_v28 = vadd.f32 %v444_v2, %v113_v18  ;;  %v57_v12 = vld [vmem:[%s1019_s0 + $0x158] sm:$0xff]  ;;  %v59_v18 = vld [vmem:[%s1019_s0 + $0x168] sm:$0xff] }
  0x20   :  { %364 = vst.msk [vmem:[%s1022_s3 + $0x54] sm:$0xf] %vm342_vm0, %v299_v0  ;;  %v241_v26 = vmax.f32 %v177_v16, 0.0  ;;  %v242_v27 = vmax.f32 %v178_v17, 0.0  ;;  %v302_v30 = vpack.c.bf16 %v238_v19, %v238_v19  ;;  %v243_v32 = vmax.f32 %v179_v21, 0.0  ;;  %v55_v0 = vld [vmem:[%s1019_s0 + $0x148] sm:$0xff] }
  0x21   :  { %365 = vst.msk [vmem:[%s1022_s3 + $0x58] sm:$0xf] %vm342_vm0, %v300_v3  ;;  %v303_v31 = vpack.c.bf16 %v239_v20, %v239_v20  ;;  %v244_v33 = vmax.f32 %v180_v22, 0.0  ;;  %v304_v36 = vpack.c.bf16 %v240_v25, %v240_v25  ;;  %v245_v39 = vmax.f32 %v181_v28, 0.0  ;;  %v60_v19 = vld [vmem:[%s1019_s0 + $0x170] sm:$0xff] }
  0x22   :  { %366 = vst.msk [vmem:[%s1022_s3 + $0x5c] sm:$0xf] %vm342_vm0, %v301_v7  ;;  %v305_v37 = vpack.c.bf16 %v241_v26, %v241_v26  ;;  %v306_v38 = vpack.c.bf16 %v242_v27, %v242_v27  ;;  %v307_v42 = vpack.c.bf16 %v243_v32, %v243_v32  ;;  %v114_v44 = vmul.f32 %v439_v1, %v46_v23  ;;  %v56_v7 = vld [vmem:[%s1019_s0 + $0x150] sm:$0xff] }
  0x23   :  { %367 = vst.msk [vmem:[%s1022_s3 + $0x60] sm:$0xf] %vm342_vm0, %v302_v30  ;;  %v308_v43 = vpack.c.bf16 %v244_v33, %v244_v33  ;;  %v115_v45 = vmul.f32 %v439_v1, %v47_v24  ;;  %v309_v47 = vpack.c.bf16 %v245_v39, %v245_v39  ;;  %v116_v48 = vmul.f32 %v439_v1, %v48_v29  ;;  %v61_v24 = vld [vmem:[%s1019_s0 + $0x178] sm:$0xff] }
  0x24   :  { %368 = vst.msk [vmem:[%s1022_s3 + $0x64] sm:$0xf] %vm342_vm0, %v303_v31  ;;  %v117_v49 = vmul.f32 %v439_v1, %v49_v34  ;;  %v118_v50 = vmul.f32 %v439_v1, %v50_v35  ;;  %v182_v51 = vadd.f32 %v444_v2, %v114_v44  ;;  %v119_v53 = vmul.f32 %v439_v1, %v51_v40 }
  0x25   :  { %369 = vst.msk [vmem:[%s1022_s3 + $0x68] sm:$0xf] %vm342_vm0, %v304_v36  ;;  %v183_v52 = vadd.f32 %v444_v2, %v115_v45  ;;  %v120_v54 = vmul.f32 %v439_v1, %v52_v41  ;;  %v184_v55 = vadd.f32 %v444_v2, %v116_v48  ;;  %v121_v58 = vmul.f32 %v439_v1, %v53_v46  ;;  %v62_v41 = vld [vmem:[%s1019_s0 + $0x180] sm:$0xff] }
  0x26   :  { %370 = vst.msk [vmem:[%s1022_s3 + $0x6c] sm:$0xf] %vm342_vm0, %v305_v37  ;;  %v185_v56 = vadd.f32 %v444_v2, %v117_v49  ;;  %v186_v57 = vadd.f32 %v444_v2, %v118_v50  ;;  %v246_v59 = vmax.f32 %v182_v51, 0.0  ;;  %v187_v61 = vadd.f32 %v444_v2, %v119_v53  ;;  %v66_v53 = vld [vmem:[%s1019_s0 + $0x1a0] sm:$0xff] }
  0x27   :  { %371 = vst.msk [vmem:[%s1022_s3 + $0x70] sm:$0xf] %vm342_vm0, %v306_v38  ;;  %v247_v60 = vmax.f32 %v183_v52, 0.0  ;;  %v188_v62 = vadd.f32 %v444_v2, %v120_v54  ;;  %v248_v3 = vmax.f32 %v184_v55, 0.0  ;;  %v189_v6 = vadd.f32 %v444_v2, %v121_v58  ;;  %v65_v52 = vld [vmem:[%s1019_s0 + $0x198] sm:$0xff]  ;;  %v67_v58 = vld [vmem:[%s1019_s0 + $0x1a8] sm:$0xff] }
  0x28   :  { %372 = vst.msk [vmem:[%s1022_s3 + $0x74] sm:$0xf] %vm342_vm0, %v307_v42  ;;  %v249_v4 = vmax.f32 %v185_v56, 0.0  ;;  %v250_v5 = vmax.f32 %v186_v57, 0.0  ;;  %v310_v8 = vpack.c.bf16 %v246_v59, %v246_v59  ;;  %v251_v10 = vmax.f32 %v187_v61, 0.0  ;;  %v63_v42 = vld [vmem:[%s1019_s0 + $0x188] sm:$0xff] }
  0x29   :  { %373 = vst.msk [vmem:[%s1022_s3 + $0x78] sm:$0xf] %vm342_vm0, %v308_v43  ;;  %v311_v9 = vpack.c.bf16 %v247_v60, %v247_v60  ;;  %v252_v11 = vmax.f32 %v188_v62, 0.0  ;;  %v312_v14 = vpack.c.bf16 %v248_v3, %v248_v3  ;;  %v253_v17 = vmax.f32 %v189_v6, 0.0  ;;  %v68_v59 = vld [vmem:[%s1019_s0 + $0x1b0] sm:$0xff] }
  0x2a   :  { %374 = vst.msk [vmem:[%s1022_s3 + $0x7c] sm:$0xf] %vm342_vm0, %v309_v47  ;;  %v313_v15 = vpack.c.bf16 %v249_v4, %v249_v4  ;;  %v314_v16 = vpack.c.bf16 %v250_v5, %v250_v5  ;;  %v315_v20 = vpack.c.bf16 %v251_v10, %v251_v10  ;;  %v122_v22 = vmul.f32 %v439_v1, %v54_v63  ;;  %v64_v47 = vld [vmem:[%s1019_s0 + $0x190] sm:$0xff] }
  0x2b   :  { %375 = vst.msk [vmem:[%s1022_s3 + $0x80] sm:$0xf] %vm342_vm0, %v310_v8  ;;  %v316_v21 = vpack.c.bf16 %v252_v11, %v252_v11  ;;  %v123_v23 = vmul.f32 %v439_v1, %v55_v0  ;;  %v317_v25 = vpack.c.bf16 %v253_v17, %v253_v17  ;;  %v124_v26 = vmul.f32 %v439_v1, %v56_v7  ;;  %v69_v0 = vld [vmem:[%s1019_s0 + $0x1b8] sm:$0xff] }
  0x2c   :  { %376 = vst.msk [vmem:[%s1022_s3 + $0x84] sm:$0xf] %vm342_vm0, %v311_v9  ;;  %v125_v27 = vmul.f32 %v439_v1, %v57_v12  ;;  %v126_v28 = vmul.f32 %v439_v1, %v58_v13  ;;  %v190_v29 = vadd.f32 %v444_v2, %v122_v22  ;;  %v127_v31 = vmul.f32 %v439_v1, %v59_v18 }
  0x2d   :  { %377 = vst.msk [vmem:[%s1022_s3 + $0x88] sm:$0xf] %vm342_vm0, %v312_v14  ;;  %v191_v30 = vadd.f32 %v444_v2, %v123_v23  ;;  %v128_v32 = vmul.f32 %v439_v1, %v60_v19  ;;  %v192_v33 = vadd.f32 %v444_v2, %v124_v26  ;;  %v129_v36 = vmul.f32 %v439_v1, %v61_v24  ;;  %v70_v19 = vld [vmem:[%s1019_s0 + $0x1c0] sm:$0xff] }
  0x2e   :  { %378 = vst.msk [vmem:[%s1022_s3 + $0x8c] sm:$0xf] %vm342_vm0, %v313_v15  ;;  %v193_v34 = vadd.f32 %v444_v2, %v125_v27  ;;  %v194_v35 = vadd.f32 %v444_v2, %v126_v28  ;;  %v254_v37 = vmax.f32 %v190_v29, 0.0  ;;  %v195_v39 = vadd.f32 %v444_v2, %v127_v31  ;;  %v74_v31 = vld [vmem:[%s1019_s0 + $0x1e0] sm:$0xff] }
  0x2f   :  { %379 = vst.msk [vmem:[%s1022_s3 + $0x90] sm:$0xf] %vm342_vm0, %v314_v16  ;;  %v255_v38 = vmax.f32 %v191_v30, 0.0  ;;  %v196_v40 = vadd.f32 %v444_v2, %v128_v32  ;;  %v256_v43 = vmax.f32 %v192_v33, 0.0  ;;  %v197_v46 = vadd.f32 %v444_v2, %v129_v36  ;;  %v73_v30 = vld [vmem:[%s1019_s0 + $0x1d8] sm:$0xff]  ;;  %v75_v36 = vld [vmem:[%s1019_s0 + $0x1e8] sm:$0xff] }
  0x30   :  { %380 = vst.msk [vmem:[%s1022_s3 + $0x94] sm:$0xf] %vm342_vm0, %v315_v20  ;;  %v257_v44 = vmax.f32 %v193_v34, 0.0  ;;  %v258_v45 = vmax.f32 %v194_v35, 0.0  ;;  %v318_v48 = vpack.c.bf16 %v254_v37, %v254_v37  ;;  %v259_v50 = vmax.f32 %v195_v39, 0.0  ;;  %v71_v20 = vld [vmem:[%s1019_s0 + $0x1c8] sm:$0xff] }
  0x31   :  { %381 = vst.msk [vmem:[%s1022_s3 + $0x98] sm:$0xf] %vm342_vm0, %v316_v21  ;;  %v319_v49 = vpack.c.bf16 %v255_v38, %v255_v38  ;;  %v260_v51 = vmax.f32 %v196_v40, 0.0  ;;  %v320_v54 = vpack.c.bf16 %v256_v43, %v256_v43  ;;  %v261_v57 = vmax.f32 %v197_v46, 0.0  ;;  %v76_v37 = vld [vmem:[%s1019_s0 + $0x1f0] sm:$0xff] }
  0x32   :  { %382 = vst.msk [vmem:[%s1022_s3 + $0x9c] sm:$0xf] %vm342_vm0, %v317_v25  ;;  %v321_v55 = vpack.c.bf16 %v257_v44, %v257_v44  ;;  %v322_v56 = vpack.c.bf16 %v258_v45, %v258_v45  ;;  %v323_v60 = vpack.c.bf16 %v259_v50, %v259_v50  ;;  %v130_v62 = vmul.f32 %v439_v1, %v62_v41  ;;  %v72_v25 = vld [vmem:[%s1019_s0 + $0x1d0] sm:$0xff] }
  0x33   :  { %383 = vst.msk [vmem:[%s1022_s3 + $0xa0] sm:$0xf] %vm342_vm0, %v318_v48  ;;  %v324_v61 = vpack.c.bf16 %v260_v51, %v260_v51  ;;  %v131_v63 = vmul.f32 %v439_v1, %v63_v42  ;;  %v325_v3 = vpack.c.bf16 %v261_v57, %v261_v57  ;;  %v132_v4 = vmul.f32 %v439_v1, %v64_v47  ;;  %v77_v42 = vld [vmem:[%s1019_s0 + $0x1f8] sm:$0xff] }
  0x34   :  { %384 = vst.msk [vmem:[%s1022_s3 + $0xa4] sm:$0xf] %vm342_vm0, %v319_v49  ;;  %v133_v5 = vmul.f32 %v439_v1, %v65_v52  ;;  %v134_v6 = vmul.f32 %v439_v1, %v66_v53  ;;  %v198_v7 = vadd.f32 %v444_v2, %v130_v62  ;;  %v135_v9 = vmul.f32 %v439_v1, %v67_v58 }
  0x35   :  { %385 = vst.msk [vmem:[%s1022_s3 + $0xa8] sm:$0xf] %vm342_vm0, %v320_v54  ;;  %v199_v8 = vadd.f32 %v444_v2, %v131_v63  ;;  %v136_v10 = vmul.f32 %v439_v1, %v68_v59  ;;  %v200_v11 = vadd.f32 %v444_v2, %v132_v4  ;;  %v137_v14 = vmul.f32 %v439_v1, %v69_v0 }
  0x36   :  { %386 = vst.msk [vmem:[%s1022_s3 + $0xac] sm:$0xf] %vm342_vm0, %v321_v55  ;;  %v201_v12 = vadd.f32 %v444_v2, %v133_v5  ;;  %v202_v13 = vadd.f32 %v444_v2, %v134_v6  ;;  %v262_v15 = vmax.f32 %v198_v7, 0.0  ;;  %v203_v17 = vadd.f32 %v444_v2, %v135_v9 }
  0x37   :  { %387 = vst.msk [vmem:[%s1022_s3 + $0xb0] sm:$0xf] %vm342_vm0, %v322_v56  ;;  %v263_v16 = vmax.f32 %v199_v8, 0.0  ;;  %v204_v18 = vadd.f32 %v444_v2, %v136_v10  ;;  %v264_v21 = vmax.f32 %v200_v11, 0.0  ;;  %v205_v24 = vadd.f32 %v444_v2, %v137_v14 }
  0x38   :  { %388 = vst.msk [vmem:[%s1022_s3 + $0xb4] sm:$0xf] %vm342_vm0, %v323_v60  ;;  %v265_v22 = vmax.f32 %v201_v12, 0.0  ;;  %v266_v23 = vmax.f32 %v202_v13, 0.0  ;;  %v326_v26 = vpack.c.bf16 %v262_v15, %v262_v15  ;;  %v267_v28 = vmax.f32 %v203_v17, 0.0 }
  0x39   :  { %389 = vst.msk [vmem:[%s1022_s3 + $0xb8] sm:$0xf] %vm342_vm0, %v324_v61  ;;  %v327_v27 = vpack.c.bf16 %v263_v16, %v263_v16  ;;  %v268_v29 = vmax.f32 %v204_v18, 0.0  ;;  %v328_v32 = vpack.c.bf16 %v264_v21, %v264_v21  ;;  %v269_v35 = vmax.f32 %v205_v24, 0.0 }
  0x3a   :  { %390 = vst.msk [vmem:[%s1022_s3 + $0xbc] sm:$0xf] %vm342_vm0, %v325_v3  ;;  %v329_v33 = vpack.c.bf16 %v265_v22, %v265_v22  ;;  %v330_v34 = vpack.c.bf16 %v266_v23, %v266_v23  ;;  %v331_v38 = vpack.c.bf16 %v267_v28, %v267_v28  ;;  %v138_v40 = vmul.f32 %v439_v1, %v70_v19 }
  0x3b   :  { %391 = vst.msk [vmem:[%s1022_s3 + $0xc0] sm:$0xf] %vm342_vm0, %v326_v26  ;;  %v332_v39 = vpack.c.bf16 %v268_v29, %v268_v29  ;;  %v139_v41 = vmul.f32 %v439_v1, %v71_v20  ;;  %v333_v43 = vpack.c.bf16 %v269_v35, %v269_v35  ;;  %v140_v44 = vmul.f32 %v439_v1, %v72_v25 }
  0x3c   :  { %392 = vst.msk [vmem:[%s1022_s3 + $0xc4] sm:$0xf] %vm342_vm0, %v327_v27  ;;  %v141_v45 = vmul.f32 %v439_v1, %v73_v30  ;;  %v142_v46 = vmul.f32 %v439_v1, %v74_v31  ;;  %v206_v47 = vadd.f32 %v444_v2, %v138_v40  ;;  %v143_v49 = vmul.f32 %v439_v1, %v75_v36 }
  0x3d   :  { %393 = vst.msk [vmem:[%s1022_s3 + $0xc8] sm:$0xf] %vm342_vm0, %v328_v32  ;;  %v207_v48 = vadd.f32 %v444_v2, %v139_v41  ;;  %v144_v50 = vmul.f32 %v439_v1, %v76_v37  ;;  %v208_v51 = vadd.f32 %v444_v2, %v140_v44  ;;  %v145_v54 = vmul.f32 %v439_v1, %v77_v42 }
  0x3e   :  { %394 = vst.msk [vmem:[%s1022_s3 + $0xcc] sm:$0xf] %vm342_vm0, %v329_v33  ;;  %v209_v52 = vadd.f32 %v444_v2, %v141_v45  ;;  %v210_v53 = vadd.f32 %v444_v2, %v142_v46  ;;  %v270_v55 = vmax.f32 %v206_v47, 0.0  ;;  %v211_v57 = vadd.f32 %v444_v2, %v143_v49 }
  0x3f   :  { %395 = vst.msk [vmem:[%s1022_s3 + $0xd0] sm:$0xf] %vm342_vm0, %v330_v34  ;;  %v271_v56 = vmax.f32 %v207_v48, 0.0  ;;  %v212_v58 = vadd.f32 %v444_v2, %v144_v50  ;;  %v272_v59 = vmax.f32 %v208_v51, 0.0  ;;  %v213_v1 = vadd.f32 %v444_v2, %v145_v54 }
  0x40   :  { %396 = vst.msk [vmem:[%s1022_s3 + $0xd4] sm:$0xf] %vm342_vm0, %v331_v38  ;;  %v273_v60 = vmax.f32 %v209_v52, 0.0  ;;  %v274_v61 = vmax.f32 %v210_v53, 0.0  ;;  %v334_v62 = vpack.c.bf16 %v270_v55, %v270_v55  ;;  %v275_v0 = vmax.f32 %v211_v57, 0.0 }
  0x41   :  { %397 = vst.msk [vmem:[%s1022_s3 + $0xd8] sm:$0xf] %vm342_vm0, %v332_v39  ;;  %v335_v63 = vpack.c.bf16 %v271_v56, %v271_v56  ;;  %v276_v3 = vmax.f32 %v212_v58, 0.0  ;;  %v336_v4 = vpack.c.bf16 %v272_v59, %v272_v59  ;;  %v277_v6 = vmax.f32 %v213_v1, 0.0 }
  0x42   :  { %398 = vst.msk [vmem:[%s1022_s3 + $0xdc] sm:$0xf] %vm342_vm0, %v333_v43  ;;  %v337_v5 = vpack.c.bf16 %v273_v60, %v273_v60  ;;  %v338_v2 = vpack.c.bf16 %v274_v61, %v274_v61  ;;  %v339_v7 = vpack.c.bf16 %v275_v0, %v275_v0 }
  0x43   :  { %399 = vst.msk [vmem:[%s1022_s3 + $0xe0] sm:$0xf] %vm342_vm0, %v334_v62  ;;  %v340_v8 = vpack.c.bf16 %v276_v3, %v276_v3  ;;  %v341_v9 = vpack.c.bf16 %v277_v6, %v277_v6 }
  0x44   :  { %400 = vst.msk [vmem:[%s1022_s3 + $0xe4] sm:$0xf] %vm342_vm0, %v335_v63 }
  0x45   :  { %401 = vst.msk [vmem:[%s1022_s3 + $0xe8] sm:$0xf] %vm342_vm0, %v336_v4 }
  0x46   :  { %402 = vst.msk [vmem:[%s1022_s3 + $0xec] sm:$0xf] %vm342_vm0, %v337_v5 }
  0x47   :  { %403 = vst.msk [vmem:[%s1022_s3 + $0xf0] sm:$0xf] %vm342_vm0, %v338_v2 }
  0x48   :  { %404 = vst.msk [vmem:[%s1022_s3 + $0xf4] sm:$0xf] %vm342_vm0, %v339_v7 }
  0x49   :  { %405 = vst.msk [vmem:[%s1022_s3 + $0xf8] sm:$0xf] %vm342_vm0, %v340_v8 }
  0x4a   :  { %406 = vst.msk [vmem:[%s1022_s3 + $0xfc] sm:$0xf] %vm342_vm0, %v341_v9 }

// kernel: bottleneck_forward.7
= control target key start
LH: loop header
LB: loop body
LE: loop exit
PB: predicated region body
PF: predicated region fallthrough
CT: control target
= control target key end

     0   :  { %vm469_vm0 = vcmask 1043456   ;;  %vm372_vm1 = vcmask 64512   ;;  %vm18_vm2 = vcmask 31744   ;;  %v1443_v22 = vmov 0.0   ;;  %s2517_s1 = inlined_call_operand.vmem [shape: bf16[8,4], index: 1, kind: input, shape index: {}]   ;;  %s2518_s0 = inlined_call_operand.vmem [shape: bf16[512,8], index: 0, kind: input, shape index: {}]   ;;  %s2519_s2 = inlined_call_operand.vmem [shape: f32[512,4], index: 2, kind: output, shape index: {0}]   ;;  %s2520_s3 = inlined_call_operand.vmem [shape: f32[8,4], index: 3, kind: output, shape index: {1}]  }
   0x1   :  { %v211_v0 = vld [vmem:[%s2517_s1] sm:$0xf]  ;;  %v1408_v4 = vld [vmem:[%s2518_s0 + $0x8] sm:$0xff]  ;;  %v1409_v7 = vld [vmem:[%s2518_s0 + $0x10] sm:$0xff]  ;;  %19 = vst.msk [vmem:[#allocation2] sm:$0xff] %vm18_vm2, %v1443_v22 }
   0x2   :  { %v471_v1 = vsel %vm469_vm0, %v211_v0, 0  ;;  %v1407_v2 = vld [vmem:[%s2518_s0] sm:$0xff]  ;;  %v1416_v5 = vld [vmem:[%s2518_s0 + $0x48] sm:$0xff]  ;;  %v1417_v8 = vld [vmem:[%s2518_s0 + $0x50] sm:$0xff]  ;;  %20 = vst.msk [vmem:[#allocation2 + $0x8] sm:$0xff] %vm18_vm2, %v1443_v22 }
   0x3   :  { %v1415_v3 = vld [vmem:[%s2518_s0 + $0x40] sm:$0xff]  ;;  %480 = vmatpush.bf16.msra.mxu0 %v471_v1  ;;  %1439 = vmatpush.bf16.msra.mxu1 %v471_v1  ;;  %v1424_v9 = vld [vmem:[%s2518_s0 + $0x88] sm:$0xff]  ;;  %v1410_v10 = vld [vmem:[%s2518_s0 + $0x18] sm:$0xff]  ;;  %21 = vst.msk [vmem:[#allocation2 + $0x10] sm:$0xff] %vm18_vm2, %v1443_v22 }
   0x4   :  { %1440 = vmatpush.bf16.msra.mxu2 %v471_v1  ;;  %1441 = vmatpush.bf16.msra.mxu3 %v471_v1  ;;  %v1423_v6 = vld [vmem:[%s2518_s0 + $0x80] sm:$0xff]  ;;  %v1418_v11 = vld [vmem:[%s2518_s0 + $0x58] sm:$0xff]  ;;  %v1425_v12 = vld [vmem:[%s2518_s0 + $0x90] sm:$0xff]  ;;  %22 = vst.msk [vmem:[#allocation2 + $0x18] sm:$0xff] %vm18_vm2, %v1443_v22 }
   0x5   :  { %v1431_v13 = vld [vmem:[%s2518_s0 + $0xc0] sm:$0xff]  ;;  %v1426_v16 = vld [vmem:[%s2518_s0 + $0x98] sm:$0xff]  ;;  %v1432_v17 = vld [vmem:[%s2518_s0 + $0xc8] sm:$0xff]  ;;  %23 = vst.msk [vmem:[#allocation2 + $0x20] sm:$0xff] %vm18_vm2, %v1443_v22 }
   0x6   :  { %1375 = vmatmul.msk.bf16.vlgmr.msra.gmra.mxu0 %vm372_vm1, %v1407_v2  ;;  %1383 = vmatmul.msk.bf16.vlgmr.msra.gmra.mxu1 %vm372_vm1, %v1415_v3  ;;  %v1411_v14 = vld [vmem:[%s2518_s0 + $0x20] sm:$0xff]  ;;  %v1412_v18 = vld [vmem:[%s2518_s0 + $0x28] sm:$0xff]  ;;  %v1433_v21 = vld [vmem:[%s2518_s0 + $0xd0] sm:$0xff]  ;;  %24 = vst.msk [vmem:[#allocation2 + $0x28] sm:$0xff] %vm18_vm2, %v1443_v22 }
   0x7   :  { %1391 = vmatmul.msk.bf16.vlgmr.msra.gmra.mxu2 %vm372_vm1, %v1423_v6  ;;  %1399 = vmatmul.msk.bf16.vlgmr.msra.gmra.mxu3 %vm372_vm1, %v1431_v13  ;;  %v1419_v15 = vld [vmem:[%s2518_s0 + $0x60] sm:$0xff]  ;;  %v1420_v19 = vld [vmem:[%s2518_s0 + $0x68] sm:$0xff]  ;;  %25 = vst.msk [vmem:[#allocation2 + $0x30] sm:$0xff] %vm18_vm2, %v1443_v22  ;;  %v1413_v23 = vld [vmem:[%s2518_s0 + $0x30] sm:$0xff] }
   0x8   :  { %v1427_v20 = vld [vmem:[%s2518_s0 + $0xa0] sm:$0xff]  ;;  %26 = vst.msk [vmem:[#allocation2 + $0x38] sm:$0xff] %vm18_vm2, %v1443_v22  ;;  %v1421_v24 = vld [vmem:[%s2518_s0 + $0x70] sm:$0xff]  ;;  %v1428_v25 = vld [vmem:[%s2518_s0 + $0xa8] sm:$0xff] }
   0x9   :  { %27 = vst.msk [vmem:[#allocation2 + $0x40] sm:$0xff] %vm18_vm2, %v1443_v22  ;;  %v1434_v26 = vld [vmem:[%s2518_s0 + $0xd8] sm:$0xff]  ;;  %v83_v29 = vld [vmem:[#allocation2] sm:$0xff]  ;;  %v1429_v30 = vld [vmem:[%s2518_s0 + $0xb0] sm:$0xff] }
   0xa   :  { %28 = vst.msk [vmem:[#allocation2 + $0x48] sm:$0xff] %vm18_vm2, %v1443_v22  ;;  %v1414_v27 = vld [vmem:[%s2518_s0 + $0x38] sm:$0xff]  ;;  %v1435_v31 = vld [vmem:[%s2518_s0 + $0xe0] sm:$0xff]  ;;  %v1436_v39 = vld [vmem:[%s2518_s0 + $0xe8] sm:$0xff] }
   0xb   :  { %29 = vst.msk [vmem:[#allocation2 + $0x50] sm:$0xff] %vm18_vm2, %v1443_v22  ;;  %v1422_v28 = vld [vmem:[%s2518_s0 + $0x78] sm:$0xff]  ;;  %v84_v40 = vld [vmem:[#allocation2 + $0x8] sm:$0xff]  ;;  %v85_v41 = vld [vmem:[#allocation2 + $0x10] sm:$0xff] }
   0xc   :  { %30 = vst.msk [vmem:[#allocation2 + $0x58] sm:$0xff] %vm18_vm2, %v1443_v22  ;;  %v1430_v38 = vld [vmem:[%s2518_s0 + $0xb8] sm:$0xff]  ;;  %v87_v63 = vld [vmem:[#allocation2 + $0x20] sm:$0xff]  ;;  %v1437_v0 = vld [vmem:[%s2518_s0 + $0xf0] sm:$0xff] }
   0xd   :  { %31 = vst.msk [vmem:[#allocation2 + $0x60] sm:$0xff] %vm18_vm2, %v1443_v22  ;;  %v86_v50 = vld [vmem:[#allocation2 + $0x18] sm:$0xff] }
   0xe   :  { %32 = vst.msk [vmem:[#allocation2 + $0x68] sm:$0xff] %vm18_vm2, %v1443_v22 }
   0xf   :  { %33 = vst.msk [vmem:[#allocation2 + $0x70] sm:$0xff] %vm18_vm2, %v1443_v22 }
  0x10   :  { %34 = vst.msk [vmem:[#allocation2 + $0x78] sm:$0xff] %vm18_vm2, %v1443_v22 }
  0x11   :  { %35 = vst.msk [vmem:[#allocation2 + $0x80] sm:$0xff] %vm18_vm2, %v1443_v22 }
  0x12   :  { %36 = vst.msk [vmem:[#allocation2 + $0x88] sm:$0xff] %vm18_vm2, %v1443_v22 }
  0x13   :  { %37 = vst.msk [vmem:[#allocation2 + $0x90] sm:$0xff] %vm18_vm2, %v1443_v22 }
  0x14   :  { %38 = vst.msk [vmem:[#allocation2 + $0x98] sm:$0xff] %vm18_vm2, %v1443_v22 }
  0x15   :  { %39 = vst.msk [vmem:[#allocation2 + $0xa0] sm:$0xff] %vm18_vm2, %v1443_v22 }
  0x16   :  { %1376 = vmatmul.msk.bf16.gmra.mxu0 %vm372_vm1, %v1408_v4  ;;  %1384 = vmatmul.msk.bf16.gmra.mxu1 %vm372_vm1, %v1416_v5  ;;  %40 = vst.msk [vmem:[#allocation2 + $0xa8] sm:$0xff] %vm18_vm2, %v1443_v22 }
  0x17   :  { %1392 = vmatmul.msk.bf16.gmra.mxu2 %vm372_vm1, %v1424_v9  ;;  %1400 = vmatmul.msk.bf16.gmra.mxu3 %vm372_vm1, %v1432_v17  ;;  %41 = vst.msk [vmem:[#allocation2 + $0xb0] sm:$0xff] %vm18_vm2, %v1443_v22 }
  0x18   :  { %42 = vst.msk [vmem:[#allocation2 + $0xb8] sm:$0xff] %vm18_vm2, %v1443_v22  ;;  %v99_v43 = vld [vmem:[#allocation2 + $0x80] sm:$0xff] }
  0x19   :  { %43 = vst.msk [vmem:[#allocation2 + $0xc0] sm:$0xff] %vm18_vm2, %v1443_v22  ;;  %v100_v45 = vld [vmem:[#allocation2 + $0x88] sm:$0xff] }
  0x1a   :  { %44 = vst.msk [vmem:[#allocation2 + $0xc8] sm:$0xff] %vm18_vm2, %v1443_v22  ;;  %v101_v51 = vld [vmem:[#allocation2 + $0x90] sm:$0xff] }
  0x1b   :  { %45 = vst.msk [vmem:[#allocation2 + $0xd0] sm:$0xff] %vm18_vm2, %v1443_v22  ;;  %v102_v58 = vld [vmem:[#allocation2 + $0x98] sm:$0xff] }
  0x1c   :  { %46 = vst.msk [vmem:[#allocation2 + $0xd8] sm:$0xff] %vm18_vm2, %v1443_v22 }
  0x1d   :  { %47 = vst.msk [vmem:[#allocation2 + $0xe0] sm:$0xff] %vm18_vm2, %v1443_v22 }
  0x1e   :  { %48 = vst.msk [vmem:[#allocation2 + $0xe8] sm:$0xff] %vm18_vm2, %v1443_v22 }
  0x1f   :  { %49 = vst.msk [vmem:[#allocation2 + $0xf0] sm:$0xff] %vm18_vm2, %v1443_v22 }
  0x20   :  { %50 = vst.msk [vmem:[#allocation2 + $0xf8] sm:$0xff] %vm18_vm2, %v1443_v22 }
  0x21   :  { %51 = vst.msk [vmem:[#allocation2 + $0x100] sm:$0xff] %vm18_vm2, %v1443_v22 }
  0x22   :  { %52 = vst.msk [vmem:[#allocation2 + $0x108] sm:$0xff] %vm18_vm2, %v1443_v22 }
  0x23   :  { %53 = vst.msk [vmem:[#allocation2 + $0x110] sm:$0xff] %vm18_vm2, %v1443_v22 }
  0x24   :  { %54 = vst.msk [vmem:[#allocation2 + $0x118] sm:$0xff] %vm18_vm2, %v1443_v22 }
  0x25   :  { %55 = vst.msk [vmem:[#allocation2 + $0x120] sm:$0xff] %vm18_vm2, %v1443_v22 }
  0x26   :  { %1377 = vmatmul.msk.bf16.gmra.mxu0 %vm372_vm1, %v1409_v7  ;;  %1385 = vmatmul.msk.bf16.gmra.mxu1 %vm372_vm1, %v1417_v8  ;;  %56 = vst.msk [vmem:[#allocation2 + $0x128] sm:$0xff] %vm18_vm2, %v1443_v22 }
  0x27   :  { %1393 = vmatmul.msk.bf16.gmra.mxu2 %vm372_vm1, %v1425_v12  ;;  %1401 = vmatmul.msk.bf16.gmra.mxu3 %vm372_vm1, %v1433_v21  ;;  %57 = vst.msk [vmem:[#allocation2 + $0x130] sm:$0xff] %vm18_vm2, %v1443_v22 }
  0x28   :  { %58 = vst.msk [vmem:[#allocation2 + $0x138] sm:$0xff] %vm18_vm2, %v1443_v22 }
  0x29   :  { %59 = vst.msk [vmem:[#allocation2 + $0x140] sm:$0xff] %vm18_vm2, %v1443_v22 }
  0x2a   :  { %60 = vst.msk [vmem:[#allocation2 + $0x148] sm:$0xff] %vm18_vm2, %v1443_v22 }
  0x2b   :  { %61 = vst.msk [vmem:[#allocation2 + $0x150] sm:$0xff] %vm18_vm2, %v1443_v22 }
  0x2c   :  { %62 = vst.msk [vmem:[#allocation2 + $0x158] sm:$0xff] %vm18_vm2, %v1443_v22 }
  0x2d   :  { %63 = vst.msk [vmem:[#allocation2 + $0x160] sm:$0xff] %vm18_vm2, %v1443_v22 }
  0x2e   :  { %64 = vst.msk [vmem:[#allocation2 + $0x168] sm:$0xff] %vm18_vm2, %v1443_v22 }
  0x2f   :  { %65 = vst.msk [vmem:[#allocation2 + $0x170] sm:$0xff] %vm18_vm2, %v1443_v22 }
  0x30   :  { %66 = vst.msk [vmem:[#allocation2 + $0x178] sm:$0xff] %vm18_vm2, %v1443_v22 }
  0x31   :  { %67 = vst.msk [vmem:[#allocation2 + $0x180] sm:$0xff] %vm18_vm2, %v1443_v22 }
  0x32   :  { %68 = vst.msk [vmem:[#allocation2 + $0x188] sm:$0xff] %vm18_vm2, %v1443_v22 }
  0x33   :  { %69 = vst.msk [vmem:[#allocation2 + $0x190] sm:$0xff] %vm18_vm2, %v1443_v22 }
  0x34   :  { %70 = vst.msk [vmem:[#allocation2 + $0x198] sm:$0xff] %vm18_vm2, %v1443_v22 }
  0x35   :  { %71 = vst.msk [vmem:[#allocation2 + $0x1a0] sm:$0xff] %vm18_vm2, %v1443_v22 }
  0x36   :  { %1378 = vmatmul.msk.bf16.gmra.mxu0 %vm372_vm1, %v1410_v10  ;;  %1386 = vmatmul.msk.bf16.gmra.mxu1 %vm372_vm1, %v1418_v11  ;;  %72 = vst.msk [vmem:[#allocation2 + $0x1a8] sm:$0xff] %vm18_vm2, %v1443_v22 }
  0x37   :  { %1394 = vmatmul.msk.bf16.gmra.mxu2 %vm372_vm1, %v1426_v16  ;;  %1402 = vmatmul.msk.bf16.gmra.mxu3 %vm372_vm1, %v1434_v26  ;;  %73 = vst.msk [vmem:[#allocation2 + $0x1b0] sm:$0xff] %vm18_vm2, %v1443_v22  ;;  %v115_v26 = vld [vmem:[#allocation2 + $0x100] sm:$0xff] }
  0x38   :  { %74 = vst.msk [vmem:[#allocation2 + $0x1b8] sm:$0xff] %vm18_vm2, %v1443_v22 }
  0x39   :  { %75 = vst.msk [vmem:[#allocation2 + $0x1c0] sm:$0xff] %vm18_vm2, %v1443_v22 }
  0x3a   :  { %76 = vst.msk [vmem:[#allocation2 + $0x1c8] sm:$0xff] %vm18_vm2, %v1443_v22 }
  0x3b   :  { %77 = vst.msk [vmem:[#allocation2 + $0x1d0] sm:$0xff] %vm18_vm2, %v1443_v22 }
  0x3c   :  { %78 = vst.msk [vmem:[#allocation2 + $0x1d8] sm:$0xff] %vm18_vm2, %v1443_v22 }
  0x3d   :  { %79 = vst.msk [vmem:[#allocation2 + $0x1e0] sm:$0xff] %vm18_vm2, %v1443_v22 }
  0x3e   :  { %80 = vst.msk [vmem:[#allocation2 + $0x1e8] sm:$0xff] %vm18_vm2, %v1443_v22 }
  0x3f   :  { %81 = vst.msk [vmem:[#allocation2 + $0x1f0] sm:$0xff] %vm18_vm2, %v1443_v22 }
  0x40   :  { %82 = vst.msk [vmem:[#allocation2 + $0x1f8] sm:$0xff] %vm18_vm2, %v1443_v22 }
  0x46   :  { %1379 = vmatmul.msk.bf16.gmra.mxu0 %vm372_vm1, %v1411_v14  ;;  %1387 = vmatmul.msk.bf16.gmra.mxu1 %vm372_vm1, %v1419_v15 }
  0x47   :  { %1395 = vmatmul.msk.bf16.gmra.mxu2 %vm372_vm1, %v1427_v20  ;;  %1403 = vmatmul.msk.bf16.gmra.mxu3 %vm372_vm1, %v1435_v31 }
  0x56   :  { %1380 = vmatmul.msk.bf16.gmra.mxu0 %vm372_vm1, %v1412_v18  ;;  %1388 = vmatmul.msk.bf16.gmra.mxu1 %vm372_vm1, %v1420_v19 }
  0x57   :  { %1396 = vmatmul.msk.bf16.gmra.mxu2 %vm372_vm1, %v1428_v25  ;;  %1404 = vmatmul.msk.bf16.gmra.mxu3 %vm372_vm1, %v1436_v39  ;;  %v103_v25 = vld [vmem:[#allocation2 + $0xa0] sm:$0xff] }
  0x66   :  { %1381 = vmatmul.msk.bf16.gmra.mxu0 %vm372_vm1, %v1413_v23  ;;  %1389 = vmatmul.msk.bf16.gmra.mxu1 %vm372_vm1, %v1421_v24  ;;  %v88_v24 = vld [vmem:[#allocation2 + $0x28] sm:$0xff] }
  0x67   :  { %1397 = vmatmul.msk.bf16.gmra.mxu2 %vm372_vm1, %v1429_v30  ;;  %1405 = vmatmul.msk.bf16.gmra.mxu3 %vm372_vm1, %v1437_v0 }
  0x76   :  { %1382 = vmatmul.msk.bf16.gmra.mxu0 %vm372_vm1, %v1414_v27  ;;  %1390 = vmatmul.msk.bf16.gmra.mxu1 %vm372_vm1, %v1422_v28 }
  0x77   :  { %1398 = vmatmul.msk.bf16.gmra.mxu2 %vm372_vm1, %v1430_v38 }
  0x83   :  { %v482_v32 = vpop.f32.mrf.mxu0  ;;  %v522_v34 = vpop.f32.mrf.mxu1 }
  0x84   :  { %v642_v33 = vadd.f32 %v482_v32, %v83_v29  ;;  %v658_v48 = vadd.f32 %v522_v34, %v99_v43  ;;  %v104_v32 = vld [vmem:[#allocation2 + $0xa8] sm:$0xff]  ;;  %v89_v43 = vld [vmem:[#allocation2 + $0x30] sm:$0xff] }
  0x85   :  { %v116_v34 = vld [vmem:[#allocation2 + $0x108] sm:$0xff] }
  0x86   :  { %707 = vst.msk [vmem:[#allocation2] sm:$0xff] %vm18_vm2, %v642_v33 }
  0x87   :  { %723 = vst.msk [vmem:[#allocation2 + $0x80] sm:$0xff] %vm18_vm2, %v658_v48 }
  0x8a   :  { %v562_v20 = vpop.f32.mrf.mxu2 }
  0x8b   :  { %v484_v35 = vpop.f32.mrf.mxu0  ;;  %v524_v37 = vpop.f32.mrf.mxu1  ;;  %v674_v28 = vadd.f32 %v562_v20, %v115_v26  ;;  %v107_v20 = vld [vmem:[#allocation2 + $0xc0] sm:$0xff] }
  0x8c   :  { %v643_v44 = vadd.f32 %v484_v35, %v84_v40  ;;  %v659_v49 = vadd.f32 %v524_v37, %v100_v45 }
  0x8d   :  { %v774_v36 = vld [vmem:[#allocation2] sm:$0xff]  ;;  %739 = vst.msk [vmem:[#allocation2 + $0x100] sm:$0xff] %vm18_vm2, %v674_v28 }
  0x8e   :  { %838 = vst.msk [vmem:[%s2519_s2] sm:$0xff] %vm18_vm2, %v774_v36  ;;  %v1035_v56 = vmul.f32 %v774_v36, %v774_v36  ;;  %v902_v59 = vsel %vm18_vm2, %v774_v36, 0.0  ;;  %v1740_v4 = vld [vmem:[#allocation2 + $0x80] sm:$0xff] }
  0x8f   :  { %708 = vst.msk [vmem:[#allocation2 + $0x8] sm:$0xff] %vm18_vm2, %v643_v44  ;;  %v1438_v44 = vld [vmem:[%s2518_s0 + $0xf8] sm:$0xff] }
  0x90   :  { %724 = vst.msk [vmem:[#allocation2 + $0x88] sm:$0xff] %vm18_vm2, %v659_v49  ;;  %v1099_v5 = vsel %vm18_vm2, %v1035_v56, 0.0  ;;  %1406 = vmatmul.msk.bf16.gmra.mxu3 %vm372_vm1, %v1438_v44  ;;  %v105_v56 = vld [vmem:[#allocation2 + $0xb0] sm:$0xff] }
  0x91   :  { %854 = vst.msk [vmem:[%s2519_s2 + $0x80] sm:$0xff] %vm18_vm2, %v1740_v4 }
  0x92   :  { %v564_v35 = vpop.f32.mrf.mxu2 }
  0x93   :  { %v487_v42 = vpop.f32.mrf.mxu0  ;;  %v527_v47 = vpop.f32.mrf.mxu1  ;;  %v675_v40 = vadd.f32 %v564_v35, %v116_v34  ;;  %v132_v35 = vld [vmem:[#allocation2 + $0x188] sm:$0xff] }
  0x94   :  { %v644_v46 = vadd.f32 %v487_v42, %v85_v41  ;;  %v660_v52 = vadd.f32 %v527_v47, %v101_v51  ;;  %v1806_v49 = vld [vmem:[#allocation2 + $0x100] sm:$0xff] }
  0x95   :  { %740 = vst.msk [vmem:[#allocation2 + $0x108] sm:$0xff] %vm18_vm2, %v675_v40 }
  0x96   :  { %709 = vst.msk [vmem:[#allocation2 + $0x10] sm:$0xff] %vm18_vm2, %v644_v46  ;;  %v775_v57 = vld [vmem:[#allocation2 + $0x8] sm:$0xff] }
  0x97   :  { %725 = vst.msk [vmem:[#allocation2 + $0x90] sm:$0xff] %vm18_vm2, %v660_v52  ;;  %v903_v60 = vsel %vm18_vm2, %v775_v57, 0.0  ;;  %v1036_v61 = vmul.f32 %v775_v57, %v775_v57  ;;  %v1749_v8 = vld [vmem:[#allocation2 + $0x88] sm:$0xff] }
  0x98   :  { %839 = vst.msk [vmem:[%s2519_s2 + $0x8] sm:$0xff] %vm18_vm2, %v775_v57  ;;  %v904_v1 = vadd.f32 %v903_v60, %v902_v59  ;;  %v117_v57 = vld [vmem:[#allocation2 + $0x110] sm:$0xff] }
  0x99   :  { %v1100_v6 = vsel %vm18_vm2, %v1036_v61, 0.0  ;;  %855 = vst.msk [vmem:[%s2519_s2 + $0x88] sm:$0xff] %vm18_vm2, %v1749_v8 }
  0x9a   :  { %v1101_v10 = vadd.f32 %v1100_v6, %v1099_v5  ;;  %870 = vst.msk [vmem:[%s2519_s2 + $0x100] sm:$0xff] %vm18_vm2, %v1806_v49  ;;  %v567_v52 = vpop.f32.mrf.mxu2  ;;  %v91_v6 = vld [vmem:[#allocation2 + $0x40] sm:$0xff] }
  0x9b   :  { %v489_v53 = vpop.f32.mrf.mxu0  ;;  %v529_v55 = vpop.f32.mrf.mxu1  ;;  %v676_v59 = vadd.f32 %v567_v52, %v117_v57 }
  0x9c   :  { %v645_v54 = vadd.f32 %v489_v53, %v86_v50  ;;  %v661_v9 = vadd.f32 %v529_v55, %v102_v58  ;;  %v90_v53 = vld [vmem:[#allocation2 + $0x38] sm:$0xff]  ;;  %v1828_v55 = vld [vmem:[#allocation2 + $0x108] sm:$0xff] }
  0x9d   :  { %v776_v62 = vld [vmem:[#allocation2 + $0x10] sm:$0xff]  ;;  %871 = vst.msk [vmem:[%s2519_s2 + $0x108] sm:$0xff] %vm18_vm2, %v1828_v55 }
  0x9e   :  { %710 = vst.msk [vmem:[#allocation2 + $0x18] sm:$0xff] %vm18_vm2, %v645_v54  ;;  %v905_v2 = vsel %vm18_vm2, %v776_v62, 0.0  ;;  %v1037_v3 = vmul.f32 %v776_v62, %v776_v62  ;;  %v1758_v14 = vld [vmem:[#allocation2 + $0x90] sm:$0xff] }
  0x9f   :  { %840 = vst.msk [vmem:[%s2519_s2 + $0x10] sm:$0xff] %vm18_vm2, %v776_v62  ;;  %v906_v11 = vadd.f32 %v905_v2, %v904_v1  ;;  %v118_v1 = vld [vmem:[#allocation2 + $0x118] sm:$0xff] }
  0xa0   :  { %v1102_v12 = vsel %vm18_vm2, %v1037_v3, 0.0  ;;  %856 = vst.msk [vmem:[%s2519_s2 + $0x90] sm:$0xff] %vm18_vm2, %v1758_v14 }
  0xa1   :  { %v1103_v16 = vadd.f32 %v1102_v12, %v1101_v10  ;;  %726 = vst.msk [vmem:[#allocation2 + $0x98] sm:$0xff] %vm18_vm2, %v661_v9 }
  0xa2   :  { %741 = vst.msk [vmem:[#allocation2 + $0x110] sm:$0xff] %vm18_vm2, %v676_v59  ;;  %v569_v2 = vpop.f32.mrf.mxu2  ;;  %v109_v59 = vld [vmem:[#allocation2 + $0xd0] sm:$0xff] }
  0xa3   :  { %v492_v7 = vpop.f32.mrf.mxu0  ;;  %v532_v19 = vpop.f32.mrf.mxu1  ;;  %v677_v5 = vadd.f32 %v569_v2, %v118_v1 }
  0xa4   :  { %v646_v13 = vadd.f32 %v492_v7, %v87_v63  ;;  %v662_v27 = vadd.f32 %v532_v19, %v103_v25  ;;  %v106_v63 = vld [vmem:[#allocation2 + $0xb8] sm:$0xff] }
  0xa5   :  { %v777_v15 = vld [vmem:[#allocation2 + $0x18] sm:$0xff]  ;;  %742 = vst.msk [vmem:[#allocation2 + $0x118] sm:$0xff] %vm18_vm2, %v677_v5 }
  0xa6   :  { %841 = vst.msk [vmem:[%s2519_s2 + $0x18] sm:$0xff] %vm18_vm2, %v777_v15  ;;  %v907_v17 = vsel %vm18_vm2, %v777_v15, 0.0  ;;  %v1038_v18 = vmul.f32 %v777_v15, %v777_v15 }
  0xa7   :  { %v908_v21 = vadd.f32 %v907_v17, %v906_v11  ;;  %711 = vst.msk [vmem:[#allocation2 + $0x20] sm:$0xff] %vm18_vm2, %v646_v13  ;;  %v92_v17 = vld [vmem:[#allocation2 + $0x48] sm:$0xff] }
  0xa8   :  { %v1104_v22 = vsel %vm18_vm2, %v1038_v18, 0.0  ;;  %727 = vst.msk [vmem:[#allocation2 + $0xa0] sm:$0xff] %vm18_vm2, %v662_v27  ;;  %v1781_v38 = vld [vmem:[#allocation2 + $0x98] sm:$0xff] }
  0xa9   :  { %v1105_v23 = vadd.f32 %v1104_v22, %v1103_v16  ;;  %857 = vst.msk [vmem:[%s2519_s2 + $0x98] sm:$0xff] %vm18_vm2, %v1781_v38  ;;  %v1854_v11 = vld [vmem:[#allocation2 + $0x110] sm:$0xff]  ;;  %v602_v16 = vpop.f32.mrf.mxu3 }
  0xaa   :  { %872 = vst.msk [vmem:[%s2519_s2 + $0x110] sm:$0xff] %vm18_vm2, %v1854_v11  ;;  %v572_v15 = vpop.f32.mrf.mxu2 }
  0xab   :  { %v494_v29 = vpop.f32.mrf.mxu0  ;;  %v534_v33 = vpop.f32.mrf.mxu1 }
  0xac   :  { %v647_v30 = vadd.f32 %v494_v29, %v88_v24  ;;  %v663_v39 = vadd.f32 %v534_v33, %v104_v32  ;;  %v1876_v19 = vld [vmem:[#allocation2 + $0x118] sm:$0xff]  ;;  %v131_v24 = vld [vmem:[#allocation2 + $0x180] sm:$0xff]  ;;  %v108_v29 = vld [vmem:[#allocation2 + $0xc8] sm:$0xff] }
  0xad   :  { %873 = vst.msk [vmem:[%s2519_s2 + $0x118] sm:$0xff] %vm18_vm2, %v1876_v19  ;;  %v690_v27 = vadd.f32 %v602_v16, %v131_v24 }
  0xae   :  { %v778_v31 = vld [vmem:[#allocation2 + $0x20] sm:$0xff]  ;;  %712 = vst.msk [vmem:[#allocation2 + $0x28] sm:$0xff] %vm18_vm2, %v647_v30 }
  0xaf   :  { %842 = vst.msk [vmem:[%s2519_s2 + $0x20] sm:$0xff] %vm18_vm2, %v778_v31  ;;  %v909_v36 = vsel %vm18_vm2, %v778_v31, 0.0  ;;  %v1039_v37 = vmul.f32 %v778_v31, %v778_v31  ;;  %v1798_v47 = vld [vmem:[#allocation2 + $0xa0] sm:$0xff]  ;;  %v120_v31 = vld [vmem:[#allocation2 + $0x128] sm:$0xff] }
  0xb0   :  { %v1783_v41 = vadd.f32 %v909_v36, %v908_v21  ;;  %728 = vst.msk [vmem:[#allocation2 + $0xa8] sm:$0xff] %vm18_vm2, %v663_v39  ;;  %v119_v21 = vld [vmem:[#allocation2 + $0x120] sm:$0xff]  ;;  %v93_v39 = vld [vmem:[#allocation2 + $0x50] sm:$0xff] }
  0xb1   :  { %v1106_v42 = vsel %vm18_vm2, %v1039_v37, 0.0  ;;  %858 = vst.msk [vmem:[%s2519_s2 + $0xa0] sm:$0xff] %vm18_vm2, %v1798_v47  ;;  %v604_v36 = vpop.f32.mrf.mxu3 }
  0xb2   :  { %v1795_v45 = vadd.f32 %v1106_v42, %v1105_v23  ;;  %v678_v23 = vadd.f32 %v572_v15, %v119_v21  ;;  %v574_v32 = vpop.f32.mrf.mxu2  ;;  %755 = vst.msk [vmem:[#allocation2 + $0x180] sm:$0xff] %vm18_vm2, %v690_v27  ;;  %v691_v37 = vadd.f32 %v604_v36, %v132_v35  ;;  %v96_v35 = vld [vmem:[#allocation2 + $0x68] sm:$0xff] }
  0xb3   :  { %v497_v46 = vpop.f32.mrf.mxu0  ;;  %v537_v51 = vpop.f32.mrf.mxu1  ;;  %v679_v34 = vadd.f32 %v574_v32, %v120_v31 }
  0xb4   :  { %v648_v48 = vadd.f32 %v497_v46, %v89_v43  ;;  %v664_v58 = vadd.f32 %v537_v51, %v105_v56  ;;  %743 = vst.msk [vmem:[#allocation2 + $0x120] sm:$0xff] %vm18_vm2, %v678_v23  ;;  %v94_v56 = vld [vmem:[#allocation2 + $0x58] sm:$0xff]  ;;  %v95_v23 = vld [vmem:[#allocation2 + $0x60] sm:$0xff] }
  0xb5   :  { %v1808_v50 = vld [vmem:[#allocation2 + $0x28] sm:$0xff]  ;;  %744 = vst.msk [vmem:[#allocation2 + $0x128] sm:$0xff] %vm18_vm2, %v679_v34 }
  0xb6   :  { %843 = vst.msk [vmem:[%s2519_s2 + $0x28] sm:$0xff] %vm18_vm2, %v1808_v50 }
  0xb7   :  { %713 = vst.msk [vmem:[#allocation2 + $0x30] sm:$0xff] %vm18_vm2, %v648_v48  ;;  %v1821_v54 = vld [vmem:[#allocation2 + $0xa8] sm:$0xff] }
  0xb8   :  { %859 = vst.msk [vmem:[%s2519_s2 + $0xa8] sm:$0xff] %vm18_vm2, %v1821_v54 }
  0xb9   :  { %729 = vst.msk [vmem:[#allocation2 + $0xb0] sm:$0xff] %vm18_vm2, %v664_v58  ;;  %v1919_v52 = vld [vmem:[#allocation2 + $0x180] sm:$0xff] }
  0xba   :  { %756 = vst.msk [vmem:[#allocation2 + $0x188] sm:$0xff] %vm18_vm2, %v691_v37  ;;  %v577_v51 = vpop.f32.mrf.mxu2 }
  0xbb   :  { %v499_v60 = vpop.f32.mrf.mxu0  ;;  %v539_v0 = vpop.f32.mrf.mxu1  ;;  %v1904_v44 = vld [vmem:[#allocation2 + $0x120] sm:$0xff]  ;;  %886 = vst.msk [vmem:[%s2519_s2 + $0x180] sm:$0xff] %vm18_vm2, %v1919_v52 }
  0xbc   :  { %v649_v61 = vadd.f32 %v499_v60, %v90_v53  ;;  %v665_v3 = vadd.f32 %v539_v0, %v106_v63  ;;  %874 = vst.msk [vmem:[%s2519_s2 + $0x120] sm:$0xff] %vm18_vm2, %v1904_v44  ;;  %v607_v53 = vpop.f32.mrf.mxu3  ;;  %v1933_v58 = vld [vmem:[#allocation2 + $0x128] sm:$0xff]  ;;  %v121_v60 = vld [vmem:[#allocation2 + $0x130] sm:$0xff] }
  0xbd   :  { %875 = vst.msk [vmem:[%s2519_s2 + $0x128] sm:$0xff] %vm18_vm2, %v1933_v58  ;;  %v133_v0 = vld [vmem:[#allocation2 + $0x190] sm:$0xff]  ;;  %v680_v2 = vadd.f32 %v577_v51, %v121_v60 }
  0xbe   :  { %v1837_v62 = vld [vmem:[#allocation2 + $0x30] sm:$0xff]  ;;  %714 = vst.msk [vmem:[#allocation2 + $0x38] sm:$0xff] %vm18_vm2, %v649_v61  ;;  %v692_v5 = vadd.f32 %v607_v53, %v133_v0  ;;  %v111_v53 = vld [vmem:[#allocation2 + $0xe0] sm:$0xff] }
  0xbf   :  { %844 = vst.msk [vmem:[%s2519_s2 + $0x30] sm:$0xff] %vm18_vm2, %v1837_v62 }
  0xc0   :  { %730 = vst.msk [vmem:[#allocation2 + $0xb8] sm:$0xff] %vm18_vm2, %v665_v3  ;;  %v1847_v9 = vld [vmem:[#allocation2 + $0xb0] sm:$0xff] }
  0xc1   :  { %860 = vst.msk [vmem:[%s2519_s2 + $0xb0] sm:$0xff] %vm18_vm2, %v1847_v9  ;;  %v1940_v61 = vld [vmem:[#allocation2 + $0x188] sm:$0xff] }
  0xc2   :  { %887 = vst.msk [vmem:[%s2519_s2 + $0x188] sm:$0xff] %vm18_vm2, %v1940_v61  ;;  %v579_v15 = vpop.f32.mrf.mxu2 }
  0xc3   :  { %v502_v7 = vpop.f32.mrf.mxu0  ;;  %v542_v13 = vpop.f32.mrf.mxu1  ;;  %745 = vst.msk [vmem:[#allocation2 + $0x130] sm:$0xff] %vm18_vm2, %v680_v2  ;;  %v135_v2 = vld [vmem:[#allocation2 + $0x1a0] sm:$0xff] }
  0xc4   :  { %v650_v10 = vadd.f32 %v502_v7, %v91_v6  ;;  %v666_v22 = vadd.f32 %v542_v13, %v107_v20  ;;  %v110_v7 = vld [vmem:[#allocation2 + $0xd8] sm:$0xff]  ;;  %v609_v21 = vpop.f32.mrf.mxu3  ;;  %757 = vst.msk [vmem:[#allocation2 + $0x190] sm:$0xff] %vm18_vm2, %v692_v5  ;;  %v124_v5 = vld [vmem:[#allocation2 + $0x148] sm:$0xff] }
  0xc5   :  { %v1856_v12 = vld [vmem:[#allocation2 + $0x38] sm:$0xff] }
  0xc6   :  { %845 = vst.msk [vmem:[%s2519_s2 + $0x38] sm:$0xff] %vm18_vm2, %v1856_v12  ;;  %v122_v13 = vld [vmem:[#allocation2 + $0x138] sm:$0xff] }
  0xc7   :  { %715 = vst.msk [vmem:[#allocation2 + $0x40] sm:$0xff] %vm18_vm2, %v650_v10  ;;  %v1869_v18 = vld [vmem:[#allocation2 + $0xb8] sm:$0xff] }
  0xc8   :  { %861 = vst.msk [vmem:[%s2519_s2 + $0xb8] sm:$0xff] %vm18_vm2, %v1869_v18  ;;  %v134_v20 = vld [vmem:[#allocation2 + $0x198] sm:$0xff] }
  0xc9   :  { %731 = vst.msk [vmem:[#allocation2 + $0xc0] sm:$0xff] %vm18_vm2, %v666_v22  ;;  %v693_v22 = vadd.f32 %v609_v21, %v134_v20  ;;  %v136_v20 = vld [vmem:[#allocation2 + $0x1a8] sm:$0xff]  ;;  %v913_v21 = vsel %vm18_vm2, %v1837_v62, 0.0 }
  0xca   :  { %v1968_v27 = vld [vmem:[#allocation2 + $0x130] sm:$0xff]  ;;  %v582_v31 = vpop.f32.mrf.mxu2 }
  0xcb   :  { %v504_v25 = vpop.f32.mrf.mxu0  ;;  %v544_v30 = vpop.f32.mrf.mxu1  ;;  %758 = vst.msk [vmem:[#allocation2 + $0x198] sm:$0xff] %vm18_vm2, %v693_v22  ;;  %v1983_v32 = vld [vmem:[#allocation2 + $0x190] sm:$0xff] }
  0xcc   :  { %v651_v26 = vadd.f32 %v504_v25, %v92_v17  ;;  %v667_v33 = vadd.f32 %v544_v30, %v108_v29  ;;  %v681_v17 = vadd.f32 %v579_v15, %v122_v13  ;;  %876 = vst.msk [vmem:[%s2519_s2 + $0x130] sm:$0xff] %vm18_vm2, %v1968_v27  ;;  %v1042_v13 = vmul.f32 %v1856_v12, %v1856_v12 }
  0xcd   :  { %888 = vst.msk [vmem:[%s2519_s2 + $0x190] sm:$0xff] %vm18_vm2, %v1983_v32 }
  0xce   :  { %v1885_v28 = vld [vmem:[#allocation2 + $0x40] sm:$0xff]  ;;  %716 = vst.msk [vmem:[#allocation2 + $0x48] sm:$0xff] %vm18_vm2, %v651_v26 }
  0xcf   :  { %846 = vst.msk [vmem:[%s2519_s2 + $0x40] sm:$0xff] %vm18_vm2, %v1885_v28 }
  0xd0   :  { %732 = vst.msk [vmem:[#allocation2 + $0xc8] sm:$0xff] %vm18_vm2, %v667_v33  ;;  %v1896_v42 = vld [vmem:[#allocation2 + $0xc0] sm:$0xff]  ;;  %v612_v33 = vpop.f32.mrf.mxu3 }
  0xd1   :  { %862 = vst.msk [vmem:[%s2519_s2 + $0xc0] sm:$0xff] %vm18_vm2, %v1896_v42  ;;  %v694_v15 = vadd.f32 %v612_v33, %v135_v2  ;;  %v1112_v33 = vsel %vm18_vm2, %v1042_v13, 0.0 }
  0xd2   :  { %746 = vst.msk [vmem:[#allocation2 + $0x138] sm:$0xff] %vm18_vm2, %v681_v17  ;;  %v2004_v37 = vld [vmem:[#allocation2 + $0x198] sm:$0xff]  ;;  %v584_v60 = vpop.f32.mrf.mxu2 }
  0xd3   :  { %v507_v40 = vpop.f32.mrf.mxu0  ;;  %v547_v48 = vpop.f32.mrf.mxu1  ;;  %889 = vst.msk [vmem:[%s2519_s2 + $0x198] sm:$0xff] %vm18_vm2, %v2004_v37  ;;  %v683_v17 = vadd.f32 %v584_v60, %v124_v5 }
  0xd4   :  { %v652_v43 = vadd.f32 %v507_v40, %v93_v39  ;;  %v668_v63 = vadd.f32 %v547_v48, %v109_v59  ;;  %v1040_v40 = vmul.f32 %v1808_v50, %v1808_v50  ;;  %v1041_v48 = vmul.f32 %v1837_v62, %v1837_v62  ;;  %759 = vst.msk [vmem:[#allocation2 + $0x1a0] sm:$0xff] %vm18_vm2, %v694_v15 }
  0xd5   :  { %v1906_v46 = vld [vmem:[#allocation2 + $0x48] sm:$0xff]  ;;  %748 = vst.msk [vmem:[#allocation2 + $0x148] sm:$0xff] %vm18_vm2, %v683_v17 }
  0xd6   :  { %847 = vst.msk [vmem:[%s2519_s2 + $0x48] sm:$0xff] %vm18_vm2, %v1906_v46  ;;  %v1110_v22 = vsel %vm18_vm2, %v1041_v48, 0.0  ;;  %v1044_v62 = vmul.f32 %v1906_v46, %v1906_v46 }
  0xd7   :  { %717 = vst.msk [vmem:[#allocation2 + $0x50] sm:$0xff] %vm18_vm2, %v652_v43  ;;  %v1926_v57 = vld [vmem:[#allocation2 + $0xc8] sm:$0xff] }
  0xd8   :  { %863 = vst.msk [vmem:[%s2519_s2 + $0xc8] sm:$0xff] %vm18_vm2, %v1926_v57 }
  0xd9   :  { %733 = vst.msk [vmem:[#allocation2 + $0xd0] sm:$0xff] %vm18_vm2, %v668_v63  ;;  %v1997_v36 = vld [vmem:[#allocation2 + $0x138] sm:$0xff]  ;;  %v911_v63 = vsel %vm18_vm2, %v1808_v50, 0.0  ;;  %v97_v50 = vld [vmem:[#allocation2 + $0x70] sm:$0xff] }
  0xda   :  { %877 = vst.msk [vmem:[%s2519_s2 + $0x138] sm:$0xff] %vm18_vm2, %v1997_v36 }
  0xdb   :  { %v509_v1 = vpop.f32.mrf.mxu0  ;;  %v549_v10 = vpop.f32.mrf.mxu1  ;;  %v2078_v15 = vld [vmem:[#allocation2 + $0x1a0] sm:$0xff] }
  0xdc   :  { %v653_v3 = vadd.f32 %v509_v1, %v94_v56  ;;  %v669_v16 = vadd.f32 %v549_v10, %v110_v7  ;;  %v123_v56 = vld [vmem:[#allocation2 + $0x140] sm:$0xff]  ;;  %v614_v7 = vpop.f32.mrf.mxu3  ;;  %v1108_v10 = vsel %vm18_vm2, %v1040_v40, 0.0  ;;  %890 = vst.msk [vmem:[%s2519_s2 + $0x1a0] sm:$0xff] %vm18_vm2, %v2078_v15 }
  0xdd   :  { %v682_v1 = vadd.f32 %v582_v31, %v123_v56  ;;  %v587_v56 = vpop.f32.mrf.mxu2 }
  0xde   :  { %v1949_v6 = vld [vmem:[#allocation2 + $0x50] sm:$0xff]  ;;  %718 = vst.msk [vmem:[#allocation2 + $0x58] sm:$0xff] %vm18_vm2, %v653_v3  ;;  %v112_v3 = vld [vmem:[#allocation2 + $0xe8] sm:$0xff] }
  0xdf   :  { %848 = vst.msk [vmem:[%s2519_s2 + $0x50] sm:$0xff] %vm18_vm2, %v1949_v6  ;;  %v1045_v48 = vmul.f32 %v1949_v6, %v1949_v6 }
  0xe0   :  { %734 = vst.msk [vmem:[#allocation2 + $0xd8] sm:$0xff] %vm18_vm2, %v669_v16  ;;  %v1960_v25 = vld [vmem:[#allocation2 + $0xd0] sm:$0xff] }
  0xe1   :  { %864 = vst.msk [vmem:[%s2519_s2 + $0xd0] sm:$0xff] %vm18_vm2, %v1960_v25  ;;  %v1118_v13 = vsel %vm18_vm2, %v1045_v48, 0.0 }
  0xe2   :  { %747 = vst.msk [vmem:[#allocation2 + $0x140] sm:$0xff] %vm18_vm2, %v682_v1 }
  0xe3   :  { %v512_v24 = vpop.f32.mrf.mxu0  ;;  %v552_v30 = vpop.f32.mrf.mxu1 }
  0xe4   :  { %v654_v26 = vadd.f32 %v512_v24, %v95_v23  ;;  %v670_v0 = vadd.f32 %v552_v30, %v111_v53  ;;  %v1043_v23 = vmul.f32 %v1885_v28, %v1885_v28  ;;  %v912_v24 = vadd.f32 %v911_v63, %v1783_v41  ;;  %v617_v63 = vpop.f32.mrf.mxu3 }
  0xe5   :  { %v1970_v29 = vld [vmem:[#allocation2 + $0x58] sm:$0xff]  ;;  %v915_v30 = vsel %vm18_vm2, %v1856_v12, 0.0 }
  0xe6   :  { %849 = vst.msk [vmem:[%s2519_s2 + $0x58] sm:$0xff] %vm18_vm2, %v1970_v29  ;;  %v914_v40 = vadd.f32 %v913_v21, %v912_v24  ;;  %v1114_v12 = vsel %vm18_vm2, %v1043_v23, 0.0  ;;  %v1046_v1 = vmul.f32 %v1970_v29, %v1970_v29  ;;  %v2097_v24 = vld [vmem:[#allocation2 + $0x148] sm:$0xff] }
  0xe7   :  { %719 = vst.msk [vmem:[#allocation2 + $0x60] sm:$0xff] %vm18_vm2, %v654_v26  ;;  %v1990_v34 = vld [vmem:[#allocation2 + $0xd8] sm:$0xff]  ;;  %v1109_v26 = vadd.f32 %v1108_v10, %v1795_v45  ;;  %v917_v45 = vsel %vm18_vm2, %v1885_v28, 0.0  ;;  %v919_v28 = vsel %vm18_vm2, %v1906_v46, 0.0  ;;  %v921_v46 = vsel %vm18_vm2, %v1949_v6, 0.0 }
  0xe8   :  { %865 = vst.msk [vmem:[%s2519_s2 + $0xd8] sm:$0xff] %vm18_vm2, %v1990_v34  ;;  %v1120_v21 = vsel %vm18_vm2, %v1046_v1, 0.0 }
  0xe9   :  { %735 = vst.msk [vmem:[#allocation2 + $0xe0] sm:$0xff] %vm18_vm2, %v670_v0  ;;  %v1116_v0 = vsel %vm18_vm2, %v1044_v62, 0.0  ;;  %v2068_v10 = vld [vmem:[#allocation2 + $0x140] sm:$0xff]  ;;  %v113_v62 = vld [vmem:[#allocation2 + $0xf0] sm:$0xff] }
  0xea   :  { %878 = vst.msk [vmem:[%s2519_s2 + $0x140] sm:$0xff] %vm18_vm2, %v2068_v10 }
  0xeb   :  { %v514_v39 = vpop.f32.mrf.mxu0  ;;  %v554_v59 = vpop.f32.mrf.mxu1  ;;  %879 = vst.msk [vmem:[%s2519_s2 + $0x148] sm:$0xff] %vm18_vm2, %v2097_v24 }
  0xec   :  { %v655_v43 = vadd.f32 %v514_v39, %v96_v35  ;;  %v671_v16 = vadd.f32 %v554_v59, %v112_v3  ;;  %v695_v39 = vadd.f32 %v614_v7, %v136_v20  ;;  %v916_v59 = vadd.f32 %v915_v30, %v914_v40  ;;  %v98_v7 = vld [vmem:[#allocation2 + $0x78] sm:$0xff]  ;;  %v589_v40 = vpop.f32.mrf.mxu2 }
  0xed   :  { %v923_v20 = vsel %vm18_vm2, %v1970_v29, 0.0 }
  0xee   :  { %v2015_v51 = vld [vmem:[#allocation2 + $0x60] sm:$0xff]  ;;  %720 = vst.msk [vmem:[#allocation2 + $0x68] sm:$0xff] %vm18_vm2, %v655_v43  ;;  %v1111_v43 = vadd.f32 %v1110_v22, %v1109_v26  ;;  %v918_v3 = vadd.f32 %v917_v45, %v916_v59  ;;  %v137_v59 = vld [vmem:[#allocation2 + $0x1b0] sm:$0xff] }
  0xef   :  { %850 = vst.msk [vmem:[%s2519_s2 + $0x60] sm:$0xff] %vm18_vm2, %v2015_v51  ;;  %v1047_v22 = vmul.f32 %v2015_v51, %v2015_v51  ;;  %v925_v29 = vsel %vm18_vm2, %v2015_v51, 0.0  ;;  %v114_v51 = vld [vmem:[#allocation2 + $0xf8] sm:$0xff] }
  0xf0   :  { %736 = vst.msk [vmem:[#allocation2 + $0xe8] sm:$0xff] %vm18_vm2, %v671_v16  ;;  %v1113_v60 = vadd.f32 %v1112_v33, %v1111_v43  ;;  %v2060_v2 = vld [vmem:[#allocation2 + $0xe0] sm:$0xff]  ;;  %v920_v16 = vadd.f32 %v919_v28, %v918_v3 }
  0xf1   :  { %760 = vst.msk [vmem:[#allocation2 + $0x1a8] sm:$0xff] %vm18_vm2, %v695_v39  ;;  %v1122_v28 = vsel %vm18_vm2, %v1047_v22, 0.0 }
  0xf2   :  { %v1115_v5 = vadd.f32 %v1114_v12, %v1113_v60  ;;  %866 = vst.msk [vmem:[%s2519_s2 + $0xe0] sm:$0xff] %vm18_vm2, %v2060_v2  ;;  %v922_v26 = vadd.f32 %v921_v46, %v920_v16  ;;  %v619_v60 = vpop.f32.mrf.mxu3 }
  0xf3   :  { %v517_v31 = vpop.f32.mrf.mxu0  ;;  %v557_v53 = vpop.f32.mrf.mxu1 }
  0xf4   :  { %v656_v35 = vadd.f32 %v517_v31, %v97_v50  ;;  %v1117_v50 = vadd.f32 %v1116_v0, %v1115_v5  ;;  %v924_v43 = vadd.f32 %v923_v20, %v922_v26  ;;  %v672_v48 = vadd.f32 %v557_v53, %v113_v62  ;;  %v126_v5 = vld [vmem:[#allocation2 + $0x158] sm:$0xff] }
  0xf5   :  { %v787_v41 = vld [vmem:[#allocation2 + $0x68] sm:$0xff]  ;;  %v696_v53 = vadd.f32 %v617_v63, %v137_v59  ;;  %v685_v16 = vadd.f32 %v589_v40, %v126_v5  ;;  %v1051_v26 = vmul.f32 %v1740_v4, %v1740_v4  ;;  %v1052_v40 = vmul.f32 %v1749_v8, %v1749_v8 }
  0xf6   :  { %851 = vst.msk [vmem:[%s2519_s2 + $0x68] sm:$0xff] %vm18_vm2, %v787_v41  ;;  %v1119_v30 = vadd.f32 %v1118_v13, %v1117_v50  ;;  %v1048_v31 = vmul.f32 %v787_v41, %v787_v41  ;;  %v927_v0 = vsel %vm18_vm2, %v787_v41, 0.0  ;;  %v926_v46 = vadd.f32 %v925_v29, %v924_v43 }
  0xf7   :  { %721 = vst.msk [vmem:[#allocation2 + $0x70] sm:$0xff] %vm18_vm2, %v656_v35  ;;  %v2085_v6 = vld [vmem:[#allocation2 + $0xe8] sm:$0xff]  ;;  %v125_v35 = vld [vmem:[#allocation2 + $0x150] sm:$0xff] }
  0xf8   :  { %867 = vst.msk [vmem:[%s2519_s2 + $0xe8] sm:$0xff] %vm18_vm2, %v2085_v6  ;;  %v1121_v45 = vadd.f32 %v1120_v21, %v1119_v30  ;;  %v2111_v12 = vld [vmem:[#allocation2 + $0x1a8] sm:$0xff]  ;;  %v684_v3 = vadd.f32 %v587_v56, %v125_v35  ;;  %v1124_v50 = vsel %vm18_vm2, %v1048_v31, 0.0  ;;  %v928_v20 = vadd.f32 %v927_v0, %v926_v46  ;;  %v592_v31 = vpop.f32.mrf.mxu2 }
  0xf9   :  { %891 = vst.msk [vmem:[%s2519_s2 + $0x1a8] sm:$0xff] %vm18_vm2, %v2111_v12  ;;  %v937_v46 = vsel %vm18_vm2, %v1758_v14, 0.0 }
  0xfa   :  { %737 = vst.msk [vmem:[#allocation2 + $0xf0] sm:$0xff] %vm18_vm2, %v672_v48  ;;  %v622_v35 = vpop.f32.mrf.mxu3 }
  0xfb   :  { %v519_v17 = vpop.f32.mrf.mxu0  ;;  %v559_v39 = vpop.f32.mrf.mxu1  ;;  %749 = vst.msk [vmem:[#allocation2 + $0x150] sm:$0xff] %vm18_vm2, %v684_v3 }
  0xfc   :  { %v657_v23 = vadd.f32 %v519_v17, %v98_v7  ;;  %v138_v7 = vld [vmem:[#allocation2 + $0x1b8] sm:$0xff]  ;;  %v673_v13 = vadd.f32 %v559_v39, %v114_v51  ;;  %v1123_v17 = vadd.f32 %v1122_v28, %v1121_v45  ;;  %761 = vst.msk [vmem:[#allocation2 + $0x1b0] sm:$0xff] %vm18_vm2, %v696_v53  ;;  %v933_v39 = vsel %vm18_vm2, %v1740_v4, 0.0 }
  0xfd   :  { %v697_v21 = vadd.f32 %v619_v60, %v138_v7  ;;  %750 = vst.msk [vmem:[#allocation2 + $0x158] sm:$0xff] %vm18_vm2, %v685_v16  ;;  %v1130_v60 = vsel %vm18_vm2, %v1051_v26, 0.0  ;;  %v935_v4 = vsel %vm18_vm2, %v1749_v8, 0.0  ;;  %v1053_v28 = vmul.f32 %v1758_v14, %v1758_v14 }
  0xfe   :  { %v788_v33 = vld [vmem:[#allocation2 + $0x70] sm:$0xff]  ;;  %722 = vst.msk [vmem:[#allocation2 + $0x78] sm:$0xff] %vm18_vm2, %v657_v23  ;;  %v1125_v22 = vadd.f32 %v1124_v50, %v1123_v17  ;;  %v1132_v7 = vsel %vm18_vm2, %v1052_v40, 0.0  ;;  %v939_v14 = vsel %vm18_vm2, %v1781_v38, 0.0 }
  0xff   :  { %852 = vst.msk [vmem:[%s2519_s2 + $0x70] sm:$0xff] %vm18_vm2, %v788_v33  ;;  %v1049_v1 = vmul.f32 %v788_v33, %v788_v33  ;;  %v929_v41 = vsel %vm18_vm2, %v788_v33, 0.0  ;;  %v1134_v50 = vsel %vm18_vm2, %v1053_v28, 0.0 }
 0x100   :  { %738 = vst.msk [vmem:[#allocation2 + $0xf8] sm:$0xff] %vm18_vm2, %v673_v13  ;;  %v930_v23 = vadd.f32 %v929_v41, %v928_v20  ;;  %v1055_v41 = vmul.f32 %v1798_v47, %v1798_v47  ;;  %v127_v20 = vld [vmem:[#allocation2 + $0x160] sm:$0xff] }
 0x101   :  { %v1126_v56 = vsel %vm18_vm2, %v1049_v1, 0.0  ;;  %762 = vst.msk [vmem:[#allocation2 + $0x1b8] sm:$0xff] %vm18_vm2, %v697_v21  ;;  %v2141_v45 = vld [vmem:[#allocation2 + $0xf0] sm:$0xff]  ;;  %v1054_v1 = vmul.f32 %v1781_v38, %v1781_v38  ;;  %v139_v21 = vld [vmem:[#allocation2 + $0x1c0] sm:$0xff]  ;;  %v128_v38 = vld [vmem:[#allocation2 + $0x168] sm:$0xff] }
 0x102   :  { %v1127_v33 = vadd.f32 %v1126_v56, %v1125_v22  ;;  %868 = vst.msk [vmem:[%s2519_s2 + $0xf0] sm:$0xff] %vm18_vm2, %v2141_v45  ;;  %v2148_v51 = vld [vmem:[#allocation2 + $0x150] sm:$0xff]  ;;  %v594_v56 = vpop.f32.mrf.mxu2 }
 0x103   :  { %880 = vst.msk [vmem:[%s2519_s2 + $0x150] sm:$0xff] %vm18_vm2, %v2148_v51  ;;  %v2160_v0 = vld [vmem:[#allocation2 + $0x1b0] sm:$0xff]  ;;  %v1136_v22 = vsel %vm18_vm2, %v1054_v1, 0.0  ;;  %v687_v40 = vadd.f32 %v594_v56, %v128_v38  ;;  %v1062_v38 = vmul.f32 %v1990_v34, %v1990_v34 }
 0x104   :  { %892 = vst.msk [vmem:[%s2519_s2 + $0x1b0] sm:$0xff] %vm18_vm2, %v2160_v0  ;;  %v2179_v53 = vld [vmem:[#allocation2 + $0x158] sm:$0xff] }
 0x105   :  { %v789_v63 = vld [vmem:[#allocation2 + $0x78] sm:$0xff]  ;;  %881 = vst.msk [vmem:[%s2519_s2 + $0x158] sm:$0xff] %vm18_vm2, %v2179_v53 }
 0x106   :  { %853 = vst.msk [vmem:[%s2519_s2 + $0x78] sm:$0xff] %vm18_vm2, %v789_v63  ;;  %v931_v30 = vsel %vm18_vm2, %v789_v63, 0.0  ;;  %v1050_v29 = vmul.f32 %v789_v63, %v789_v63 }
 0x107   :  { %v932_v62 = vadd.f32 %v931_v30, %v930_v23  ;;  %v2169_v8 = vld [vmem:[#allocation2 + $0xf8] sm:$0xff]  ;;  %v941_v23 = vsel %vm18_vm2, %v1798_v47, 0.0  ;;  %v140_v30 = vld [vmem:[#allocation2 + $0x1c8] sm:$0xff]  ;;  %752 = vst.msk [vmem:[#allocation2 + $0x168] sm:$0xff] %vm18_vm2, %v687_v40 }
 0x108   :  { %v1128_v43 = vsel %vm18_vm2, %v1050_v29, 0.0  ;;  %869 = vst.msk [vmem:[%s2519_s2 + $0xf8] sm:$0xff] %vm18_vm2, %v2169_v8  ;;  %v2191_v17 = vld [vmem:[#allocation2 + $0x1b8] sm:$0xff]  ;;  %v624_v29 = vpop.f32.mrf.mxu3 }
 0x109   :  { %v934_v48 = vadd.f32 %v933_v39, %v932_v62  ;;  %v1129_v59 = vadd.f32 %v1128_v43, %v1127_v33  ;;  %893 = vst.msk [vmem:[%s2519_s2 + $0x1b8] sm:$0xff] %vm18_vm2, %v2191_v17  ;;  %v1056_v33 = vmul.f32 %v1821_v54, %v1821_v54  ;;  %v686_v62 = vadd.f32 %v592_v31, %v127_v20 }
 0x10a   :  { %v698_v39 = vadd.f32 %v622_v35, %v139_v21  ;;  %v699_v47 = vadd.f32 %v624_v29, %v140_v30  ;;  %v945_v35 = vsel %vm18_vm2, %v1847_v9, 0.0  ;;  %v949_v20 = vsel %vm18_vm2, %v1896_v42, 0.0 }
 0x10b   :  { %v936_v3 = vadd.f32 %v935_v4, %v934_v48  ;;  %v1131_v5 = vadd.f32 %v1130_v60, %v1129_v59  ;;  %v1138_v59 = vsel %vm18_vm2, %v1055_v41, 0.0  ;;  %v943_v60 = vsel %vm18_vm2, %v1821_v54, 0.0  ;;  %751 = vst.msk [vmem:[#allocation2 + $0x160] sm:$0xff] %vm18_vm2, %v686_v62 }
 0x10c   :  { %v1057_v4 = vmul.f32 %v1847_v9, %v1847_v9  ;;  %763 = vst.msk [vmem:[#allocation2 + $0x1c0] sm:$0xff] %vm18_vm2, %v698_v39  ;;  %v1140_v31 = vsel %vm18_vm2, %v1056_v33, 0.0  ;;  %v1060_v21 = vmul.f32 %v1926_v57, %v1926_v57  ;;  %v953_v62 = vsel %vm18_vm2, %v1960_v25, 0.0 }
 0x10d   :  { %v938_v13 = vadd.f32 %v937_v46, %v936_v3  ;;  %v1133_v16 = vadd.f32 %v1132_v7, %v1131_v5  ;;  %v1058_v3 = vmul.f32 %v1869_v18, %v1869_v18  ;;  %764 = vst.msk [vmem:[#allocation2 + $0x1c8] sm:$0xff] %vm18_vm2, %v699_v47  ;;  %v947_v46 = vsel %vm18_vm2, %v1869_v18, 0.0 }
 0x10e   :  { %v1142_v7 = vsel %vm18_vm2, %v1057_v4, 0.0  ;;  %v1148_v33 = vsel %vm18_vm2, %v1060_v21, 0.0  ;;  %v1152_v47 = vsel %vm18_vm2, %v1062_v38, 0.0  ;;  %v141_v4 = vld [vmem:[#allocation2 + $0x1d0] sm:$0xff] }
 0x10f   :  { %v940_v63 = vadd.f32 %v939_v14, %v938_v13  ;;  %v1135_v26 = vadd.f32 %v1134_v50, %v1133_v16  ;;  %v1059_v13 = vmul.f32 %v1896_v42, %v1896_v42  ;;  %v597_v16 = vpop.f32.mrf.mxu2  ;;  %v1144_v41 = vsel %vm18_vm2, %v1058_v3, 0.0 }
 0x110   :  { %v627_v14 = vpop.f32.mrf.mxu3 }
 0x111   :  { %v942_v43 = vadd.f32 %v941_v23, %v940_v63  ;;  %v1137_v48 = vadd.f32 %v1136_v22, %v1135_v26  ;;  %v1146_v18 = vsel %vm18_vm2, %v1059_v13, 0.0  ;;  %v951_v63 = vsel %vm18_vm2, %v1926_v57, 0.0  ;;  %v2248_v57 = vld [vmem:[#allocation2 + $0x168] sm:$0xff] }
 0x112   :  { %v2227_v23 = vld [vmem:[#allocation2 + $0x160] sm:$0xff]  ;;  %v1061_v26 = vmul.f32 %v1960_v25, %v1960_v25  ;;  %883 = vst.msk [vmem:[%s2519_s2 + $0x168] sm:$0xff] %vm18_vm2, %v2248_v57  ;;  %v955_v25 = vsel %vm18_vm2, %v1990_v34, 0.0  ;;  %v1064_v34 = vmul.f32 %v2085_v6, %v2085_v6 }
 0x113   :  { %v944_v28 = vadd.f32 %v943_v60, %v942_v43  ;;  %v1139_v1 = vadd.f32 %v1138_v59, %v1137_v48  ;;  %882 = vst.msk [vmem:[%s2519_s2 + $0x160] sm:$0xff] %vm18_vm2, %v2227_v23  ;;  %v2241_v42 = vld [vmem:[#allocation2 + $0x1c0] sm:$0xff]  ;;  %v1063_v59 = vmul.f32 %v2060_v2, %v2060_v2  ;;  %v129_v60 = vld [vmem:[#allocation2 + $0x170] sm:$0xff] }
 0x114   :  { %894 = vst.msk [vmem:[%s2519_s2 + $0x1c0] sm:$0xff] %vm18_vm2, %v2241_v42  ;;  %v2258_v39 = vld [vmem:[#allocation2 + $0x1c8] sm:$0xff]  ;;  %v1150_v48 = vsel %vm18_vm2, %v1061_v26, 0.0  ;;  %v688_v3 = vadd.f32 %v597_v16, %v129_v60  ;;  %v959_v16 = vsel %vm18_vm2, %v2085_v6, 0.0  ;;  %v1067_v26 = vmul.f32 %v1806_v49, %v1806_v49 }
 0x115   :  { %v1141_v54 = vadd.f32 %v1140_v31, %v1139_v1  ;;  %v946_v5 = vadd.f32 %v945_v35, %v944_v28  ;;  %895 = vst.msk [vmem:[%s2519_s2 + $0x1c8] sm:$0xff] %vm18_vm2, %v2258_v39  ;;  %v130_v28 = vld [vmem:[#allocation2 + $0x178] sm:$0xff]  ;;  %v1069_v60 = vmul.f32 %v1854_v11, %v1854_v11 }
 0x116   :  { %753 = vst.msk [vmem:[#allocation2 + $0x170] sm:$0xff] %vm18_vm2, %v688_v3  ;;  %v1070_v3 = vmul.f32 %v1876_v19, %v1876_v19 }
 0x117   :  { %v948_v50 = vadd.f32 %v947_v46, %v946_v5  ;;  %v1143_v9 = vadd.f32 %v1142_v7, %v1141_v54  ;;  %v599_v1 = vpop.f32.mrf.mxu2  ;;  %v700_v54 = vadd.f32 %v627_v14, %v141_v4  ;;  %v142_v5 = vld [vmem:[#allocation2 + $0x1d8] sm:$0xff]  ;;  %v957_v46 = vsel %vm18_vm2, %v2060_v2, 0.0 }
 0x118   :  { %v629_v7 = vpop.f32.mrf.mxu3  ;;  %v689_v13 = vadd.f32 %v599_v1, %v130_v28  ;;  %v1065_v14 = vmul.f32 %v2141_v45, %v2141_v45 }
 0x119   :  { %v950_v56 = vadd.f32 %v949_v20, %v948_v50  ;;  %v1145_v22 = vadd.f32 %v1144_v41, %v1143_v9  ;;  %v701_v50 = vadd.f32 %v629_v7, %v142_v5  ;;  %v1154_v20 = vsel %vm18_vm2, %v1063_v59, 0.0  ;;  %765 = vst.msk [vmem:[#allocation2 + $0x1d0] sm:$0xff] %vm18_vm2, %v700_v54 }
 0x11a   :  { %754 = vst.msk [vmem:[#allocation2 + $0x178] sm:$0xff] %vm18_vm2, %v689_v13  ;;  %v1158_v38 = vsel %vm18_vm2, %v1065_v14, 0.0  ;;  %v1162_v59 = vsel %vm18_vm2, %v1067_v26, 0.0  ;;  %v1166_v7 = vsel %vm18_vm2, %v1069_v60, 0.0  ;;  %v144_v13 = vld [vmem:[#allocation2 + $0x1e8] sm:$0xff]  ;;  %v973_v14 = vsel %vm18_vm2, %v1904_v44, 0.0 }
 0x11b   :  { %v952_v30 = vadd.f32 %v951_v63, %v950_v56  ;;  %v1147_v29 = vadd.f32 %v1146_v18, %v1145_v22  ;;  %v1156_v56 = vsel %vm18_vm2, %v1064_v34, 0.0  ;;  %v961_v22 = vsel %vm18_vm2, %v2141_v45, 0.0  ;;  %766 = vst.msk [vmem:[#allocation2 + $0x1d8] sm:$0xff] %vm18_vm2, %v701_v50 }
 0x11c   :  { %v1066_v18 = vmul.f32 %v2169_v8, %v2169_v8  ;;  %v965_v45 = vsel %vm18_vm2, %v1806_v49, 0.0  ;;  %v967_v49 = vsel %vm18_vm2, %v1828_v55, 0.0  ;;  %v1071_v34 = vmul.f32 %v1904_v44, %v1904_v44 }
 0x11d   :  { %v954_v40 = vadd.f32 %v953_v62, %v952_v30  ;;  %v1149_v43 = vadd.f32 %v1148_v33, %v1147_v29  ;;  %v963_v30 = vsel %vm18_vm2, %v2169_v8, 0.0 }
 0x11f   :  { %v956_v31 = vadd.f32 %v955_v25, %v954_v40  ;;  %v1151_v35 = vadd.f32 %v1150_v48, %v1149_v43  ;;  %v1068_v40 = vmul.f32 %v1828_v55, %v1828_v55  ;;  %v1160_v43 = vsel %vm18_vm2, %v1066_v18, 0.0  ;;  %v2299_v48 = vld [vmem:[#allocation2 + $0x170] sm:$0xff] }
 0x120   :  { %v632_v62 = vpop.f32.mrf.mxu3  ;;  %884 = vst.msk [vmem:[%s2519_s2 + $0x170] sm:$0xff] %vm18_vm2, %v2299_v48  ;;  %v2306_v8 = vld [vmem:[#allocation2 + $0x1d0] sm:$0xff]  ;;  %v975_v18 = vsel %vm18_vm2, %v1933_v58, 0.0 }
 0x121   :  { %v958_v9 = vadd.f32 %v957_v46, %v956_v31  ;;  %v1153_v41 = vadd.f32 %v1152_v47, %v1151_v35  ;;  %896 = vst.msk [vmem:[%s2519_s2 + $0x1d0] sm:$0xff] %vm18_vm2, %v2306_v8  ;;  %v2318_v4 = vld [vmem:[#allocation2 + $0x178] sm:$0xff]  ;;  %v1164_v31 = vsel %vm18_vm2, %v1068_v40, 0.0  ;;  %v969_v35 = vsel %vm18_vm2, %v1854_v11, 0.0  ;;  %v143_v11 = vld [vmem:[#allocation2 + $0x1e0] sm:$0xff] }
 0x122   :  { %885 = vst.msk [vmem:[%s2519_s2 + $0x178] sm:$0xff] %vm18_vm2, %v2318_v4  ;;  %v2325_v55 = vld [vmem:[#allocation2 + $0x1d8] sm:$0xff]  ;;  %v971_v46 = vsel %vm18_vm2, %v1876_v19, 0.0 }
 0x123   :  { %v1155_v2 = vadd.f32 %v1154_v20, %v1153_v41  ;;  %v960_v21 = vadd.f32 %v959_v16, %v958_v9  ;;  %897 = vst.msk [vmem:[%s2519_s2 + $0x1d8] sm:$0xff] %vm18_vm2, %v2325_v55  ;;  %v702_v41 = vadd.f32 %v632_v62, %v143_v11  ;;  %v1168_v16 = vsel %vm18_vm2, %v1070_v3, 0.0 }
 0x124   :  { %v987_v11 = vsel %vm18_vm2, %v2179_v53, 0.0 }
 0x125   :  { %v1157_v6 = vadd.f32 %v1156_v56, %v1155_v2  ;;  %v962_v63 = vadd.f32 %v961_v22, %v960_v21  ;;  %v1072_v2 = vmul.f32 %v1933_v58, %v1933_v58  ;;  %767 = vst.msk [vmem:[#allocation2 + $0x1e0] sm:$0xff] %vm18_vm2, %v702_v41  ;;  %v1170_v22 = vsel %vm18_vm2, %v1071_v34, 0.0 }
 0x126   :  { %v979_v58 = vsel %vm18_vm2, %v1997_v36, 0.0 }
 0x127   :  { %v1159_v29 = vadd.f32 %v1158_v38, %v1157_v6  ;;  %v964_v33 = vadd.f32 %v963_v30, %v962_v63  ;;  %v1073_v6 = vmul.f32 %v1968_v27, %v1968_v27  ;;  %v1172_v26 = vsel %vm18_vm2, %v1072_v2, 0.0 }
 0x128   :  { %v634_v20 = vpop.f32.mrf.mxu3  ;;  %v977_v38 = vsel %vm18_vm2, %v1968_v27, 0.0  ;;  %v1074_v30 = vmul.f32 %v1997_v36, %v1997_v36  ;;  %v981_v27 = vsel %vm18_vm2, %v2068_v10, 0.0  ;;  %v989_v2 = vsel %vm18_vm2, %v2227_v23, 0.0 }
 0x129   :  { %v966_v25 = vadd.f32 %v965_v45, %v964_v33  ;;  %v1161_v47 = vadd.f32 %v1160_v43, %v1159_v29  ;;  %v703_v21 = vadd.f32 %v634_v20, %v144_v13  ;;  %v1174_v62 = vsel %vm18_vm2, %v1073_v6, 0.0 }
 0x12a   :  { %v1075_v45 = vmul.f32 %v2068_v10, %v2068_v10  ;;  %v983_v10 = vsel %vm18_vm2, %v2097_v24, 0.0  ;;  %v1079_v13 = vmul.f32 %v2227_v23, %v2227_v23  ;;  %v1081_v6 = vmul.f32 %v2299_v48, %v2299_v48 }
 0x12b   :  { %v968_v28 = vadd.f32 %v967_v49, %v966_v25  ;;  %v1163_v1 = vadd.f32 %v1162_v59, %v1161_v47  ;;  %768 = vst.msk [vmem:[#allocation2 + $0x1e8] sm:$0xff] %vm18_vm2, %v703_v21  ;;  %v1176_v47 = vsel %vm18_vm2, %v1074_v30, 0.0  ;;  %v1076_v59 = vmul.f32 %v2097_v24, %v2097_v24 }
 0x12c   :  { %v2369_v49 = vld [vmem:[#allocation2 + $0x1e0] sm:$0xff]  ;;  %v1080_v21 = vmul.f32 %v2248_v57, %v2248_v57 }
 0x12d   :  { %v970_v54 = vadd.f32 %v969_v35, %v968_v28  ;;  %v1165_v5 = vadd.f32 %v1164_v31, %v1163_v1  ;;  %898 = vst.msk [vmem:[%s2519_s2 + $0x1e0] sm:$0xff] %vm18_vm2, %v2369_v49  ;;  %v1178_v1 = vsel %vm18_vm2, %v1075_v45, 0.0  ;;  %v1077_v31 = vmul.f32 %v2148_v51, %v2148_v51 }
 0x12f   :  { %v972_v50 = vadd.f32 %v971_v46, %v970_v54  ;;  %v1167_v9 = vadd.f32 %v1166_v7, %v1165_v5  ;;  %v1180_v54 = vsel %vm18_vm2, %v1076_v59, 0.0  ;;  %v985_v5 = vsel %vm18_vm2, %v2148_v51, 0.0 }
 0x130   :  { %v637_v25 = vpop.f32.mrf.mxu3  ;;  %v1078_v7 = vmul.f32 %v2179_v53, %v2179_v53  ;;  %v1182_v34 = vsel %vm18_vm2, %v1077_v31, 0.0  ;;  %v1001_v31 = vsel %vm18_vm2, %v1983_v32, 0.0 }
 0x131   :  { %v974_v56 = vadd.f32 %v973_v14, %v972_v50  ;;  %v1169_v19 = vadd.f32 %v1168_v16, %v1167_v9  ;;  %v145_v50 = vld [vmem:[#allocation2 + $0x1f0] sm:$0xff]  ;;  %v146_v9 = vld [vmem:[#allocation2 + $0x1f8] sm:$0xff] }
 0x132   :  { %v2376_v36 = vld [vmem:[#allocation2 + $0x1e8] sm:$0xff]  ;;  %v704_v16 = vadd.f32 %v637_v25, %v145_v50  ;;  %v1184_v51 = vsel %vm18_vm2, %v1078_v7, 0.0  ;;  %v1087_v7 = vmul.f32 %v2078_v15, %v2078_v15 }
 0x133   :  { %v1171_v63 = vadd.f32 %v1170_v22, %v1169_v19  ;;  %v976_v44 = vadd.f32 %v975_v18, %v974_v56  ;;  %899 = vst.msk [vmem:[%s2519_s2 + $0x1e8] sm:$0xff] %vm18_vm2, %v2376_v36  ;;  %v1186_v22 = vsel %vm18_vm2, %v1079_v13, 0.0  ;;  %v991_v18 = vsel %vm18_vm2, %v2248_v57, 0.0 }
 0x134   :  { %769 = vst.msk [vmem:[#allocation2 + $0x1f0] sm:$0xff] %vm18_vm2, %v704_v16  ;;  %v1083_v57 = vmul.f32 %v1919_v52, %v1919_v52 }
 0x135   :  { %v978_v29 = vadd.f32 %v977_v38, %v976_v44  ;;  %v1173_v33 = vadd.f32 %v1172_v26, %v1171_v63  ;;  %v1188_v44 = vsel %vm18_vm2, %v1080_v21, 0.0  ;;  %v993_v26 = vsel %vm18_vm2, %v2299_v48, 0.0 }
 0x136   :  { %v1082_v38 = vmul.f32 %v2318_v4, %v2318_v4  ;;  %v1084_v48 = vmul.f32 %v1940_v61, %v1940_v61  ;;  %v1194_v59 = vsel %vm18_vm2, %v1083_v57, 0.0  ;;  %v1094_v57 = vmul.f32 %v2325_v55, %v2325_v55 }
 0x137   :  { %v980_v40 = vadd.f32 %v979_v58, %v978_v29  ;;  %v1175_v43 = vadd.f32 %v1174_v62, %v1173_v33  ;;  %v1190_v33 = vsel %vm18_vm2, %v1081_v6, 0.0  ;;  %v995_v62 = vsel %vm18_vm2, %v2318_v4, 0.0 }
 0x138   :  { %v639_v14 = vpop.f32.mrf.mxu3  ;;  %v1092_v6 = vmul.f32 %v2258_v39, %v2258_v39 }
 0x139   :  { %v982_v60 = vadd.f32 %v981_v27, %v980_v40  ;;  %v1177_v28 = vadd.f32 %v1176_v47, %v1175_v43  ;;  %v705_v56 = vadd.f32 %v639_v14, %v146_v9  ;;  %v997_v40 = vsel %vm18_vm2, %v1919_v52, 0.0 }
 0x13a   :  { %v1192_v43 = vsel %vm18_vm2, %v1082_v38, 0.0  ;;  %v999_v52 = vsel %vm18_vm2, %v1940_v61, 0.0  ;;  %v1202_v9 = vsel %vm18_vm2, %v1087_v7, 0.0 }
 0x13b   :  { %v984_v35 = vadd.f32 %v983_v10, %v982_v60  ;;  %v1179_v3 = vadd.f32 %v1178_v1, %v1177_v28  ;;  %770 = vst.msk [vmem:[#allocation2 + $0x1f8] sm:$0xff] %vm18_vm2, %v705_v56  ;;  %v2425_v25 = vld [vmem:[#allocation2 + $0x1f0] sm:$0xff]  ;;  %v1085_v60 = vmul.f32 %v1983_v32, %v1983_v32  ;;  %v1196_v10 = vsel %vm18_vm2, %v1084_v48, 0.0 }
 0x13c   :  { %900 = vst.msk [vmem:[%s2519_s2 + $0x1f0] sm:$0xff] %vm18_vm2, %v2425_v25  ;;  %v1005_v32 = vsel %vm18_vm2, %v2078_v15, 0.0  ;;  %v1009_v15 = vsel %vm18_vm2, %v2160_v0, 0.0 }
 0x13d   :  { %v986_v24 = vadd.f32 %v985_v5, %v984_v35  ;;  %v1181_v46 = vadd.f32 %v1180_v54, %v1179_v3  ;;  %v1086_v35 = vmul.f32 %v2004_v37, %v2004_v37  ;;  %v1198_v54 = vsel %vm18_vm2, %v1085_v60, 0.0 }
 0x13e   :  { %v1003_v5 = vsel %vm18_vm2, %v2004_v37, 0.0  ;;  %v1007_v37 = vsel %vm18_vm2, %v2111_v12, 0.0  ;;  %v1097_v60 = vmul.f32 %v2425_v25, %v2425_v25 }
 0x13f   :  { %v988_v41 = vadd.f32 %v987_v11, %v986_v24  ;;  %v1183_v20 = vadd.f32 %v1182_v34, %v1181_v46  ;;  %v1200_v34 = vsel %vm18_vm2, %v1086_v35, 0.0  ;;  %v1088_v11 = vmul.f32 %v2111_v12, %v2111_v12 }
 0x140   :  { %v1011_v12 = vsel %vm18_vm2, %v2191_v17, 0.0 }
 0x141   :  { %v1185_v19 = vadd.f32 %v1184_v51, %v1183_v20  ;;  %v990_v53 = vadd.f32 %v989_v2, %v988_v41  ;;  %v1089_v41 = vmul.f32 %v2160_v0, %v2160_v0  ;;  %v1204_v14 = vsel %vm18_vm2, %v1088_v11, 0.0 }
 0x142   :  { %v2432_v4 = vld [vmem:[#allocation2 + $0x1f8] sm:$0xff]  ;;  %v1090_v51 = vmul.f32 %v2191_v17, %v2191_v17  ;;  %v1013_v0 = vsel %vm18_vm2, %v2241_v42, 0.0  ;;  %v1015_v17 = vsel %vm18_vm2, %v2258_v39, 0.0  ;;  %v1019_v39 = vsel %vm18_vm2, %v2325_v55, 0.0 }
 0x143   :  { %v1187_v63 = vadd.f32 %v1186_v22, %v1185_v19  ;;  %v992_v23 = vadd.f32 %v991_v18, %v990_v53  ;;  %901 = vst.msk [vmem:[%s2519_s2 + $0x1f8] sm:$0xff] %vm18_vm2, %v2432_v4  ;;  %v1206_v56 = vsel %vm18_vm2, %v1089_v41, 0.0  ;;  %v1091_v19 = vmul.f32 %v2241_v42, %v2241_v42 }
 0x144   :  { %v1208_v18 = vsel %vm18_vm2, %v1090_v51, 0.0  ;;  %v1017_v42 = vsel %vm18_vm2, %v2306_v8, 0.0  ;;  %v1023_v55 = vsel %vm18_vm2, %v2376_v36, 0.0  ;;  %v1232_v11 = vlaneseq }
 0x145   :  { %v1189_v30 = vadd.f32 %v1188_v44, %v1187_v63  ;;  %v994_v29 = vadd.f32 %v993_v26, %v992_v23  ;;  %v1210_v44 = vsel %vm18_vm2, %v1091_v19, 0.0  ;;  %v1093_v26 = vmul.f32 %v2306_v8, %v2306_v8 }
 0x146   :  { %v1021_v8 = vsel %vm18_vm2, %v2369_v49, 0.0 }
 0x147   :  { %v1191_v58 = vadd.f32 %v1190_v33, %v1189_v30  ;;  %v996_v45 = vadd.f32 %v995_v62, %v994_v29  ;;  %v1212_v29 = vsel %vm18_vm2, %v1092_v6, 0.0 }
 0x149   :  { %v998_v47 = vadd.f32 %v997_v40, %v996_v45  ;;  %v1193_v27 = vadd.f32 %v1192_v43, %v1191_v58  ;;  %v1214_v58 = vsel %vm18_vm2, %v1093_v26, 0.0  ;;  %v1095_v45 = vmul.f32 %v2369_v49, %v2369_v49 }
 0x14a   :  { %v1216_v43 = vsel %vm18_vm2, %v1094_v57, 0.0  ;;  %v1025_v49 = vsel %vm18_vm2, %v2425_v25, 0.0 }
 0x14b   :  { %v1000_v28 = vadd.f32 %v999_v52, %v998_v47  ;;  %v1195_v1 = vadd.f32 %v1194_v59, %v1193_v27  ;;  %v1096_v47 = vmul.f32 %v2376_v36, %v2376_v36  ;;  %v1218_v52 = vsel %vm18_vm2, %v1095_v45, 0.0 }
 0x14c   :  { %v1027_v36 = vsel %vm18_vm2, %v2432_v4, 0.0 }
 0x14d   :  { %v1002_v61 = vadd.f32 %v1001_v31, %v1000_v28  ;;  %v1197_v3 = vadd.f32 %v1196_v10, %v1195_v1  ;;  %v1220_v10 = vsel %vm18_vm2, %v1096_v47, 0.0  ;;  %v1098_v31 = vmul.f32 %v2432_v4, %v2432_v4 }
 0x14f   :  { %v1004_v24 = vadd.f32 %v1003_v5, %v1002_v61  ;;  %v1199_v46 = vadd.f32 %v1198_v54, %v1197_v3  ;;  %v1222_v3 = vsel %vm18_vm2, %v1097_v60, 0.0  ;;  %v1224_v7 = vsel %vm18_vm2, %v1098_v31, 0.0 }
 0x151   :  { %v1006_v13 = vadd.f32 %v1005_v32, %v1004_v24  ;;  %v1201_v50 = vadd.f32 %v1200_v34, %v1199_v46 }
 0x153   :  { %v1203_v20 = vadd.f32 %v1202_v9, %v1201_v50  ;;  %v1008_v16 = vadd.f32 %v1007_v37, %v1006_v13  ;;  %v1233_v37 = vshrl.u32 %v1232_v11, 7 }
 0x155   :  { %v1010_v2 = vadd.f32 %v1009_v15, %v1008_v16  ;;  %v1205_v21 = vadd.f32 %v1204_v14, %v1203_v20  ;;  %vm1235_vm3 = vcmp.eq.s32.totalorder %v1233_v37, 1  ;;  %vm1234_vm4 = vcmp.eq.s32.totalorder %v1233_v37, 0 }
 0x157   :  { %v1012_v53 = vadd.f32 %v1011_v12, %v1010_v2  ;;  %v1207_v22 = vadd.f32 %v1206_v56, %v1205_v21 }
 0x159   :  { %v1014_v63 = vadd.f32 %v1013_v0, %v1012_v53  ;;  %v1209_v23 = vadd.f32 %v1208_v18, %v1207_v22 }
 0x15b   :  { %v1016_v38 = vadd.f32 %v1015_v17, %v1014_v63  ;;  %v1211_v30 = vadd.f32 %v1210_v44, %v1209_v23 }
 0x15d   :  { %v1018_v33 = vadd.f32 %v1017_v42, %v1016_v38  ;;  %v1213_v62 = vadd.f32 %v1212_v29, %v1211_v30 }
 0x15f   :  { %v1020_v40 = vadd.f32 %v1019_v39, %v1018_v33  ;;  %v1215_v48 = vadd.f32 %v1214_v58, %v1213_v62 }
 0x161   :  { %v1217_v27 = vadd.f32 %v1216_v43, %v1215_v48  ;;  %v1022_v59 = vadd.f32 %v1021_v8, %v1020_v40 }
 0x163   :  { %v1219_v28 = vadd.f32 %v1218_v52, %v1217_v27  ;;  %v1024_v1 = vadd.f32 %v1023_v55, %v1022_v59 }
 0x165   :  { %v1221_v35 = vadd.f32 %v1220_v10, %v1219_v28  ;;  %v1026_v61 = vadd.f32 %v1025_v49, %v1024_v1 }
 0x167   :  { %v1223_v54 = vadd.f32 %v1222_v3, %v1221_v35  ;;  %v1028_v5 = vadd.f32 %v1027_v36, %v1026_v61 }
 0x169   :  { %v1029_v24 = vrot.slane %v1028_v5, 4  ;;  %v1225_v46 = vadd.f32 %v1224_v7, %v1223_v54 }
 0x16b   :  { %v1030_v34 = vadd.f32 %v1029_v24, %v1028_v5  ;;  %v1226_v32 = vrot.slane %v1225_v46, 4 }
 0x16d   :  { %v1031_v25 = vrot.slane %v1030_v34, 2  ;;  %v1227_v13 = vadd.f32 %v1226_v32, %v1225_v46 }
 0x16f   :  { %v1032_v50 = vadd.f32 %v1031_v25, %v1030_v34  ;;  %v1228_v9 = vrot.slane %v1227_v13, 2 }
 0x171   :  { %v1229_v41 = vadd.f32 %v1228_v9, %v1227_v13  ;;  %v1033_v20 = vrot.slane %v1032_v50, 1 }
 0x173   :  { %v1230_v16 = vrot.slane %v1229_v41, 1  ;;  %v1034_v4 = vadd.f32 %v1033_v20, %v1032_v50 }
 0x175   :  { %v1231_v14 = vadd.f32 %v1230_v16, %v1229_v41 }
 0x177   :  { %v1236_v15 = vsel %vm1235_vm3, %v1231_v14, 0.0 }
 0x178   :  { %v1237_v51 = vsel %vm1234_vm4, %v1034_v4, %v1236_v15 }
 0x179   :  { %1238 = vst.msk [vmem:[%s2520_s3] sm:$0xff] %vm18_vm2, %v1237_v51 }

// kernel: bottleneck_forward.9
= control target key start
LH: loop header
LB: loop body
LE: loop exit
PB: predicated region body
PF: predicated region fallthrough
CT: control target
= control target key end

     0   :  { %vm152_vm0 = vcmask 1041408   ;;  %vm18_vm1 = vcmask 31744   ;;  %v446_v3 = vmov 0.0   ;;  %vm127_vm2 = vcmask 293888   ;;  %s682_s1 = inlined_call_operand.vmem [shape: bf16[36,4], index: 1, kind: input, shape index: {}]   ;;  %s683_s0 = inlined_call_operand.vmem [shape: bf16[128,36], index: 0, kind: input, shape index: {}]   ;;  %s684_s2 = inlined_call_operand.vmem [shape: f32[128,4], index: 2, kind: output, shape index: {0}]   ;;  %s685_s3 = inlined_call_operand.vmem [shape: f32[8,4], index: 3, kind: output, shape index: {1}]  }
   0x1   :  { %v71_v0 = vld [vmem:[%s682_s1 + $0x10] sm:$0x3]  ;;  %19 = vst.msk [vmem:[#allocation2] sm:$0xff] %vm18_vm1, %v446_v3  ;;  %v435_v5 = vld [vmem:[%s682_s1 + $0x8] sm:$0xff]  ;;  %v434_v6 = vld [vmem:[%s682_s1] sm:$0xff] }
   0x2   :  { %v121_v1 = vunpack.c.l.b16 %v71_v0  ;;  %20 = vst.msk [vmem:[#allocation2 + $0x8] sm:$0xff] %vm18_vm1, %v446_v3  ;;  %v426_v7 = vld [vmem:[%s683_s0] sm:$0xff]  ;;  %v428_v8 = vld [vmem:[%s683_s0 + $0x10] sm:$0xff]  ;;  %v427_v11 = vld [vmem:[%s683_s0 + $0x8] sm:$0xff] }
   0x3   :  { %21 = vst.msk [vmem:[#allocation2 + $0x10] sm:$0xff] %vm18_vm1, %v446_v3  ;;  %v430_v9 = vld [vmem:[%s683_s0 + $0x20] sm:$0xff]  ;;  %v432_v10 = vld [vmem:[%s683_s0 + $0x30] sm:$0xff]  ;;  %v429_v12 = vld [vmem:[%s683_s0 + $0x18] sm:$0xff] }
   0x4   :  { %v124_v2 = vpack.c.b16 %v121_v1, %v121_v1  ;;  %22 = vst.msk [vmem:[#allocation2 + $0x18] sm:$0xff] %vm18_vm1, %v446_v3  ;;  %v431_v13 = vld [vmem:[%s683_s0 + $0x28] sm:$0xff]  ;;  %v433_v14 = vld [vmem:[%s683_s0 + $0x38] sm:$0xff] }
   0x5   :  { %23 = vst.msk [vmem:[#allocation2 + $0x20] sm:$0xff] %vm18_vm1, %v446_v3 }
   0x6   :  { %v154_v4 = vsel %vm152_vm0, %v124_v2, 0  ;;  %24 = vst.msk [vmem:[#allocation2 + $0x28] sm:$0xff] %vm18_vm1, %v446_v3 }
   0x7   :  { %161 = vmatpush.bf16.msra.mxu0 %v154_v4  ;;  %436 = vmatpush.bf16.msra.mxu1 %v154_v4  ;;  %25 = vst.msk [vmem:[#allocation2 + $0x30] sm:$0xff] %vm18_vm1, %v446_v3 }
   0x8   :  { %437 = vmatpush.bf16.msra.mxu2 %v154_v4  ;;  %438 = vmatpush.bf16.msra.mxu3 %v154_v4  ;;  %26 = vst.msk [vmem:[#allocation2 + $0x38] sm:$0xff] %vm18_vm1, %v446_v3  ;;  %v35_v15 = vld [vmem:[#allocation2] sm:$0xff] }
   0x9   :  { %27 = vst.msk [vmem:[#allocation2 + $0x40] sm:$0xff] %vm18_vm1, %v446_v3  ;;  %v36_v22 = vld [vmem:[#allocation2 + $0x8] sm:$0xff] }
   0xa   :  { %28 = vst.msk [vmem:[#allocation2 + $0x48] sm:$0xff] %vm18_vm1, %v446_v3  ;;  %v37_v35 = vld [vmem:[#allocation2 + $0x10] sm:$0xff] }
   0xb   :  { %162 = vmatpush.bf16.msra.mxu0 %v435_v5  ;;  %439 = vmatpush.bf16.msra.mxu1 %v435_v5  ;;  %29 = vst.msk [vmem:[#allocation2 + $0x50] sm:$0xff] %vm18_vm1, %v446_v3  ;;  %v38_v52 = vld [vmem:[#allocation2 + $0x18] sm:$0xff] }
   0xc   :  { %440 = vmatpush.bf16.msra.mxu2 %v435_v5  ;;  %441 = vmatpush.bf16.msra.mxu3 %v435_v5  ;;  %30 = vst.msk [vmem:[#allocation2 + $0x58] sm:$0xff] %vm18_vm1, %v446_v3  ;;  %v39_v16 = vld [vmem:[#allocation2 + $0x20] sm:$0xff] }
   0xd   :  { %31 = vst.msk [vmem:[#allocation2 + $0x60] sm:$0xff] %vm18_vm1, %v446_v3  ;;  %v40_v23 = vld [vmem:[#allocation2 + $0x28] sm:$0xff] }
   0xe   :  { %32 = vst.msk [vmem:[#allocation2 + $0x68] sm:$0xff] %vm18_vm1, %v446_v3  ;;  %v41_v36 = vld [vmem:[#allocation2 + $0x30] sm:$0xff] }
   0xf   :  { %163 = vmatpush.bf16.msra.mxu0 %v434_v6  ;;  %442 = vmatpush.bf16.msra.mxu1 %v434_v6  ;;  %33 = vst.msk [vmem:[#allocation2 + $0x70] sm:$0xff] %vm18_vm1, %v446_v3  ;;  %v42_v53 = vld [vmem:[#allocation2 + $0x38] sm:$0xff] }
  0x10   :  { %443 = vmatpush.bf16.msra.mxu2 %v434_v6  ;;  %444 = vmatpush.bf16.msra.mxu3 %v434_v6  ;;  %34 = vst.msk [vmem:[#allocation2 + $0x78] sm:$0xff] %vm18_vm1, %v446_v3  ;;  %v43_v21 = vld [vmem:[#allocation2 + $0x40] sm:$0xff] }
  0x11   :  { %v44_v41 = vld [vmem:[#allocation2 + $0x48] sm:$0xff] }
  0x12   :  { %418 = vmatmul.msk.bf16.vlgmr.msra.gmra.mxu0 %vm127_vm2, %v426_v7  ;;  %420 = vmatmul.msk.bf16.vlgmr.msra.gmra.mxu1 %vm127_vm2, %v428_v8  ;;  %v45_v49 = vld [vmem:[#allocation2 + $0x50] sm:$0xff] }
  0x13   :  { %422 = vmatmul.msk.bf16.vlgmr.msra.gmra.mxu2 %vm127_vm2, %v430_v9  ;;  %424 = vmatmul.msk.bf16.vlgmr.msra.gmra.mxu3 %vm127_vm2, %v432_v10  ;;  %v46_v2 = vld [vmem:[#allocation2 + $0x58] sm:$0xff] }
  0x14   :  { %v47_v29 = vld [vmem:[#allocation2 + $0x60] sm:$0xff] }
  0x15   :  { %v48_v45 = vld [vmem:[#allocation2 + $0x68] sm:$0xff] }
  0x16   :  { %v49_v60 = vld [vmem:[#allocation2 + $0x70] sm:$0xff] }
  0x17   :  { %v50_v3 = vld [vmem:[#allocation2 + $0x78] sm:$0xff] }
  0x22   :  { %419 = vmatmul.msk.bf16.gmra.mxu0 %vm127_vm2, %v427_v11  ;;  %421 = vmatmul.msk.bf16.gmra.mxu1 %vm127_vm2, %v429_v12 }
  0x23   :  { %423 = vmatmul.msk.bf16.gmra.mxu2 %vm127_vm2, %v431_v13  ;;  %425 = vmatmul.msk.bf16.gmra.mxu3 %vm127_vm2, %v433_v14 }
  0x8f   :  { %v165_v17 = vpop.f32.mrf.mxu0  ;;  %v175_v18 = vpop.f32.mrf.mxu1 }
  0x90   :  { %v205_v19 = vadd.f32 %v165_v17, %v35_v15  ;;  %v209_v20 = vadd.f32 %v175_v18, %v39_v16 }
  0x92   :  { %222 = vst.msk [vmem:[#allocation2] sm:$0xff] %vm18_vm1, %v205_v19 }
  0x93   :  { %226 = vst.msk [vmem:[#allocation2 + $0x20] sm:$0xff] %vm18_vm1, %v209_v20 }
  0x96   :  { %v185_v24 = vpop.f32.mrf.mxu2  ;;  %v195_v25 = vpop.f32.mrf.mxu3 }
  0x97   :  { %v167_v26 = vpop.f32.mrf.mxu0  ;;  %v177_v27 = vpop.f32.mrf.mxu1  ;;  %v213_v28 = vadd.f32 %v185_v24, %v43_v21  ;;  %v217_v34 = vadd.f32 %v195_v25, %v47_v29 }
  0x98   :  { %v206_v30 = vadd.f32 %v167_v26, %v36_v22  ;;  %v210_v32 = vadd.f32 %v177_v27, %v40_v23 }
  0x99   :  { %v526_v31 = vld [vmem:[#allocation2] sm:$0xff]  ;;  %230 = vst.msk [vmem:[#allocation2 + $0x40] sm:$0xff] %vm18_vm1, %v213_v28 }
  0x9a   :  { %257 = vst.msk [vmem:[%s684_s2] sm:$0xff] %vm18_vm1, %v526_v31  ;;  %v534_v33 = vld [vmem:[#allocation2 + $0x20] sm:$0xff]  ;;  %v310_v5 = vmul.f32 %v526_v31, %v526_v31  ;;  %v273_v13 = vsel %vm18_vm1, %v526_v31, 0.0 }
  0x9b   :  { %261 = vst.msk [vmem:[%s684_s2 + $0x20] sm:$0xff] %vm18_vm1, %v534_v33  ;;  %v314_v23 = vmul.f32 %v534_v33, %v534_v33  ;;  %v280_v29 = vsel %vm18_vm1, %v534_v33, 0.0 }
  0x9c   :  { %223 = vst.msk [vmem:[#allocation2 + $0x8] sm:$0xff] %vm18_vm1, %v206_v30  ;;  %v326_v18 = vsel %vm18_vm1, %v310_v5, 0.0 }
  0x9d   :  { %227 = vst.msk [vmem:[#allocation2 + $0x28] sm:$0xff] %vm18_vm1, %v210_v32 }
  0x9e   :  { %v187_v37 = vpop.f32.mrf.mxu2  ;;  %234 = vst.msk [vmem:[#allocation2 + $0x60] sm:$0xff] %vm18_vm1, %v217_v34  ;;  %v197_v38 = vpop.f32.mrf.mxu3 }
  0x9f   :  { %v170_v39 = vpop.f32.mrf.mxu0  ;;  %v180_v40 = vpop.f32.mrf.mxu1  ;;  %v214_v46 = vadd.f32 %v187_v37, %v44_v41  ;;  %v218_v50 = vadd.f32 %v197_v38, %v48_v45 }
  0xa0   :  { %v544_v42 = vld [vmem:[#allocation2 + $0x40] sm:$0xff]  ;;  %v207_v43 = vadd.f32 %v170_v39, %v37_v35  ;;  %v211_v44 = vadd.f32 %v180_v40, %v41_v36  ;;  %v333_v36 = vsel %vm18_vm1, %v314_v23, 0.0 }
  0xa1   :  { %265 = vst.msk [vmem:[%s684_s2 + $0x40] sm:$0xff] %vm18_vm1, %v544_v42 }
  0xa2   :  { %224 = vst.msk [vmem:[#allocation2 + $0x10] sm:$0xff] %vm18_vm1, %v207_v43 }
  0xa3   :  { %v242_v47 = vld [vmem:[#allocation2 + $0x8] sm:$0xff]  ;;  %228 = vst.msk [vmem:[#allocation2 + $0x30] sm:$0xff] %vm18_vm1, %v211_v44 }
  0xa4   :  { %258 = vst.msk [vmem:[%s684_s2 + $0x8] sm:$0xff] %vm18_vm1, %v242_v47  ;;  %v557_v48 = vld [vmem:[#allocation2 + $0x28] sm:$0xff]  ;;  %v311_v1 = vmul.f32 %v242_v47, %v242_v47  ;;  %v274_v6 = vsel %vm18_vm1, %v242_v47, 0.0 }
  0xa5   :  { %262 = vst.msk [vmem:[%s684_s2 + $0x28] sm:$0xff] %vm18_vm1, %v557_v48  ;;  %v564_v51 = vld [vmem:[#allocation2 + $0x60] sm:$0xff]  ;;  %v275_v17 = vadd.f32 %v274_v6, %v273_v13  ;;  %v315_v30 = vmul.f32 %v557_v48, %v557_v48  ;;  %v282_v37 = vsel %vm18_vm1, %v557_v48, 0.0  ;;  %v318_v48 = vmul.f32 %v544_v42, %v544_v42 }
  0xa6   :  { %231 = vst.msk [vmem:[#allocation2 + $0x48] sm:$0xff] %vm18_vm1, %v214_v46  ;;  %v190_v54 = vpop.f32.mrf.mxu2  ;;  %v200_v55 = vpop.f32.mrf.mxu3  ;;  %v327_v14 = vsel %vm18_vm1, %v311_v1, 0.0  ;;  %v322_v5 = vmul.f32 %v564_v51, %v564_v51 }
  0xa7   :  { %269 = vst.msk [vmem:[%s684_s2 + $0x60] sm:$0xff] %vm18_vm1, %v564_v51  ;;  %v172_v56 = vpop.f32.mrf.mxu0  ;;  %v182_v57 = vpop.f32.mrf.mxu1  ;;  %v215_v58 = vadd.f32 %v190_v54, %v45_v49  ;;  %v219_v0 = vadd.f32 %v200_v55, %v49_v60  ;;  %v328_v20 = vadd.f32 %v327_v14, %v326_v18  ;;  %v335_v41 = vsel %vm18_vm1, %v315_v30, 0.0 }
  0xa8   :  { %v208_v59 = vadd.f32 %v172_v56, %v38_v52  ;;  %235 = vst.msk [vmem:[#allocation2 + $0x68] sm:$0xff] %vm18_vm1, %v218_v50  ;;  %v212_v62 = vadd.f32 %v182_v57, %v42_v53  ;;  %v288_v54 = vsel %vm18_vm1, %v544_v42, 0.0 }
  0xa9   :  { %v243_v61 = vld [vmem:[#allocation2 + $0x10] sm:$0xff]  ;;  %232 = vst.msk [vmem:[#allocation2 + $0x50] sm:$0xff] %vm18_vm1, %v215_v58 }
  0xaa   :  { %259 = vst.msk [vmem:[%s684_s2 + $0x10] sm:$0xff] %vm18_vm1, %v243_v61  ;;  %v247_v63 = vld [vmem:[#allocation2 + $0x30] sm:$0xff]  ;;  %v312_v7 = vmul.f32 %v243_v61, %v243_v61  ;;  %v276_v15 = vsel %vm18_vm1, %v243_v61, 0.0 }
  0xab   :  { %263 = vst.msk [vmem:[%s684_s2 + $0x30] sm:$0xff] %vm18_vm1, %v247_v63  ;;  %v277_v21 = vadd.f32 %v276_v15, %v275_v17  ;;  %v316_v38 = vmul.f32 %v247_v63, %v247_v63  ;;  %v284_v43 = vsel %vm18_vm1, %v247_v63, 0.0  ;;  %v349_v15 = vsel %vm18_vm1, %v322_v5, 0.0 }
  0xac   :  { %225 = vst.msk [vmem:[#allocation2 + $0x18] sm:$0xff] %vm18_vm1, %v208_v59  ;;  %v329_v19 = vsel %vm18_vm1, %v312_v7, 0.0  ;;  %v341_v59 = vsel %vm18_vm1, %v318_v48, 0.0 }
  0xad   :  { %v583_v4 = vld [vmem:[#allocation2 + $0x48] sm:$0xff]  ;;  %229 = vst.msk [vmem:[#allocation2 + $0x38] sm:$0xff] %vm18_vm1, %v212_v62  ;;  %v330_v27 = vadd.f32 %v329_v19, %v328_v20  ;;  %v337_v49 = vsel %vm18_vm1, %v316_v38, 0.0 }
  0xae   :  { %266 = vst.msk [vmem:[%s684_s2 + $0x48] sm:$0xff] %vm18_vm1, %v583_v4  ;;  %v192_v8 = vpop.f32.mrf.mxu2  ;;  %v202_v9 = vpop.f32.mrf.mxu3  ;;  %v319_v55 = vmul.f32 %v583_v4, %v583_v4  ;;  %v290_v60 = vsel %vm18_vm1, %v583_v4, 0.0  ;;  %v296_v4 = vsel %vm18_vm1, %v564_v51, 0.0 }
  0xaf   :  { %v594_v10 = vld [vmem:[#allocation2 + $0x68] sm:$0xff]  ;;  %v216_v11 = vadd.f32 %v192_v8, %v46_v2  ;;  %236 = vst.msk [vmem:[#allocation2 + $0x70] sm:$0xff] %vm18_vm1, %v219_v0  ;;  %v220_v12 = vadd.f32 %v202_v9, %v50_v3 }
  0xb0   :  { %v251_v16 = vld [vmem:[#allocation2 + $0x50] sm:$0xff]  ;;  %270 = vst.msk [vmem:[%s684_s2 + $0x68] sm:$0xff] %vm18_vm1, %v594_v10  ;;  %v343_v0 = vsel %vm18_vm1, %v319_v55, 0.0 }
  0xb1   :  { %267 = vst.msk [vmem:[%s684_s2 + $0x50] sm:$0xff] %vm18_vm1, %v251_v16  ;;  %v320_v61 = vmul.f32 %v251_v16, %v251_v16  ;;  %v292_v1 = vsel %vm18_vm1, %v251_v16, 0.0  ;;  %v298_v16 = vsel %vm18_vm1, %v594_v10, 0.0 }
  0xb2   :  { %233 = vst.msk [vmem:[#allocation2 + $0x58] sm:$0xff] %vm18_vm1, %v216_v11  ;;  %v323_v11 = vmul.f32 %v594_v10, %v594_v10 }
  0xb3   :  { %v244_v22 = vld [vmem:[#allocation2 + $0x18] sm:$0xff]  ;;  %237 = vst.msk [vmem:[#allocation2 + $0x78] sm:$0xff] %vm18_vm1, %v220_v12  ;;  %v345_v6 = vsel %vm18_vm1, %v320_v61, 0.0 }
  0xb4   :  { %260 = vst.msk [vmem:[%s684_s2 + $0x18] sm:$0xff] %vm18_vm1, %v244_v22  ;;  %v278_v24 = vsel %vm18_vm1, %v244_v22, 0.0  ;;  %v313_v25 = vmul.f32 %v244_v22, %v244_v22  ;;  %v248_v26 = vld [vmem:[#allocation2 + $0x38] sm:$0xff]  ;;  %v351_v20 = vsel %vm18_vm1, %v323_v11, 0.0 }
  0xb5   :  { %v279_v28 = vadd.f32 %v278_v24, %v277_v21  ;;  %264 = vst.msk [vmem:[%s684_s2 + $0x38] sm:$0xff] %vm18_vm1, %v248_v26  ;;  %v317_v44 = vmul.f32 %v248_v26, %v248_v26  ;;  %v286_v50 = vsel %vm18_vm1, %v248_v26, 0.0 }
  0xb6   :  { %v331_v31 = vsel %vm18_vm1, %v313_v25, 0.0  ;;  %v255_v32 = vld [vmem:[#allocation2 + $0x70] sm:$0xff] }
  0xb7   :  { %v281_v34 = vadd.f32 %v280_v29, %v279_v28  ;;  %v332_v35 = vadd.f32 %v331_v31, %v330_v27  ;;  %271 = vst.msk [vmem:[%s684_s2 + $0x70] sm:$0xff] %vm18_vm1, %v255_v32  ;;  %v339_v56 = vsel %vm18_vm1, %v317_v44, 0.0  ;;  %v324_v17 = vmul.f32 %v255_v32, %v255_v32 }
  0xb8   :  { %v300_v21 = vsel %vm18_vm1, %v255_v32, 0.0 }
  0xb9   :  { %v334_v33 = vadd.f32 %v333_v36, %v332_v35  ;;  %v283_v39 = vadd.f32 %v282_v37, %v281_v34  ;;  %v252_v40 = vld [vmem:[#allocation2 + $0x58] sm:$0xff]  ;;  %v353_v24 = vsel %vm18_vm1, %v324_v17, 0.0  ;;  %v363_v34 = vlaneseq }
  0xba   :  { %268 = vst.msk [vmem:[%s684_s2 + $0x58] sm:$0xff] %vm18_vm1, %v252_v40  ;;  %v256_v45 = vld [vmem:[#allocation2 + $0x78] sm:$0xff]  ;;  %v321_v42 = vmul.f32 %v252_v40, %v252_v40  ;;  %v294_v7 = vsel %vm18_vm1, %v252_v40, 0.0 }
  0xbb   :  { %v285_v46 = vadd.f32 %v284_v43, %v283_v39  ;;  %v336_v47 = vadd.f32 %v335_v41, %v334_v33  ;;  %272 = vst.msk [vmem:[%s684_s2 + $0x78] sm:$0xff] %vm18_vm1, %v256_v45  ;;  %v325_v51 = vmul.f32 %v256_v45, %v256_v45  ;;  %v302_v25 = vsel %vm18_vm1, %v256_v45, 0.0 }
  0xbc   :  { %v347_v12 = vsel %vm18_vm1, %v321_v42, 0.0  ;;  %v364_v38 = vshrl.u32 %v363_v34, 7 }
  0xbd   :  { %v287_v52 = vadd.f32 %v286_v50, %v285_v46  ;;  %v338_v53 = vadd.f32 %v337_v49, %v336_v47  ;;  %v355_v28 = vsel %vm18_vm1, %v325_v51, 0.0 }
  0xbe   :  { %vm366_vm3 = vcmp.eq.s32.totalorder %v364_v38, 1  ;;  %vm365_vm4 = vcmp.eq.s32.totalorder %v364_v38, 0 }
  0xbf   :  { %v289_v57 = vadd.f32 %v288_v54, %v287_v52  ;;  %v340_v58 = vadd.f32 %v339_v56, %v338_v53 }
  0xc1   :  { %v342_v62 = vadd.f32 %v341_v59, %v340_v58  ;;  %v291_v63 = vadd.f32 %v290_v60, %v289_v57 }
  0xc3   :  { %v293_v2 = vadd.f32 %v292_v1, %v291_v63  ;;  %v344_v3 = vadd.f32 %v343_v0, %v342_v62 }
  0xc5   :  { %v346_v8 = vadd.f32 %v345_v6, %v344_v3  ;;  %v295_v9 = vadd.f32 %v294_v7, %v293_v2 }
  0xc7   :  { %v297_v13 = vadd.f32 %v296_v4, %v295_v9  ;;  %v348_v14 = vadd.f32 %v347_v12, %v346_v8 }
  0xc9   :  { %v350_v18 = vadd.f32 %v349_v15, %v348_v14  ;;  %v299_v19 = vadd.f32 %v298_v16, %v297_v13 }
  0xcb   :  { %v301_v22 = vadd.f32 %v300_v21, %v299_v19  ;;  %v352_v23 = vadd.f32 %v351_v20, %v350_v18 }
  0xcd   :  { %v354_v26 = vadd.f32 %v353_v24, %v352_v23  ;;  %v303_v27 = vadd.f32 %v302_v25, %v301_v22 }
  0xcf   :  { %v304_v29 = vrot.slane %v303_v27, 4  ;;  %v356_v10 = vadd.f32 %v355_v28, %v354_v26 }
  0xd1   :  { %v305_v30 = vadd.f32 %v304_v29, %v303_v27  ;;  %v357_v31 = vrot.slane %v356_v10, 4 }
  0xd3   :  { %v306_v35 = vrot.slane %v305_v30, 2  ;;  %v358_v36 = vadd.f32 %v357_v31, %v356_v10 }
  0xd5   :  { %v307_v37 = vadd.f32 %v306_v35, %v305_v30  ;;  %v359_v32 = vrot.slane %v358_v36, 2 }
  0xd7   :  { %v360_v33 = vadd.f32 %v359_v32, %v358_v36  ;;  %v308_v39 = vrot.slane %v307_v37, 1 }
  0xd9   :  { %v361_v40 = vrot.slane %v360_v33, 1  ;;  %v309_v43 = vadd.f32 %v308_v39, %v307_v37 }
  0xdb   :  { %v362_v41 = vadd.f32 %v361_v40, %v360_v33 }
  0xdd   :  { %v367_v44 = vsel %vm366_vm3, %v362_v41, 0.0 }
  0xde   :  { %v368_v45 = vsel %vm365_vm4, %v309_v43, %v367_v44 }
  0xdf   :  { %369 = vst.msk [vmem:[%s685_s3] sm:$0xff] %vm18_vm1, %v368_v45 }

// kernel: bottleneck_forward.10
= control target key start
LH: loop header
LB: loop body
LE: loop exit
PB: predicated region body
PF: predicated region fallthrough
CT: control target
= control target key end

     0   :  { %vm102_vm0 = vcmask 27648   ;;  %s299_s0 = inlined_call_operand.vmem [shape: f32[128,4], index: 0, kind: input, shape index: {}]   ;;  %s300_s1 = inlined_call_operand.vmem [shape: f32[1,4], index: 1, kind: input, shape index: {}]   ;;  %s301_s2 = inlined_call_operand.vmem [shape: f32[1,4], index: 2, kind: input, shape index: {}]   ;;  %s302_s3 = inlined_call_operand.vmem [shape: bf16[128,4], index: 3, kind: output, shape index: {}]  }
   0x1   :  { %v14_v0 = vld [vmem:[%s299_s0] sm:$0xff]  ;;  %v15_v3 = vld [vmem:[%s299_s0 + $0x8] sm:$0xff]  ;;  %v16_v6 = vld [vmem:[%s299_s0 + $0x10] sm:$0xff] }
   0x2   :  { %v151_v1 = vld [vmem:[%s300_s1] ss:$0 sm:$0xff]  ;;  %v17_v7 = vld [vmem:[%s299_s0 + $0x18] sm:$0xff]  ;;  %v19_v12 = vld [vmem:[%s299_s0 + $0x28] sm:$0xff] }
   0x3   :  { %v156_v2 = vld [vmem:[%s301_s2] ss:$0 sm:$0xff]  ;;  %v34_v4 = vmul.f32 %v151_v1, %v14_v0  ;;  %v35_v5 = vmul.f32 %v151_v1, %v15_v3  ;;  %v36_v9 = vmul.f32 %v151_v1, %v16_v6  ;;  %v37_v10 = vmul.f32 %v151_v1, %v17_v7  ;;  %v20_v13 = vld [vmem:[%s299_s0 + $0x30] sm:$0xff]  ;;  %v21_v14 = vld [vmem:[%s299_s0 + $0x38] sm:$0xff] }
   0x4   :  { %v18_v8 = vld [vmem:[%s299_s0 + $0x20] sm:$0xff]  ;;  %v39_v17 = vmul.f32 %v151_v1, %v19_v12  ;;  %v40_v18 = vmul.f32 %v151_v1, %v20_v13  ;;  %v41_v22 = vmul.f32 %v151_v1, %v21_v14  ;;  %v23_v32 = vld [vmem:[%s299_s0 + $0x48] sm:$0xff]  ;;  %v24_v37 = vld [vmem:[%s299_s0 + $0x50] sm:$0xff] }
   0x5   :  { %v38_v11 = vmul.f32 %v151_v1, %v18_v8  ;;  %v54_v15 = vadd.f32 %v156_v2, %v34_v4  ;;  %v55_v16 = vadd.f32 %v156_v2, %v35_v5  ;;  %v56_v19 = vadd.f32 %v156_v2, %v36_v9  ;;  %v22_v31 = vld [vmem:[%s299_s0 + $0x40] sm:$0xff]  ;;  %v25_v38 = vld [vmem:[%s299_s0 + $0x58] sm:$0xff]  ;;  %v27_v44 = vld [vmem:[%s299_s0 + $0x68] sm:$0xff] }
   0x6   :  { %v57_v20 = vadd.f32 %v156_v2, %v37_v10  ;;  %v59_v25 = vadd.f32 %v156_v2, %v39_v17  ;;  %v60_v26 = vadd.f32 %v156_v2, %v40_v18  ;;  %v61_v30 = vadd.f32 %v156_v2, %v41_v22  ;;  %v26_v39 = vld [vmem:[%s299_s0 + $0x60] sm:$0xff]  ;;  %v28_v45 = vld [vmem:[%s299_s0 + $0x70] sm:$0xff]  ;;  %v29_v50 = vld [vmem:[%s299_s0 + $0x78] sm:$0xff] }
   0x7   :  { %v58_v21 = vadd.f32 %v156_v2, %v38_v11  ;;  %v70_v23 = vmax.f32 %v54_v15, 0.0  ;;  %v71_v24 = vmax.f32 %v55_v16, 0.0  ;;  %v72_v27 = vmax.f32 %v56_v19, 0.0 }
   0x8   :  { %v73_v28 = vmax.f32 %v57_v20, 0.0  ;;  %v75_v35 = vmax.f32 %v59_v25, 0.0  ;;  %v76_v36 = vmax.f32 %v60_v26, 0.0  ;;  %v77_v43 = vmax.f32 %v61_v30, 0.0 }
   0x9   :  { %v74_v29 = vmax.f32 %v58_v21, 0.0  ;;  %v86_v33 = vpack.c.bf16 %v70_v23, %v70_v23  ;;  %v87_v34 = vpack.c.bf16 %v71_v24, %v71_v24  ;;  %v88_v40 = vpack.c.bf16 %v72_v27, %v72_v27 }
   0xa   :  { %v89_v41 = vpack.c.bf16 %v73_v28, %v73_v28  ;;  %v91_v46 = vpack.c.bf16 %v75_v35, %v75_v35  ;;  %v92_v47 = vpack.c.bf16 %v76_v36, %v76_v36  ;;  %v42_v48 = vmul.f32 %v151_v1, %v22_v31 }
   0xb   :  { %v90_v42 = vpack.c.bf16 %v74_v29, %v74_v29  ;;  %103 = vst.msk [vmem:[%s302_s3] sm:$0xf] %vm102_vm0, %v86_v33  ;;  %v43_v49 = vmul.f32 %v151_v1, %v23_v32  ;;  %v93_v51 = vpack.c.bf16 %v77_v43, %v77_v43  ;;  %v44_v52 = vmul.f32 %v151_v1, %v24_v37 }
   0xc   :  { %104 = vst.msk [vmem:[%s302_s3 + $0x4] sm:$0xf] %vm102_vm0, %v87_v34  ;;  %v45_v53 = vmul.f32 %v151_v1, %v25_v38  ;;  %v46_v54 = vmul.f32 %v151_v1, %v26_v39  ;;  %v62_v55 = vadd.f32 %v156_v2, %v42_v48  ;;  %v47_v57 = vmul.f32 %v151_v1, %v27_v44 }
   0xd   :  { %105 = vst.msk [vmem:[%s302_s3 + $0x8] sm:$0xf] %vm102_vm0, %v88_v40  ;;  %v63_v56 = vadd.f32 %v156_v2, %v43_v49  ;;  %v48_v58 = vmul.f32 %v151_v1, %v28_v45  ;;  %v64_v59 = vadd.f32 %v156_v2, %v44_v52  ;;  %v49_v62 = vmul.f32 %v151_v1, %v29_v50 }
   0xe   :  { %106 = vst.msk [vmem:[%s302_s3 + $0xc] sm:$0xf] %vm102_vm0, %v89_v41  ;;  %v65_v60 = vadd.f32 %v156_v2, %v45_v53  ;;  %v66_v61 = vadd.f32 %v156_v2, %v46_v54  ;;  %v78_v63 = vmax.f32 %v62_v55, 0.0  ;;  %v67_v3 = vadd.f32 %v156_v2, %v47_v57 }
   0xf   :  { %107 = vst.msk [vmem:[%s302_s3 + $0x10] sm:$0xf] %vm102_vm0, %v90_v42  ;;  %v79_v0 = vmax.f32 %v63_v56, 0.0  ;;  %v68_v4 = vadd.f32 %v156_v2, %v48_v58  ;;  %v80_v5 = vmax.f32 %v64_v59, 0.0  ;;  %v69_v1 = vadd.f32 %v156_v2, %v49_v62 }
  0x10   :  { %108 = vst.msk [vmem:[%s302_s3 + $0x14] sm:$0xf] %vm102_vm0, %v91_v46  ;;  %v81_v6 = vmax.f32 %v65_v60, 0.0  ;;  %v82_v7 = vmax.f32 %v66_v61, 0.0  ;;  %v94_v8 = vpack.c.bf16 %v78_v63, %v78_v63  ;;  %v83_v10 = vmax.f32 %v67_v3, 0.0 }
  0x11   :  { %109 = vst.msk [vmem:[%s302_s3 + $0x18] sm:$0xf] %vm102_vm0, %v92_v47  ;;  %v95_v9 = vpack.c.bf16 %v79_v0, %v79_v0  ;;  %v84_v11 = vmax.f32 %v68_v4, 0.0  ;;  %v96_v12 = vpack.c.bf16 %v80_v5, %v80_v5  ;;  %v85_v14 = vmax.f32 %v69_v1, 0.0 }
  0x12   :  { %110 = vst.msk [vmem:[%s302_s3 + $0x1c] sm:$0xf] %vm102_vm0, %v93_v51  ;;  %v97_v13 = vpack.c.bf16 %v81_v6, %v81_v6  ;;  %v98_v2 = vpack.c.bf16 %v82_v7, %v82_v7  ;;  %v99_v15 = vpack.c.bf16 %v83_v10, %v83_v10 }
  0x13   :  { %111 = vst.msk [vmem:[%s302_s3 + $0x20] sm:$0xf] %vm102_vm0, %v94_v8  ;;  %v100_v16 = vpack.c.bf16 %v84_v11, %v84_v11  ;;  %v101_v17 = vpack.c.bf16 %v85_v14, %v85_v14 }
  0x14   :  { %112 = vst.msk [vmem:[%s302_s3 + $0x24] sm:$0xf] %vm102_vm0, %v95_v9 }
  0x15   :  { %113 = vst.msk [vmem:[%s302_s3 + $0x28] sm:$0xf] %vm102_vm0, %v96_v12 }
  0x16   :  { %114 = vst.msk [vmem:[%s302_s3 + $0x2c] sm:$0xf] %vm102_vm0, %v97_v13 }
  0x17   :  { %115 = vst.msk [vmem:[%s302_s3 + $0x30] sm:$0xf] %vm102_vm0, %v98_v2 }
  0x18   :  { %116 = vst.msk [vmem:[%s302_s3 + $0x34] sm:$0xf] %vm102_vm0, %v99_v15 }
  0x19   :  { %117 = vst.msk [vmem:[%s302_s3 + $0x38] sm:$0xf] %vm102_vm0, %v100_v16 }
  0x1a   :  { %118 = vst.msk [vmem:[%s302_s3 + $0x3c] sm:$0xf] %vm102_vm0, %v101_v17 }

// kernel: bottleneck_forward.11
= control target key start
LH: loop header
LB: loop body
LE: loop exit
PB: predicated region body
PF: predicated region fallthrough
CT: control target
= control target key end

     0   :  { %vm133_vm0 = vcmask 1041408   ;;  %vm18_vm1 = vcmask 130048   ;;  %v411_v1 = vmov 0.0   ;;  %vm108_vm2 = vcmask 31744   ;;  %s641_s1 = inlined_call_operand.vmem [shape: bf16[4,16], index: 1, kind: input, shape index: {}]   ;;  %s642_s0 = inlined_call_operand.vmem [shape: bf16[128,4], index: 0, kind: input, shape index: {}]   ;;  %s643_s2 = inlined_call_operand.vmem [shape: f32[128,16], index: 2, kind: output, shape index: {0}]   ;;  %s644_s3 = inlined_call_operand.vmem [shape: f32[8,16], index: 3, kind: output, shape index: {1}]  }
   0x1   :  { %v67_v0 = vld [vmem:[%s641_s1] sm:$0x3]  ;;  %19 = vst.msk [vmem:[#allocation2] sm:$0xff] %vm18_vm1, %v411_v1  ;;  %v401_v4 = vld [vmem:[%s642_s0 + $0x10] sm:$0xff]  ;;  %v400_v7 = vld [vmem:[%s642_s0 + $0x8] sm:$0xff] }
   0x2   :  { %v135_v2 = vsel %vm133_vm0, %v67_v0, 0  ;;  %v399_v3 = vld [vmem:[%s642_s0] sm:$0xff]  ;;  %20 = vst.msk [vmem:[#allocation2 + $0x8] sm:$0xff] %vm18_vm1, %v411_v1  ;;  %v405_v6 = vld [vmem:[%s642_s0 + $0x30] sm:$0xff]  ;;  %v402_v8 = vld [vmem:[%s642_s0 + $0x18] sm:$0xff] }
   0x3   :  { %144 = vmatpush.bf16.msra.mxu0 %v135_v2  ;;  %407 = vmatpush.bf16.msra.mxu1 %v135_v2  ;;  %v403_v5 = vld [vmem:[%s642_s0 + $0x20] sm:$0xff]  ;;  %21 = vst.msk [vmem:[#allocation2 + $0x10] sm:$0xff] %vm18_vm1, %v411_v1  ;;  %v404_v9 = vld [vmem:[%s642_s0 + $0x28] sm:$0xff]  ;;  %v406_v10 = vld [vmem:[%s642_s0 + $0x38] sm:$0xff] }
   0x4   :  { %408 = vmatpush.bf16.msra.mxu2 %v135_v2  ;;  %409 = vmatpush.bf16.msra.mxu3 %v135_v2  ;;  %22 = vst.msk [vmem:[#allocation2 + $0x18] sm:$0xff] %vm18_vm1, %v411_v1 }
   0x5   :  { %23 = vst.msk [vmem:[#allocation2 + $0x20] sm:$0xff] %vm18_vm1, %v411_v1 }
   0x6   :  { %391 = vmatmul.msk.bf16.vlgmr.msra.gmra.mxu0 %vm108_vm2, %v399_v3  ;;  %393 = vmatmul.msk.bf16.vlgmr.msra.gmra.mxu1 %vm108_vm2, %v401_v4  ;;  %24 = vst.msk [vmem:[#allocation2 + $0x28] sm:$0xff] %vm18_vm1, %v411_v1 }
   0x7   :  { %395 = vmatmul.msk.bf16.vlgmr.msra.gmra.mxu2 %vm108_vm2, %v403_v5  ;;  %397 = vmatmul.msk.bf16.vlgmr.msra.gmra.mxu3 %vm108_vm2, %v405_v6  ;;  %25 = vst.msk [vmem:[#allocation2 + $0x30] sm:$0xff] %vm18_vm1, %v411_v1 }
   0x8   :  { %26 = vst.msk [vmem:[#allocation2 + $0x38] sm:$0xff] %vm18_vm1, %v411_v1  ;;  %v35_v11 = vld [vmem:[#allocation2] sm:$0xff] }
   0x9   :  { %27 = vst.msk [vmem:[#allocation2 + $0x40] sm:$0xff] %vm18_vm1, %v411_v1  ;;  %v36_v18 = vld [vmem:[#allocation2 + $0x8] sm:$0xff] }
   0xa   :  { %28 = vst.msk [vmem:[#allocation2 + $0x48] sm:$0xff] %vm18_vm1, %v411_v1  ;;  %v37_v31 = vld [vmem:[#allocation2 + $0x10] sm:$0xff] }
   0xb   :  { %29 = vst.msk [vmem:[#allocation2 + $0x50] sm:$0xff] %vm18_vm1, %v411_v1  ;;  %v38_v48 = vld [vmem:[#allocation2 + $0x18] sm:$0xff] }
   0xc   :  { %30 = vst.msk [vmem:[#allocation2 + $0x58] sm:$0xff] %vm18_vm1, %v411_v1  ;;  %v39_v12 = vld [vmem:[#allocation2 + $0x20] sm:$0xff] }
   0xd   :  { %31 = vst.msk [vmem:[#allocation2 + $0x60] sm:$0xff] %vm18_vm1, %v411_v1  ;;  %v40_v19 = vld [vmem:[#allocation2 + $0x28] sm:$0xff] }
   0xe   :  { %32 = vst.msk [vmem:[#allocation2 + $0x68] sm:$0xff] %vm18_vm1, %v411_v1  ;;  %v41_v32 = vld [vmem:[#allocation2 + $0x30] sm:$0xff] }
   0xf   :  { %33 = vst.msk [vmem:[#allocation2 + $0x70] sm:$0xff] %vm18_vm1, %v411_v1  ;;  %v42_v49 = vld [vmem:[#allocation2 + $0x38] sm:$0xff] }
  0x10   :  { %34 = vst.msk [vmem:[#allocation2 + $0x78] sm:$0xff] %vm18_vm1, %v411_v1  ;;  %v43_v17 = vld [vmem:[#allocation2 + $0x40] sm:$0xff] }
  0x11   :  { %v44_v37 = vld [vmem:[#allocation2 + $0x48] sm:$0xff] }
  0x12   :  { %v45_v45 = vld [vmem:[#allocation2 + $0x50] sm:$0xff] }
  0x13   :  { %v46_v62 = vld [vmem:[#allocation2 + $0x58] sm:$0xff] }
  0x14   :  { %v47_v25 = vld [vmem:[#allocation2 + $0x60] sm:$0xff] }
  0x15   :  { %v48_v41 = vld [vmem:[#allocation2 + $0x68] sm:$0xff] }
  0x16   :  { %392 = vmatmul.msk.bf16.gmra.mxu0 %vm108_vm2, %v400_v7  ;;  %394 = vmatmul.msk.bf16.gmra.mxu1 %vm108_vm2, %v402_v8  ;;  %v49_v56 = vld [vmem:[#allocation2 + $0x70] sm:$0xff] }
  0x17   :  { %396 = vmatmul.msk.bf16.gmra.mxu2 %vm108_vm2, %v404_v9  ;;  %398 = vmatmul.msk.bf16.gmra.mxu3 %vm108_vm2, %v406_v10  ;;  %v50_v63 = vld [vmem:[#allocation2 + $0x78] sm:$0xff] }
  0x83   :  { %v146_v13 = vpop.f32.mrf.mxu0  ;;  %v156_v14 = vpop.f32.mrf.mxu1 }
  0x84   :  { %v186_v15 = vadd.f32 %v146_v13, %v35_v11  ;;  %v190_v16 = vadd.f32 %v156_v14, %v39_v12 }
  0x86   :  { %203 = vst.msk [vmem:[#allocation2] sm:$0xff] %vm18_vm1, %v186_v15 }
  0x87   :  { %207 = vst.msk [vmem:[#allocation2 + $0x20] sm:$0xff] %vm18_vm1, %v190_v16 }
  0x8a   :  { %v166_v20 = vpop.f32.mrf.mxu2  ;;  %v176_v21 = vpop.f32.mrf.mxu3 }
  0x8b   :  { %v148_v22 = vpop.f32.mrf.mxu0  ;;  %v158_v23 = vpop.f32.mrf.mxu1  ;;  %v194_v24 = vadd.f32 %v166_v20, %v43_v17  ;;  %v198_v30 = vadd.f32 %v176_v21, %v47_v25 }
  0x8c   :  { %v187_v26 = vadd.f32 %v148_v22, %v36_v18  ;;  %v191_v28 = vadd.f32 %v158_v23, %v40_v19 }
  0x8d   :  { %v485_v27 = vld [vmem:[#allocation2] sm:$0xff]  ;;  %211 = vst.msk [vmem:[#allocation2 + $0x40] sm:$0xff] %vm18_vm1, %v194_v24 }
  0x8e   :  { %238 = vst.msk [vmem:[%s643_s2] sm:$0xff] %vm18_vm1, %v485_v27  ;;  %v493_v29 = vld [vmem:[#allocation2 + $0x20] sm:$0xff]  ;;  %v291_v1 = vmul.f32 %v485_v27, %v485_v27  ;;  %v254_v9 = vsel %vm18_vm1, %v485_v27, 0.0 }
  0x8f   :  { %242 = vst.msk [vmem:[%s643_s2 + $0x20] sm:$0xff] %vm18_vm1, %v493_v29  ;;  %v295_v19 = vmul.f32 %v493_v29, %v493_v29  ;;  %v261_v25 = vsel %vm18_vm1, %v493_v29, 0.0 }
  0x90   :  { %204 = vst.msk [vmem:[#allocation2 + $0x8] sm:$0xff] %vm18_vm1, %v187_v26  ;;  %v307_v14 = vsel %vm18_vm1, %v291_v1, 0.0 }
  0x91   :  { %208 = vst.msk [vmem:[#allocation2 + $0x28] sm:$0xff] %vm18_vm1, %v191_v28 }
  0x92   :  { %v168_v33 = vpop.f32.mrf.mxu2  ;;  %215 = vst.msk [vmem:[#allocation2 + $0x60] sm:$0xff] %vm18_vm1, %v198_v30  ;;  %v178_v34 = vpop.f32.mrf.mxu3 }
  0x93   :  { %v151_v35 = vpop.f32.mrf.mxu0  ;;  %v161_v36 = vpop.f32.mrf.mxu1  ;;  %v195_v42 = vadd.f32 %v168_v33, %v44_v37  ;;  %v199_v46 = vadd.f32 %v178_v34, %v48_v41 }
  0x94   :  { %v503_v38 = vld [vmem:[#allocation2 + $0x40] sm:$0xff]  ;;  %v188_v39 = vadd.f32 %v151_v35, %v37_v31  ;;  %v192_v40 = vadd.f32 %v161_v36, %v41_v32  ;;  %v314_v32 = vsel %vm18_vm1, %v295_v19, 0.0 }
  0x95   :  { %246 = vst.msk [vmem:[%s643_s2 + $0x40] sm:$0xff] %vm18_vm1, %v503_v38 }
  0x96   :  { %205 = vst.msk [vmem:[#allocation2 + $0x10] sm:$0xff] %vm18_vm1, %v188_v39 }
  0x97   :  { %v223_v43 = vld [vmem:[#allocation2 + $0x8] sm:$0xff]  ;;  %209 = vst.msk [vmem:[#allocation2 + $0x30] sm:$0xff] %vm18_vm1, %v192_v40 }
  0x98   :  { %239 = vst.msk [vmem:[%s643_s2 + $0x8] sm:$0xff] %vm18_vm1, %v223_v43  ;;  %v516_v44 = vld [vmem:[#allocation2 + $0x28] sm:$0xff]  ;;  %v292_v61 = vmul.f32 %v223_v43, %v223_v43  ;;  %v255_v2 = vsel %vm18_vm1, %v223_v43, 0.0 }
  0x99   :  { %243 = vst.msk [vmem:[%s643_s2 + $0x28] sm:$0xff] %vm18_vm1, %v516_v44  ;;  %v523_v47 = vld [vmem:[#allocation2 + $0x60] sm:$0xff]  ;;  %v256_v13 = vadd.f32 %v255_v2, %v254_v9  ;;  %v296_v26 = vmul.f32 %v516_v44, %v516_v44  ;;  %v263_v33 = vsel %vm18_vm1, %v516_v44, 0.0  ;;  %v299_v44 = vmul.f32 %v503_v38, %v503_v38 }
  0x9a   :  { %212 = vst.msk [vmem:[#allocation2 + $0x48] sm:$0xff] %vm18_vm1, %v195_v42  ;;  %v171_v50 = vpop.f32.mrf.mxu2  ;;  %v181_v51 = vpop.f32.mrf.mxu3  ;;  %v308_v10 = vsel %vm18_vm1, %v292_v61, 0.0  ;;  %v303_v1 = vmul.f32 %v523_v47, %v523_v47 }
  0x9b   :  { %250 = vst.msk [vmem:[%s643_s2 + $0x60] sm:$0xff] %vm18_vm1, %v523_v47  ;;  %v153_v52 = vpop.f32.mrf.mxu0  ;;  %v163_v53 = vpop.f32.mrf.mxu1  ;;  %v196_v54 = vadd.f32 %v171_v50, %v45_v45  ;;  %v200_v60 = vadd.f32 %v181_v51, %v49_v56  ;;  %v309_v16 = vadd.f32 %v308_v10, %v307_v14  ;;  %v316_v37 = vsel %vm18_vm1, %v296_v26, 0.0 }
  0x9c   :  { %v189_v55 = vadd.f32 %v153_v52, %v38_v48  ;;  %216 = vst.msk [vmem:[#allocation2 + $0x68] sm:$0xff] %vm18_vm1, %v199_v46  ;;  %v193_v58 = vadd.f32 %v163_v53, %v42_v49  ;;  %v269_v50 = vsel %vm18_vm1, %v503_v38, 0.0 }
  0x9d   :  { %v224_v57 = vld [vmem:[#allocation2 + $0x10] sm:$0xff]  ;;  %213 = vst.msk [vmem:[#allocation2 + $0x50] sm:$0xff] %vm18_vm1, %v196_v54 }
  0x9e   :  { %240 = vst.msk [vmem:[%s643_s2 + $0x10] sm:$0xff] %vm18_vm1, %v224_v57  ;;  %v228_v59 = vld [vmem:[#allocation2 + $0x30] sm:$0xff]  ;;  %v293_v3 = vmul.f32 %v224_v57, %v224_v57  ;;  %v257_v11 = vsel %vm18_vm1, %v224_v57, 0.0 }
  0x9f   :  { %244 = vst.msk [vmem:[%s643_s2 + $0x30] sm:$0xff] %vm18_vm1, %v228_v59  ;;  %v258_v17 = vadd.f32 %v257_v11, %v256_v13  ;;  %v297_v34 = vmul.f32 %v228_v59, %v228_v59  ;;  %v265_v39 = vsel %vm18_vm1, %v228_v59, 0.0  ;;  %v330_v11 = vsel %vm18_vm1, %v303_v1, 0.0 }
  0xa0   :  { %206 = vst.msk [vmem:[#allocation2 + $0x18] sm:$0xff] %vm18_vm1, %v189_v55  ;;  %v310_v15 = vsel %vm18_vm1, %v293_v3, 0.0  ;;  %v322_v55 = vsel %vm18_vm1, %v299_v44, 0.0 }
  0xa1   :  { %v542_v0 = vld [vmem:[#allocation2 + $0x48] sm:$0xff]  ;;  %210 = vst.msk [vmem:[#allocation2 + $0x38] sm:$0xff] %vm18_vm1, %v193_v58  ;;  %v311_v23 = vadd.f32 %v310_v15, %v309_v16  ;;  %v318_v45 = vsel %vm18_vm1, %v297_v34, 0.0 }
  0xa2   :  { %247 = vst.msk [vmem:[%s643_s2 + $0x48] sm:$0xff] %vm18_vm1, %v542_v0  ;;  %v173_v4 = vpop.f32.mrf.mxu2  ;;  %v183_v5 = vpop.f32.mrf.mxu3  ;;  %v300_v51 = vmul.f32 %v542_v0, %v542_v0  ;;  %v271_v56 = vsel %vm18_vm1, %v542_v0, 0.0  ;;  %v277_v0 = vsel %vm18_vm1, %v523_v47, 0.0 }
  0xa3   :  { %v553_v6 = vld [vmem:[#allocation2 + $0x68] sm:$0xff]  ;;  %v197_v7 = vadd.f32 %v173_v4, %v46_v62  ;;  %217 = vst.msk [vmem:[#allocation2 + $0x70] sm:$0xff] %vm18_vm1, %v200_v60  ;;  %v201_v8 = vadd.f32 %v183_v5, %v50_v63 }
  0xa4   :  { %v232_v12 = vld [vmem:[#allocation2 + $0x50] sm:$0xff]  ;;  %251 = vst.msk [vmem:[%s643_s2 + $0x68] sm:$0xff] %vm18_vm1, %v553_v6  ;;  %v324_v60 = vsel %vm18_vm1, %v300_v51, 0.0 }
  0xa5   :  { %248 = vst.msk [vmem:[%s643_s2 + $0x50] sm:$0xff] %vm18_vm1, %v232_v12  ;;  %v301_v57 = vmul.f32 %v232_v12, %v232_v12  ;;  %v273_v61 = vsel %vm18_vm1, %v232_v12, 0.0  ;;  %v279_v12 = vsel %vm18_vm1, %v553_v6, 0.0 }
  0xa6   :  { %214 = vst.msk [vmem:[#allocation2 + $0x58] sm:$0xff] %vm18_vm1, %v197_v7  ;;  %v304_v7 = vmul.f32 %v553_v6, %v553_v6 }
  0xa7   :  { %v225_v18 = vld [vmem:[#allocation2 + $0x18] sm:$0xff]  ;;  %218 = vst.msk [vmem:[#allocation2 + $0x78] sm:$0xff] %vm18_vm1, %v201_v8  ;;  %v326_v2 = vsel %vm18_vm1, %v301_v57, 0.0 }
  0xa8   :  { %241 = vst.msk [vmem:[%s643_s2 + $0x18] sm:$0xff] %vm18_vm1, %v225_v18  ;;  %v259_v20 = vsel %vm18_vm1, %v225_v18, 0.0  ;;  %v294_v21 = vmul.f32 %v225_v18, %v225_v18  ;;  %v229_v22 = vld [vmem:[#allocation2 + $0x38] sm:$0xff]  ;;  %v332_v16 = vsel %vm18_vm1, %v304_v7, 0.0 }
  0xa9   :  { %v260_v24 = vadd.f32 %v259_v20, %v258_v17  ;;  %245 = vst.msk [vmem:[%s643_s2 + $0x38] sm:$0xff] %vm18_vm1, %v229_v22  ;;  %v298_v40 = vmul.f32 %v229_v22, %v229_v22  ;;  %v267_v46 = vsel %vm18_vm1, %v229_v22, 0.0 }
  0xaa   :  { %v312_v27 = vsel %vm18_vm1, %v294_v21, 0.0  ;;  %v236_v28 = vld [vmem:[#allocation2 + $0x70] sm:$0xff] }
  0xab   :  { %v262_v30 = vadd.f32 %v261_v25, %v260_v24  ;;  %v313_v31 = vadd.f32 %v312_v27, %v311_v23  ;;  %252 = vst.msk [vmem:[%s643_s2 + $0x70] sm:$0xff] %vm18_vm1, %v236_v28  ;;  %v320_v52 = vsel %vm18_vm1, %v298_v40, 0.0  ;;  %v305_v13 = vmul.f32 %v236_v28, %v236_v28 }
  0xac   :  { %v281_v17 = vsel %vm18_vm1, %v236_v28, 0.0 }
  0xad   :  { %v315_v29 = vadd.f32 %v314_v32, %v313_v31  ;;  %v264_v35 = vadd.f32 %v263_v33, %v262_v30  ;;  %v233_v36 = vld [vmem:[#allocation2 + $0x58] sm:$0xff]  ;;  %v334_v20 = vsel %vm18_vm1, %v305_v13, 0.0  ;;  %v344_v30 = vlaneseq }
  0xae   :  { %249 = vst.msk [vmem:[%s643_s2 + $0x58] sm:$0xff] %vm18_vm1, %v233_v36  ;;  %v237_v41 = vld [vmem:[#allocation2 + $0x78] sm:$0xff]  ;;  %v302_v38 = vmul.f32 %v233_v36, %v233_v36  ;;  %v275_v3 = vsel %vm18_vm1, %v233_v36, 0.0 }
  0xaf   :  { %v266_v42 = vadd.f32 %v265_v39, %v264_v35  ;;  %v317_v43 = vadd.f32 %v316_v37, %v315_v29  ;;  %253 = vst.msk [vmem:[%s643_s2 + $0x78] sm:$0xff] %vm18_vm1, %v237_v41  ;;  %v306_v47 = vmul.f32 %v237_v41, %v237_v41  ;;  %v283_v21 = vsel %vm18_vm1, %v237_v41, 0.0 }
  0xb0   :  { %v328_v8 = vsel %vm18_vm1, %v302_v38, 0.0  ;;  %v345_v34 = vshrl.u32 %v344_v30, 7 }
  0xb1   :  { %v268_v48 = vadd.f32 %v267_v46, %v266_v42  ;;  %v319_v49 = vadd.f32 %v318_v45, %v317_v43  ;;  %v336_v24 = vsel %vm18_vm1, %v306_v47, 0.0 }
  0xb2   :  { %vm347_vm3 = vcmp.eq.s32.totalorder %v345_v34, 1  ;;  %vm346_vm4 = vcmp.eq.s32.totalorder %v345_v34, 0 }
  0xb3   :  { %v270_v53 = vadd.f32 %v269_v50, %v268_v48  ;;  %v321_v54 = vadd.f32 %v320_v52, %v319_v49 }
  0xb5   :  { %v323_v58 = vadd.f32 %v322_v55, %v321_v54  ;;  %v272_v59 = vadd.f32 %v271_v56, %v270_v53 }
  0xb7   :  { %v274_v62 = vadd.f32 %v273_v61, %v272_v59  ;;  %v325_v63 = vadd.f32 %v324_v60, %v323_v58 }
  0xb9   :  { %v327_v4 = vadd.f32 %v326_v2, %v325_v63  ;;  %v276_v5 = vadd.f32 %v275_v3, %v274_v62 }
  0xbb   :  { %v278_v9 = vadd.f32 %v277_v0, %v276_v5  ;;  %v329_v10 = vadd.f32 %v328_v8, %v327_v4 }
  0xbd   :  { %v331_v14 = vadd.f32 %v330_v11, %v329_v10  ;;  %v280_v15 = vadd.f32 %v279_v12, %v278_v9 }
  0xbf   :  { %v282_v18 = vadd.f32 %v281_v17, %v280_v15  ;;  %v333_v19 = vadd.f32 %v332_v16, %v331_v14 }
  0xc1   :  { %v335_v22 = vadd.f32 %v334_v20, %v333_v19  ;;  %v284_v23 = vadd.f32 %v283_v21, %v282_v18 }
  0xc3   :  { %v285_v25 = vrot.slane %v284_v23, 4  ;;  %v337_v6 = vadd.f32 %v336_v24, %v335_v22 }
  0xc5   :  { %v286_v26 = vadd.f32 %v285_v25, %v284_v23  ;;  %v338_v27 = vrot.slane %v337_v6, 4 }
  0xc7   :  { %v287_v31 = vrot.slane %v286_v26, 2  ;;  %v339_v32 = vadd.f32 %v338_v27, %v337_v6 }
  0xc9   :  { %v288_v33 = vadd.f32 %v287_v31, %v286_v26  ;;  %v340_v28 = vrot.slane %v339_v32, 2 }
  0xcb   :  { %v341_v29 = vadd.f32 %v340_v28, %v339_v32  ;;  %v289_v35 = vrot.slane %v288_v33, 1 }
  0xcd   :  { %v342_v36 = vrot.slane %v341_v29, 1  ;;  %v290_v39 = vadd.f32 %v289_v35, %v288_v33 }
  0xcf   :  { %v343_v37 = vadd.f32 %v342_v36, %v341_v29 }
  0xd1   :  { %v348_v40 = vsel %vm347_vm3, %v343_v37, 0.0 }
  0xd2   :  { %v349_v41 = vsel %vm346_vm4, %v290_v39, %v348_v40 }
  0xd3   :  { %350 = vst.msk [vmem:[%s644_s3] sm:$0xff] %vm18_vm1, %v349_v41 }

// kernel: bottleneck_forward.12
= control target key start
LH: loop header
LB: loop body
LE: loop exit
PB: predicated region body
PF: predicated region fallthrough
CT: control target
= control target key end

     0   :  { %vm133_vm0 = vcmask 1043456   ;;  %vm18_vm1 = vcmask 130048   ;;  %v411_v1 = vmov 0.0   ;;  %vm108_vm2 = vcmask 64512   ;;  %s641_s1 = inlined_call_operand.vmem [shape: bf16[8,16], index: 1, kind: input, shape index: {}]   ;;  %s642_s0 = inlined_call_operand.vmem [shape: bf16[128,8], index: 0, kind: input, shape index: {}]   ;;  %s643_s2 = inlined_call_operand.vmem [shape: f32[128,16], index: 2, kind: output, shape index: {0}]   ;;  %s644_s3 = inlined_call_operand.vmem [shape: f32[8,16], index: 3, kind: output, shape index: {1}]  }
   0x1   :  { %v67_v0 = vld [vmem:[%s641_s1] sm:$0xf]  ;;  %19 = vst.msk [vmem:[#allocation2] sm:$0xff] %vm18_vm1, %v411_v1  ;;  %v401_v4 = vld [vmem:[%s642_s0 + $0x10] sm:$0xff]  ;;  %v400_v7 = vld [vmem:[%s642_s0 + $0x8] sm:$0xff] }
   0x2   :  { %v135_v2 = vsel %vm133_vm0, %v67_v0, 0  ;;  %v399_v3 = vld [vmem:[%s642_s0] sm:$0xff]  ;;  %20 = vst.msk [vmem:[#allocation2 + $0x8] sm:$0xff] %vm18_vm1, %v411_v1  ;;  %v405_v6 = vld [vmem:[%s642_s0 + $0x30] sm:$0xff]  ;;  %v402_v8 = vld [vmem:[%s642_s0 + $0x18] sm:$0xff] }
   0x3   :  { %144 = vmatpush.bf16.msra.mxu0 %v135_v2  ;;  %407 = vmatpush.bf16.msra.mxu1 %v135_v2  ;;  %v403_v5 = vld [vmem:[%s642_s0 + $0x20] sm:$0xff]  ;;  %21 = vst.msk [vmem:[#allocation2 + $0x10] sm:$0xff] %vm18_vm1, %v411_v1  ;;  %v404_v9 = vld [vmem:[%s642_s0 + $0x28] sm:$0xff]  ;;  %v406_v10 = vld [vmem:[%s642_s0 + $0x38] sm:$0xff] }
   0x4   :  { %408 = vmatpush.bf16.msra.mxu2 %v135_v2  ;;  %409 = vmatpush.bf16.msra.mxu3 %v135_v2  ;;  %22 = vst.msk [vmem:[#allocation2 + $0x18] sm:$0xff] %vm18_vm1, %v411_v1 }
   0x5   :  { %23 = vst.msk [vmem:[#allocation2 + $0x20] sm:$0xff] %vm18_vm1, %v411_v1 }
   0x6   :  { %391 = vmatmul.msk.bf16.vlgmr.msra.gmra.mxu0 %vm108_vm2, %v399_v3  ;;  %393 = vmatmul.msk.bf16.vlgmr.msra.gmra.mxu1 %vm108_vm2, %v401_v4  ;;  %24 = vst.msk [vmem:[#allocation2 + $0x28] sm:$0xff] %vm18_vm1, %v411_v1 }
   0x7   :  { %395 = vmatmul.msk.bf16.vlgmr.msra.gmra.mxu2 %vm108_vm2, %v403_v5  ;;  %397 = vmatmul.msk.bf16.vlgmr.msra.gmra.mxu3 %vm108_vm2, %v405_v6  ;;  %25 = vst.msk [vmem:[#allocation2 + $0x30] sm:$0xff] %vm18_vm1, %v411_v1 }
   0x8   :  { %26 = vst.msk [vmem:[#allocation2 + $0x38] sm:$0xff] %vm18_vm1, %v411_v1  ;;  %v35_v11 = vld [vmem:[#allocation2] sm:$0xff] }
   0x9   :  { %27 = vst.msk [vmem:[#allocation2 + $0x40] sm:$0xff] %vm18_vm1, %v411_v1  ;;  %v36_v18 = vld [vmem:[#allocation2 + $0x8] sm:$0xff] }
   0xa   :  { %28 = vst.msk [vmem:[#allocation2 + $0x48] sm:$0xff] %vm18_vm1, %v411_v1  ;;  %v37_v31 = vld [vmem:[#allocation2 + $0x10] sm:$0xff] }
   0xb   :  { %29 = vst.msk [vmem:[#allocation2 + $0x50] sm:$0xff] %vm18_vm1, %v411_v1  ;;  %v38_v48 = vld [vmem:[#allocation2 + $0x18] sm:$0xff] }
   0xc   :  { %30 = vst.msk [vmem:[#allocation2 + $0x58] sm:$0xff] %vm18_vm1, %v411_v1  ;;  %v39_v12 = vld [vmem:[#allocation2 + $0x20] sm:$0xff] }
   0xd   :  { %31 = vst.msk [vmem:[#allocation2 + $0x60] sm:$0xff] %vm18_vm1, %v411_v1  ;;  %v40_v19 = vld [vmem:[#allocation2 + $0x28] sm:$0xff] }
   0xe   :  { %32 = vst.msk [vmem:[#allocation2 + $0x68] sm:$0xff] %vm18_vm1, %v411_v1  ;;  %v41_v32 = vld [vmem:[#allocation2 + $0x30] sm:$0xff] }
   0xf   :  { %33 = vst.msk [vmem:[#allocation2 + $0x70] sm:$0xff] %vm18_vm1, %v411_v1  ;;  %v42_v49 = vld [vmem:[#allocation2 + $0x38] sm:$0xff] }
  0x10   :  { %34 = vst.msk [vmem:[#allocation2 + $0x78] sm:$0xff] %vm18_vm1, %v411_v1  ;;  %v43_v17 = vld [vmem:[#allocation2 + $0x40] sm:$0xff] }
  0x11   :  { %v44_v37 = vld [vmem:[#allocation2 + $0x48] sm:$0xff] }
  0x12   :  { %v45_v45 = vld [vmem:[#allocation2 + $0x50] sm:$0xff] }
  0x13   :  { %v46_v62 = vld [vmem:[#allocation2 + $0x58] sm:$0xff] }
  0x14   :  { %v47_v25 = vld [vmem:[#allocation2 + $0x60] sm:$0xff] }
  0x15   :  { %v48_v41 = vld [vmem:[#allocation2 + $0x68] sm:$0xff] }
  0x16   :  { %392 = vmatmul.msk.bf16.gmra.mxu0 %vm108_vm2, %v400_v7  ;;  %394 = vmatmul.msk.bf16.gmra.mxu1 %vm108_vm2, %v402_v8  ;;  %v49_v56 = vld [vmem:[#allocation2 + $0x70] sm:$0xff] }
  0x17   :  { %396 = vmatmul.msk.bf16.gmra.mxu2 %vm108_vm2, %v404_v9  ;;  %398 = vmatmul.msk.bf16.gmra.mxu3 %vm108_vm2, %v406_v10  ;;  %v50_v63 = vld [vmem:[#allocation2 + $0x78] sm:$0xff] }
  0x83   :  { %v146_v13 = vpop.f32.mrf.mxu0  ;;  %v156_v14 = vpop.f32.mrf.mxu1 }
  0x84   :  { %v186_v15 = vadd.f32 %v146_v13, %v35_v11  ;;  %v190_v16 = vadd.f32 %v156_v14, %v39_v12 }
  0x86   :  { %203 = vst.msk [vmem:[#allocation2] sm:$0xff] %vm18_vm1, %v186_v15 }
  0x87   :  { %207 = vst.msk [vmem:[#allocation2 + $0x20] sm:$0xff] %vm18_vm1, %v190_v16 }
  0x8a   :  { %v166_v20 = vpop.f32.mrf.mxu2  ;;  %v176_v21 = vpop.f32.mrf.mxu3 }
  0x8b   :  { %v148_v22 = vpop.f32.mrf.mxu0  ;;  %v158_v23 = vpop.f32.mrf.mxu1  ;;  %v194_v24 = vadd.f32 %v166_v20, %v43_v17  ;;  %v198_v30 = vadd.f32 %v176_v21, %v47_v25 }
  0x8c   :  { %v187_v26 = vadd.f32 %v148_v22, %v36_v18  ;;  %v191_v28 = vadd.f32 %v158_v23, %v40_v19 }
  0x8d   :  { %v485_v27 = vld [vmem:[#allocation2] sm:$0xff]  ;;  %211 = vst.msk [vmem:[#allocation2 + $0x40] sm:$0xff] %vm18_vm1, %v194_v24 }
  0x8e   :  { %238 = vst.msk [vmem:[%s643_s2] sm:$0xff] %vm18_vm1, %v485_v27  ;;  %v493_v29 = vld [vmem:[#allocation2 + $0x20] sm:$0xff]  ;;  %v291_v1 = vmul.f32 %v485_v27, %v485_v27  ;;  %v254_v9 = vsel %vm18_vm1, %v485_v27, 0.0 }
  0x8f   :  { %242 = vst.msk [vmem:[%s643_s2 + $0x20] sm:$0xff] %vm18_vm1, %v493_v29  ;;  %v295_v19 = vmul.f32 %v493_v29, %v493_v29  ;;  %v261_v25 = vsel %vm18_vm1, %v493_v29, 0.0 }
  0x90   :  { %204 = vst.msk [vmem:[#allocation2 + $0x8] sm:$0xff] %vm18_vm1, %v187_v26  ;;  %v307_v14 = vsel %vm18_vm1, %v291_v1, 0.0 }
  0x91   :  { %208 = vst.msk [vmem:[#allocation2 + $0x28] sm:$0xff] %vm18_vm1, %v191_v28 }
  0x92   :  { %v168_v33 = vpop.f32.mrf.mxu2  ;;  %215 = vst.msk [vmem:[#allocation2 + $0x60] sm:$0xff] %vm18_vm1, %v198_v30  ;;  %v178_v34 = vpop.f32.mrf.mxu3 }
  0x93   :  { %v151_v35 = vpop.f32.mrf.mxu0  ;;  %v161_v36 = vpop.f32.mrf.mxu1  ;;  %v195_v42 = vadd.f32 %v168_v33, %v44_v37  ;;  %v199_v46 = vadd.f32 %v178_v34, %v48_v41 }
  0x94   :  { %v503_v38 = vld [vmem:[#allocation2 + $0x40] sm:$0xff]  ;;  %v188_v39 = vadd.f32 %v151_v35, %v37_v31  ;;  %v192_v40 = vadd.f32 %v161_v36, %v41_v32  ;;  %v314_v32 = vsel %vm18_vm1, %v295_v19, 0.0 }
  0x95   :  { %246 = vst.msk [vmem:[%s643_s2 + $0x40] sm:$0xff] %vm18_vm1, %v503_v38 }
  0x96   :  { %205 = vst.msk [vmem:[#allocation2 + $0x10] sm:$0xff] %vm18_vm1, %v188_v39 }
  0x97   :  { %v223_v43 = vld [vmem:[#allocation2 + $0x8] sm:$0xff]  ;;  %209 = vst.msk [vmem:[#allocation2 + $0x30] sm:$0xff] %vm18_vm1, %v192_v40 }
  0x98   :  { %239 = vst.msk [vmem:[%s643_s2 + $0x8] sm:$0xff] %vm18_vm1, %v223_v43  ;;  %v516_v44 = vld [vmem:[#allocation2 + $0x28] sm:$0xff]  ;;  %v292_v61 = vmul.f32 %v223_v43, %v223_v43  ;;  %v255_v2 = vsel %vm18_vm1, %v223_v43, 0.0 }
  0x99   :  { %243 = vst.msk [vmem:[%s643_s2 + $0x28] sm:$0xff] %vm18_vm1, %v516_v44  ;;  %v523_v47 = vld [vmem:[#allocation2 + $0x60] sm:$0xff]  ;;  %v256_v13 = vadd.f32 %v255_v2, %v254_v9  ;;  %v296_v26 = vmul.f32 %v516_v44, %v516_v44  ;;  %v263_v33 = vsel %vm18_vm1, %v516_v44, 0.0  ;;  %v299_v44 = vmul.f32 %v503_v38, %v503_v38 }
  0x9a   :  { %212 = vst.msk [vmem:[#allocation2 + $0x48] sm:$0xff] %vm18_vm1, %v195_v42  ;;  %v171_v50 = vpop.f32.mrf.mxu2  ;;  %v181_v51 = vpop.f32.mrf.mxu3  ;;  %v308_v10 = vsel %vm18_vm1, %v292_v61, 0.0  ;;  %v303_v1 = vmul.f32 %v523_v47, %v523_v47 }
  0x9b   :  { %250 = vst.msk [vmem:[%s643_s2 + $0x60] sm:$0xff] %vm18_vm1, %v523_v47  ;;  %v153_v52 = vpop.f32.mrf.mxu0  ;;  %v163_v53 = vpop.f32.mrf.mxu1  ;;  %v196_v54 = vadd.f32 %v171_v50, %v45_v45  ;;  %v200_v60 = vadd.f32 %v181_v51, %v49_v56  ;;  %v309_v16 = vadd.f32 %v308_v10, %v307_v14  ;;  %v316_v37 = vsel %vm18_vm1, %v296_v26, 0.0 }
  0x9c   :  { %v189_v55 = vadd.f32 %v153_v52, %v38_v48  ;;  %216 = vst.msk [vmem:[#allocation2 + $0x68] sm:$0xff] %vm18_vm1, %v199_v46  ;;  %v193_v58 = vadd.f32 %v163_v53, %v42_v49  ;;  %v269_v50 = vsel %vm18_vm1, %v503_v38, 0.0 }
  0x9d   :  { %v224_v57 = vld [vmem:[#allocation2 + $0x10] sm:$0xff]  ;;  %213 = vst.msk [vmem:[#allocation2 + $0x50] sm:$0xff] %vm18_vm1, %v196_v54 }
  0x9e   :  { %240 = vst.msk [vmem:[%s643_s2 + $0x10] sm:$0xff] %vm18_vm1, %v224_v57  ;;  %v228_v59 = vld [vmem:[#allocation2 + $0x30] sm:$0xff]  ;;  %v293_v3 = vmul.f32 %v224_v57, %v224_v57  ;;  %v257_v11 = vsel %vm18_vm1, %v224_v57, 0.0 }
  0x9f   :  { %244 = vst.msk [vmem:[%s643_s2 + $0x30] sm:$0xff] %vm18_vm1, %v228_v59  ;;  %v258_v17 = vadd.f32 %v257_v11, %v256_v13  ;;  %v297_v34 = vmul.f32 %v228_v59, %v228_v59  ;;  %v265_v39 = vsel %vm18_vm1, %v228_v59, 0.0  ;;  %v330_v11 = vsel %vm18_vm1, %v303_v1, 0.0 }
  0xa0   :  { %206 = vst.msk [vmem:[#allocation2 + $0x18] sm:$0xff] %vm18_vm1, %v189_v55  ;;  %v310_v15 = vsel %vm18_vm1, %v293_v3, 0.0  ;;  %v322_v55 = vsel %vm18_vm1, %v299_v44, 0.0 }
  0xa1   :  { %v542_v0 = vld [vmem:[#allocation2 + $0x48] sm:$0xff]  ;;  %210 = vst.msk [vmem:[#allocation2 + $0x38] sm:$0xff] %vm18_vm1, %v193_v58  ;;  %v311_v23 = vadd.f32 %v310_v15, %v309_v16  ;;  %v318_v45 = vsel %vm18_vm1, %v297_v34, 0.0 }
  0xa2   :  { %247 = vst.msk [vmem:[%s643_s2 + $0x48] sm:$0xff] %vm18_vm1, %v542_v0  ;;  %v173_v4 = vpop.f32.mrf.mxu2  ;;  %v183_v5 = vpop.f32.mrf.mxu3  ;;  %v300_v51 = vmul.f32 %v542_v0, %v542_v0  ;;  %v271_v56 = vsel %vm18_vm1, %v542_v0, 0.0  ;;  %v277_v0 = vsel %vm18_vm1, %v523_v47, 0.0 }
  0xa3   :  { %v553_v6 = vld [vmem:[#allocation2 + $0x68] sm:$0xff]  ;;  %v197_v7 = vadd.f32 %v173_v4, %v46_v62  ;;  %217 = vst.msk [vmem:[#allocation2 + $0x70] sm:$0xff] %vm18_vm1, %v200_v60  ;;  %v201_v8 = vadd.f32 %v183_v5, %v50_v63 }
  0xa4   :  { %v232_v12 = vld [vmem:[#allocation2 + $0x50] sm:$0xff]  ;;  %251 = vst.msk [vmem:[%s643_s2 + $0x68] sm:$0xff] %vm18_vm1, %v553_v6  ;;  %v324_v60 = vsel %vm18_vm1, %v300_v51, 0.0 }
  0xa5   :  { %248 = vst.msk [vmem:[%s643_s2 + $0x50] sm:$0xff] %vm18_vm1, %v232_v12  ;;  %v301_v57 = vmul.f32 %v232_v12, %v232_v12  ;;  %v273_v61 = vsel %vm18_vm1, %v232_v12, 0.0  ;;  %v279_v12 = vsel %vm18_vm1, %v553_v6, 0.0 }
  0xa6   :  { %214 = vst.msk [vmem:[#allocation2 + $0x58] sm:$0xff] %vm18_vm1, %v197_v7  ;;  %v304_v7 = vmul.f32 %v553_v6, %v553_v6 }
  0xa7   :  { %v225_v18 = vld [vmem:[#allocation2 + $0x18] sm:$0xff]  ;;  %218 = vst.msk [vmem:[#allocation2 + $0x78] sm:$0xff] %vm18_vm1, %v201_v8  ;;  %v326_v2 = vsel %vm18_vm1, %v301_v57, 0.0 }
  0xa8   :  { %241 = vst.msk [vmem:[%s643_s2 + $0x18] sm:$0xff] %vm18_vm1, %v225_v18  ;;  %v259_v20 = vsel %vm18_vm1, %v225_v18, 0.0  ;;  %v294_v21 = vmul.f32 %v225_v18, %v225_v18  ;;  %v229_v22 = vld [vmem:[#allocation2 + $0x38] sm:$0xff]  ;;  %v332_v16 = vsel %vm18_vm1, %v304_v7, 0.0 }
  0xa9   :  { %v260_v24 = vadd.f32 %v259_v20, %v258_v17  ;;  %245 = vst.msk [vmem:[%s643_s2 + $0x38] sm:$0xff] %vm18_vm1, %v229_v22  ;;  %v298_v40 = vmul.f32 %v229_v22, %v229_v22  ;;  %v267_v46 = vsel %vm18_vm1, %v229_v22, 0.0 }
  0xaa   :  { %v312_v27 = vsel %vm18_vm1, %v294_v21, 0.0  ;;  %v236_v28 = vld [vmem:[#allocation2 + $0x70] sm:$0xff] }
  0xab   :  { %v262_v30 = vadd.f32 %v261_v25, %v260_v24  ;;  %v313_v31 = vadd.f32 %v312_v27, %v311_v23  ;;  %252 = vst.msk [vmem:[%s643_s2 + $0x70] sm:$0xff] %vm18_vm1, %v236_v28  ;;  %v320_v52 = vsel %vm18_vm1, %v298_v40, 0.0  ;;  %v305_v13 = vmul.f32 %v236_v28, %v236_v28 }
  0xac   :  { %v281_v17 = vsel %vm18_vm1, %v236_v28, 0.0 }
  0xad   :  { %v315_v29 = vadd.f32 %v314_v32, %v313_v31  ;;  %v264_v35 = vadd.f32 %v263_v33, %v262_v30  ;;  %v233_v36 = vld [vmem:[#allocation2 + $0x58] sm:$0xff]  ;;  %v334_v20 = vsel %vm18_vm1, %v305_v13, 0.0  ;;  %v344_v30 = vlaneseq }
  0xae   :  { %249 = vst.msk [vmem:[%s643_s2 + $0x58] sm:$0xff] %vm18_vm1, %v233_v36  ;;  %v237_v41 = vld [vmem:[#allocation2 + $0x78] sm:$0xff]  ;;  %v302_v38 = vmul.f32 %v233_v36, %v233_v36  ;;  %v275_v3 = vsel %vm18_vm1, %v233_v36, 0.0 }
  0xaf   :  { %v266_v42 = vadd.f32 %v265_v39, %v264_v35  ;;  %v317_v43 = vadd.f32 %v316_v37, %v315_v29  ;;  %253 = vst.msk [vmem:[%s643_s2 + $0x78] sm:$0xff] %vm18_vm1, %v237_v41  ;;  %v306_v47 = vmul.f32 %v237_v41, %v237_v41  ;;  %v283_v21 = vsel %vm18_vm1, %v237_v41, 0.0 }
  0xb0   :  { %v328_v8 = vsel %vm18_vm1, %v302_v38, 0.0  ;;  %v345_v34 = vshrl.u32 %v344_v30, 7 }
  0xb1   :  { %v268_v48 = vadd.f32 %v267_v46, %v266_v42  ;;  %v319_v49 = vadd.f32 %v318_v45, %v317_v43  ;;  %v336_v24 = vsel %vm18_vm1, %v306_v47, 0.0 }
  0xb2   :  { %vm347_vm3 = vcmp.eq.s32.totalorder %v345_v34, 1  ;;  %vm346_vm4 = vcmp.eq.s32.totalorder %v345_v34, 0 }
  0xb3   :  { %v270_v53 = vadd.f32 %v269_v50, %v268_v48  ;;  %v321_v54 = vadd.f32 %v320_v52, %v319_v49 }
  0xb5   :  { %v323_v58 = vadd.f32 %v322_v55, %v321_v54  ;;  %v272_v59 = vadd.f32 %v271_v56, %v270_v53 }
  0xb7   :  { %v274_v62 = vadd.f32 %v273_v61, %v272_v59  ;;  %v325_v63 = vadd.f32 %v324_v60, %v323_v58 }
  0xb9   :  { %v327_v4 = vadd.f32 %v326_v2, %v325_v63  ;;  %v276_v5 = vadd.f32 %v275_v3, %v274_v62 }
  0xbb   :  { %v278_v9 = vadd.f32 %v277_v0, %v276_v5  ;;  %v329_v10 = vadd.f32 %v328_v8, %v327_v4 }
  0xbd   :  { %v331_v14 = vadd.f32 %v330_v11, %v329_v10  ;;  %v280_v15 = vadd.f32 %v279_v12, %v278_v9 }
  0xbf   :  { %v282_v18 = vadd.f32 %v281_v17, %v280_v15  ;;  %v333_v19 = vadd.f32 %v332_v16, %v331_v14 }
  0xc1   :  { %v335_v22 = vadd.f32 %v334_v20, %v333_v19  ;;  %v284_v23 = vadd.f32 %v283_v21, %v282_v18 }
  0xc3   :  { %v285_v25 = vrot.slane %v284_v23, 4  ;;  %v337_v6 = vadd.f32 %v336_v24, %v335_v22 }
  0xc5   :  { %v286_v26 = vadd.f32 %v285_v25, %v284_v23  ;;  %v338_v27 = vrot.slane %v337_v6, 4 }
  0xc7   :  { %v287_v31 = vrot.slane %v286_v26, 2  ;;  %v339_v32 = vadd.f32 %v338_v27, %v337_v6 }
  0xc9   :  { %v288_v33 = vadd.f32 %v287_v31, %v286_v26  ;;  %v340_v28 = vrot.slane %v339_v32, 2 }
  0xcb   :  { %v341_v29 = vadd.f32 %v340_v28, %v339_v32  ;;  %v289_v35 = vrot.slane %v288_v33, 1 }
  0xcd   :  { %v342_v36 = vrot.slane %v341_v29, 1  ;;  %v290_v39 = vadd.f32 %v289_v35, %v288_v33 }
  0xcf   :  { %v343_v37 = vadd.f32 %v342_v36, %v341_v29 }
  0xd1   :  { %v348_v40 = vsel %vm347_vm3, %v343_v37, 0.0 }
  0xd2   :  { %v349_v41 = vsel %vm346_vm4, %v290_v39, %v348_v40 }
  0xd3   :  { %350 = vst.msk [vmem:[%s644_s3] sm:$0xff] %vm18_vm1, %v349_v41 }

// kernel: bottleneck_forward.13
= control target key start
LH: loop header
LB: loop body
LE: loop exit
PB: predicated region body
PF: predicated region fallthrough
CT: control target
= control target key end

     0   :  { %vm168_vm0 = vcmask 130048   ;;  %s473_s0 = inlined_call_operand.vmem [shape: f32[128,16], index: 0, kind: input, shape index: {}]   ;;  %s474_s1 = inlined_call_operand.vmem [shape: f32[128,16], index: 1, kind: input, shape index: {}]   ;;  %s475_s2 = inlined_call_operand.vmem [shape: f32[1,16], index: 2, kind: input, shape index: {}]   ;;  %s476_s3 = inlined_call_operand.vmem [shape: f32[1,16], index: 3, kind: input, shape index: {}]   ;;  %s477_s4 = inlined_call_operand.vmem [shape: f32[1,16], index: 4, kind: input, shape index: {}]   ;;  %s478_s5 = inlined_call_operand.vmem [shape: f32[1,16], index: 5, kind: input, shape index: {}]   ;;  %s479_s6 = inlined_call_operand.hbm [shape: f32[128,16], index: 6, kind: output, shape index: {}]  }
   0x1   :  { %v24_v0 = vld [vmem:[%s473_s0] sm:$0xff]  ;;  %v25_v7 = vld [vmem:[%s473_s0 + $0x8] sm:$0xff]  ;;  %v26_v13 = vld [vmem:[%s473_s0 + $0x10] sm:$0xff] }
   0x2   :  { %v280_v1 = vld [vmem:[%s475_s2] ss:$0 sm:$0xff]  ;;  %v81_v8 = vld [vmem:[%s474_s1 + $0x8] sm:$0xff]  ;;  %v82_v14 = vld [vmem:[%s474_s1 + $0x10] sm:$0xff] }
   0x3   :  { %v285_v2 = vld [vmem:[%s476_s3] ss:$0 sm:$0xff]  ;;  %v44_v4 = vmul.f32 %v280_v1, %v24_v0  ;;  %v45_v11 = vmul.f32 %v280_v1, %v25_v7  ;;  %v27_v15 = vld [vmem:[%s473_s0 + $0x18] sm:$0xff]  ;;  %v46_v16 = vmul.f32 %v280_v1, %v26_v13  ;;  %v29_v26 = vld [vmem:[%s473_s0 + $0x28] sm:$0xff] }
   0x4   :  { %v80_v3 = vld [vmem:[%s474_s1] sm:$0xff]  ;;  %v47_v18 = vmul.f32 %v280_v1, %v27_v15  ;;  %v83_v19 = vld [vmem:[%s474_s1 + $0x18] sm:$0xff]  ;;  %v85_v27 = vld [vmem:[%s474_s1 + $0x28] sm:$0xff]  ;;  %v49_v32 = vmul.f32 %v280_v1, %v29_v26 }
   0x5   :  { %v294_v5 = vld [vmem:[%s477_s4] ss:$0 sm:$0xff]  ;;  %v64_v9 = vadd.f32 %v285_v2, %v44_v4  ;;  %v65_v23 = vadd.f32 %v285_v2, %v45_v11  ;;  %v30_v28 = vld [vmem:[%s473_s0 + $0x30] sm:$0xff]  ;;  %v66_v29 = vadd.f32 %v285_v2, %v46_v16  ;;  %v31_v42 = vld [vmem:[%s473_s0 + $0x38] sm:$0xff] }
   0x6   :  { %v299_v6 = vld [vmem:[%s478_s5] ss:$0 sm:$0xff]  ;;  %v100_v10 = vmul.f32 %v294_v5, %v80_v3  ;;  %v101_v12 = vmul.f32 %v294_v5, %v81_v8  ;;  %v102_v17 = vmul.f32 %v294_v5, %v82_v14  ;;  %v103_v24 = vmul.f32 %v294_v5, %v83_v19  ;;  %v86_v33 = vld [vmem:[%s474_s1 + $0x30] sm:$0xff]  ;;  %v87_v43 = vld [vmem:[%s474_s1 + $0x38] sm:$0xff] }
   0x7   :  { %v28_v20 = vld [vmem:[%s473_s0 + $0x20] sm:$0xff]  ;;  %v67_v30 = vadd.f32 %v285_v2, %v47_v18  ;;  %v105_v37 = vmul.f32 %v294_v5, %v85_v27  ;;  %v69_v40 = vadd.f32 %v285_v2, %v49_v32  ;;  %v50_v41 = vmul.f32 %v280_v1, %v30_v28  ;;  %v33_v58 = vld [vmem:[%s473_s0 + $0x48] sm:$0xff]  ;;  %v34_v0 = vld [vmem:[%s473_s0 + $0x50] sm:$0xff] }
   0x8   :  { %v84_v21 = vld [vmem:[%s474_s1 + $0x20] sm:$0xff]  ;;  %v116_v22 = vadd.f32 %v100_v10, %v64_v9  ;;  %v48_v25 = vmul.f32 %v280_v1, %v28_v20  ;;  %v117_v35 = vadd.f32 %v101_v12, %v65_v23  ;;  %v118_v38 = vadd.f32 %v102_v17, %v66_v29  ;;  %v89_v59 = vld [vmem:[%s474_s1 + $0x48] sm:$0xff]  ;;  %v90_v3 = vld [vmem:[%s474_s1 + $0x50] sm:$0xff] }
   0x9   :  { %v104_v31 = vmul.f32 %v294_v5, %v84_v21  ;;  %v119_v39 = vadd.f32 %v103_v24, %v67_v30  ;;  %v106_v47 = vmul.f32 %v294_v5, %v86_v33  ;;  %v121_v50 = vadd.f32 %v105_v37, %v69_v40  ;;  %v32_v52 = vld [vmem:[%s473_s0 + $0x40] sm:$0xff] }
   0xa   :  { %v136_v34 = vadd.f32 %v299_v6, %v116_v22  ;;  %v68_v36 = vadd.f32 %v285_v2, %v48_v25  ;;  %v137_v45 = vadd.f32 %v299_v6, %v117_v35  ;;  %v138_v48 = vadd.f32 %v299_v6, %v118_v38  ;;  %v88_v53 = vld [vmem:[%s474_s1 + $0x40] sm:$0xff] }
   0xb   :  { %v139_v49 = vadd.f32 %v299_v6, %v119_v39  ;;  %v70_v51 = vadd.f32 %v285_v2, %v50_v41  ;;  %v51_v56 = vmul.f32 %v280_v1, %v31_v42  ;;  %v107_v57 = vmul.f32 %v294_v5, %v87_v43 }
   0xc   :  { %v152_v44 = vmax.f32 %v136_v34, 0.0  ;;  %v120_v46 = vadd.f32 %v104_v31, %v68_v36  ;;  %v153_v54 = vmax.f32 %v137_v45, 0.0  ;;  %v154_v60 = vmax.f32 %v138_v48, 0.0 }
   0xd   :  { %v155_v61 = vmax.f32 %v139_v49, 0.0  ;;  %v141_v62 = vadd.f32 %v299_v6, %v121_v50  ;;  %v122_v63 = vadd.f32 %v106_v47, %v70_v51 }
   0xe   :  { %169 = vst.msk [vmem:[#allocation2] sm:$0xff] %vm168_vm0, %v152_v44  ;;  %v140_v55 = vadd.f32 %v299_v6, %v120_v46 }
   0xf   :  { %11 = vsyncpa [#allocation3], 0  ;;  %170 = vst.msk [vmem:[#allocation2 + $0x8] sm:$0xff] %vm168_vm0, %v153_v54  ;;  %v71_v7 = vadd.f32 %v285_v2, %v51_v56  ;;  %v52_v8 = vmul.f32 %v280_v1, %v32_v52  ;;  %v108_v9 = vmul.f32 %v294_v5, %v88_v53  ;;  %v35_v10 = vld [vmem:[%s473_s0 + $0x58] sm:$0xff]  ;;  %v157_v12 = vmax.f32 %v141_v62, 0.0  ;;  %v36_v16 = vld [vmem:[%s473_s0 + $0x60] sm:$0xff] }
  0x10   :  { %v156_v4 = vmax.f32 %v140_v55, 0.0  ;;  %v91_v11 = vld [vmem:[%s474_s1 + $0x58] sm:$0xff]  ;;  %171 = vst.msk [vmem:[#allocation2 + $0x10] sm:$0xff] %vm168_vm0, %v154_v60  ;;  %v142_v13 = vadd.f32 %v299_v6, %v122_v63  ;;  %v53_v14 = vmul.f32 %v280_v1, %v33_v58  ;;  %v109_v15 = vmul.f32 %v294_v5, %v89_v59  ;;  %v92_v21 = vld [vmem:[%s474_s1 + $0x60] sm:$0xff]  ;;  %v37_v22 = vld [vmem:[%s473_s0 + $0x68] sm:$0xff]  ;;  %s191_s5 = sshll.u32 %s479_s6, 4  ;;  %s192_s5 = int_to_ptr.hbm [resolvable:$true] %s191_s5 }
  0x11   :  { %172 = vst.msk [vmem:[#allocation2 + $0x18] sm:$0xff] %vm168_vm0, %v155_v61  ;;  %v123_v17 = vadd.f32 %v107_v57, %v71_v7  ;;  %v72_v18 = vadd.f32 %v285_v2, %v52_v8  ;;  %v54_v19 = vmul.f32 %v280_v1, %v34_v0  ;;  %v110_v20 = vmul.f32 %v294_v5, %v90_v3  ;;  %v93_v31 = vld [vmem:[%s474_s1 + $0x68] sm:$0xff]  ;;  %v38_v36 = vld [vmem:[%s473_s0 + $0x70] sm:$0xff]  ;;  %v39_v46 = vld [vmem:[%s473_s0 + $0x78] sm:$0xff]  ;;  %s236_s0 = smov [#allocation2]   ;;  %s237_s12 = smov 128  }
  0x12   :  { %173 = vst.msk [vmem:[#allocation2 + $0x20] sm:$0xff] %vm168_vm0, %v156_v4  ;;  %v158_v23 = vmax.f32 %v142_v13, 0.0  ;;  %v73_v24 = vadd.f32 %v285_v2, %v53_v14  ;;  %v55_v25 = vmul.f32 %v280_v1, %v35_v10  ;;  %v111_v26 = vmul.f32 %v294_v5, %v91_v11  ;;  %v94_v41 = vld [vmem:[%s474_s1 + $0x70] sm:$0xff]  ;;  %v95_v51 = vld [vmem:[%s474_s1 + $0x78] sm:$0xff]  ;;  %s189_s1 = sshll.u32 %s236_s0, 4  ;;  %s238_s13 = smov 8   ;;  %s190_s1 = int_to_ptr.vmem [resolvable:$true] %s189_s1 }
  0x13   :  { %174 = vst.msk [vmem:[#allocation2 + $0x28] sm:$0xff] %vm168_vm0, %v157_v12  ;;  %v143_v27 = vadd.f32 %v299_v6, %v123_v17  ;;  %v124_v28 = vadd.f32 %v108_v9, %v72_v18  ;;  %v74_v29 = vadd.f32 %v285_v2, %v54_v19  ;;  %v56_v30 = vmul.f32 %v280_v1, %v36_v16 }
  0x14   :  { %175 = vst.msk [vmem:[#allocation2 + $0x30] sm:$0xff] %vm168_vm0, %v158_v23  ;;  %v125_v32 = vadd.f32 %v109_v15, %v73_v24  ;;  %v75_v33 = vadd.f32 %v285_v2, %v55_v25  ;;  %v112_v34 = vmul.f32 %v294_v5, %v92_v21  ;;  %v57_v35 = vmul.f32 %v280_v1, %v37_v22 }
  0x15   :  { %v159_v37 = vmax.f32 %v143_v27, 0.0  ;;  %v144_v38 = vadd.f32 %v299_v6, %v124_v28  ;;  %v126_v39 = vadd.f32 %v110_v20, %v74_v29  ;;  %v76_v40 = vadd.f32 %v285_v2, %v56_v30 }
  0x16   :  { %v145_v42 = vadd.f32 %v299_v6, %v125_v32  ;;  %v127_v43 = vadd.f32 %v111_v26, %v75_v33  ;;  %v77_v44 = vadd.f32 %v285_v2, %v57_v35  ;;  %v113_v45 = vmul.f32 %v294_v5, %v93_v31 }
  0x17   :  { %176 = vst.msk [vmem:[#allocation2 + $0x38] sm:$0xff] %vm168_vm0, %v159_v37  ;;  %v160_v47 = vmax.f32 %v144_v38, 0.0  ;;  %v146_v48 = vadd.f32 %v299_v6, %v126_v39  ;;  %v128_v49 = vadd.f32 %v112_v34, %v76_v40  ;;  %v58_v50 = vmul.f32 %v280_v1, %v38_v36 }
  0x18   :  { %v161_v52 = vmax.f32 %v145_v42, 0.0  ;;  %v147_v53 = vadd.f32 %v299_v6, %v127_v43  ;;  %v129_v54 = vadd.f32 %v113_v45, %v77_v44  ;;  %v114_v55 = vmul.f32 %v294_v5, %v94_v41 }
  0x19   :  { %177 = vst.msk [vmem:[#allocation2 + $0x40] sm:$0xff] %vm168_vm0, %v160_v47  ;;  %v162_v56 = vmax.f32 %v146_v48, 0.0  ;;  %v148_v57 = vadd.f32 %v299_v6, %v128_v49  ;;  %v78_v58 = vadd.f32 %v285_v2, %v58_v50  ;;  %v59_v59 = vmul.f32 %v280_v1, %v39_v46 }
  0x1a   :  { %178 = vst.msk [vmem:[#allocation2 + $0x48] sm:$0xff] %vm168_vm0, %v161_v52  ;;  %v163_v60 = vmax.f32 %v147_v53, 0.0  ;;  %v149_v61 = vadd.f32 %v299_v6, %v129_v54  ;;  %v115_v62 = vmul.f32 %v294_v5, %v95_v51 }
  0x1b   :  { %179 = vst.msk [vmem:[#allocation2 + $0x50] sm:$0xff] %vm168_vm0, %v162_v56  ;;  %v164_v63 = vmax.f32 %v148_v57, 0.0  ;;  %v130_v0 = vadd.f32 %v114_v55, %v78_v58  ;;  %v79_v3 = vadd.f32 %v285_v2, %v59_v59 }
  0x1c   :  { %180 = vst.msk [vmem:[#allocation2 + $0x58] sm:$0xff] %vm168_vm0, %v163_v60  ;;  %v165_v4 = vmax.f32 %v149_v61, 0.0 }
  0x1d   :  { %181 = vst.msk [vmem:[#allocation2 + $0x60] sm:$0xff] %vm168_vm0, %v164_v63  ;;  %v150_v1 = vadd.f32 %v299_v6, %v130_v0  ;;  %v131_v7 = vadd.f32 %v115_v62, %v79_v3 }
  0x1e   :  { %182 = vst.msk [vmem:[#allocation2 + $0x68] sm:$0xff] %vm168_vm0, %v165_v4 }
  0x1f   :  { %v166_v5 = vmax.f32 %v150_v1, 0.0  ;;  %v151_v8 = vadd.f32 %v299_v6, %v131_v7 }
  0x21   :  { %183 = vst.msk [vmem:[#allocation2 + $0x70] sm:$0xff] %vm168_vm0, %v166_v5  ;;  %v167_v2 = vmax.f32 %v151_v8, 0.0 }
  0x23   :  { %184 = vst.msk [vmem:[#allocation2 + $0x78] sm:$0xff] %vm168_vm0, %v167_v2 }
  0x24   :  { %197 = dma.vmem_to_hbm [thread:$0]  %s190_s1, 2048, %s192_s5, [#allocation3], %s237_s12, %s237_s12, %s238_s13  }
  0x25   :  { %234 = dma.done.wait [#allocation3], 2048  }
  0x26   :  { %235 = vsyncadd [#allocation3], 4294965248 }
  0x27   :  { %202 = vsyncpa [#allocation3], 1 }

</bundles_post_ra>
